<compile_context>
chip_gen: v5e
topology: v5e:2x2
jax: 0.10.0
libtpu: 0.0.40
codegen_flags: <defaults>
</compile_context>

<pallas_src>
import functools
import math

import jax
import jax.numpy as jnp
from jax.experimental import pallas as pl
from jax.experimental.pallas import tpu as pltpu


_PARALLEL = pltpu.CompilerParams(dimension_semantics=("parallel",))


# ---------------------------- Pallas kernels ----------------------------

def front_kernel(x_ref, ln_ref, w_ref, o_ref, *, eps):
    # fused GroupNorm(num_groups=1, eps) + pointwise Conv1d (no bias).
    # x block: (1, N, D); ln: (2, N, 1) = [gamma, beta]; w: (Bch, N).
    x = x_ref[0]                                        # (N, D) f32
    mu = jnp.mean(x)
    var = jnp.mean((x - mu) ** 2)
    xn = (x - mu) * jax.lax.rsqrt(var + eps)
    xn = xn * ln_ref[0] + ln_ref[1]
    o_ref[0, :, :] = jnp.dot(w_ref[...].astype(jnp.bfloat16),
                             xn.astype(jnp.bfloat16),
                             preferred_element_type=jnp.float32)


def mask_kernel(x_ref, w_ref, a_ref, o_ref):
    # fused PReLU -> pointwise Conv1d (no bias) -> ReLU.
    x = x_ref[0]                                        # (Bch, D)
    a = a_ref[0]                                        # PReLU scalar (SMEM)
    xp = jnp.where(x > 0, x, a * x)
    y = jnp.dot(w_ref[...].astype(jnp.bfloat16), xp.astype(jnp.bfloat16),
                preferred_element_type=jnp.float32)
    o_ref[0, :, :] = jnp.maximum(y, 0.0)


def enc_gn_res_kernel(x_ref, wqkvo_ref, w1_ref, b1_ref, w2_ref, vecs_ref, o_ref,
                      *, inv_sqrt_d):
    # One cmEncoderLayer (nhead=1) applied to all SB sequences of one batch item
    # at once, followed by GroupNorm(1 group, eps=1e-8) over the whole block and
    # the residual add.  Linear weights are pre-transposed: y = x @ W_t + b.
    # vecs rows: [bq, bk, bv, bo, b2, n1w, n1b, n2w, n2b, gn_w, gn_b]
    SB, T, d = x_ref.shape
    x3 = x_ref[...]                                     # (SB, T, d) f32
    x2 = x3.reshape(SB * T, d)                          # one big row batch
    xb = x2.astype(jnp.bfloat16)

    V = vecs_ref[...]                                   # (11, d) f32
    bq, bk, bv, bo, b2 = V[0:1], V[1:2], V[2:3], V[3:4], V[4:5]
    n1w, n1b, n2w, n2b = V[5:6], V[6:7], V[7:8], V[8:9]
    gw, gb = V[9:10], V[10:11]

    wq = wqkvo_ref[0].astype(jnp.bfloat16)
    wk = wqkvo_ref[1].astype(jnp.bfloat16)
    wv = wqkvo_ref[2].astype(jnp.bfloat16)
    wo = wqkvo_ref[3].astype(jnp.bfloat16)

    # Q/K/V projections as single (SB*T, d) matmuls (bf16 operands, f32 acc).
    q = jnp.dot(xb, wq, preferred_element_type=jnp.float32) + bq
    k = jnp.dot(xb, wk, preferred_element_type=jnp.float32) + bk
    v = jnp.dot(xb, wv, preferred_element_type=jnp.float32) + bv
    q3 = q.reshape(SB, T, d).astype(jnp.bfloat16)
    k3 = k.reshape(SB, T, d).astype(jnp.bfloat16)
    v3 = v.reshape(SB, T, d).astype(jnp.bfloat16)

    # batched attention over all SB sequences; softmax math stays in f32.
    s = jnp.einsum('bqd,bkd->bqk', q3, k3,
                   preferred_element_type=jnp.float32) * inv_sqrt_d
    s = s - jnp.max(s, axis=-1, keepdims=True)
    p = jnp.exp(s)
    p = p * pl.reciprocal(jnp.sum(p, axis=-1, keepdims=True), approx=True)
    a3 = jnp.einsum('bqk,bkd->bqd', p.astype(jnp.bfloat16), v3,
                    preferred_element_type=jnp.float32)
    attn = jnp.dot(a3.reshape(SB * T, d).astype(jnp.bfloat16), wo,
                   preferred_element_type=jnp.float32) + bo

    # residual + LayerNorm1 (eps=1e-5), f32
    h = x2 + attn
    mu = jnp.mean(h, axis=-1, keepdims=True)
    var = jnp.mean((h - mu) ** 2, axis=-1, keepdims=True)
    h = (h - mu) * jax.lax.rsqrt(var + 1e-5) * n1w + n1b

    # feed-forward (ReLU), bf16 matmuls with f32 accumulation
    f1 = jnp.maximum(
        jnp.dot(h.astype(jnp.bfloat16), w1_ref[...].astype(jnp.bfloat16),
                preferred_element_type=jnp.float32) + b1_ref[...], 0.0)
    ff = jnp.dot(f1.astype(jnp.bfloat16), w2_ref[...].astype(jnp.bfloat16),
                 preferred_element_type=jnp.float32) + b2

    # residual + LayerNorm2 (eps=1e-5)
    h = h + ff
    mu = jnp.mean(h, axis=-1, keepdims=True)
    var = jnp.mean((h - mu) ** 2, axis=-1, keepdims=True)
    h = (h - mu) * jax.lax.rsqrt(var + 1e-5) * n2w + n2b

    # GroupNorm(1 group, eps=1e-8) over this batch item's full block + residual
    gmu = jnp.mean(h)
    gvar = jnp.mean((h - gmu) ** 2)
    out2 = (h - gmu) * jax.lax.rsqrt(gvar + 1e-8) * gw + gb + x2
    o_ref[...] = out2.reshape(SB, T, d)


# ---------------------------- Pallas wrappers ----------------------------

def front(x, ln_wb, w, *, eps=1e-8):
    # x: [M, N, D]; ln_wb: [2, N, 1]; w: [Bch, N] -> [M, Bch, D]
    M, N, D = x.shape
    Bch = w.shape[0]
    return pl.pallas_call(
        functools.partial(front_kernel, eps=eps),
        out_shape=jax.ShapeDtypeStruct((M, Bch, D), jnp.float32),
        grid=(M,),
        in_specs=[pl.BlockSpec((1, N, D), lambda m: (m, 0, 0)),
                  pl.BlockSpec((2, N, 1), lambda m: (0, 0, 0)),
                  pl.BlockSpec((Bch, N), lambda m: (0, 0))],
        out_specs=pl.BlockSpec((1, Bch, D), lambda m: (m, 0, 0)),
        compiler_params=_PARALLEL,
    )(x, ln_wb, w)


def mask_conv(x, w, prelu_a):
    # PReLU(x) -> conv1x1 -> ReLU ; prelu_a: (1,) float32 scalar in SMEM
    M, Cin, D = x.shape
    Cout = w.shape[0]
    return pl.pallas_call(
        mask_kernel,
        out_shape=jax.ShapeDtypeStruct((M, Cout, D), jnp.float32),
        grid=(M,),
        in_specs=[pl.BlockSpec((1, Cin, D), lambda m: (m, 0, 0)),
                  pl.BlockSpec((Cout, Cin), lambda m: (0, 0)),
                  pl.BlockSpec(memory_space=pltpu.MemorySpace.SMEM)],
        out_specs=pl.BlockSpec((1, Cout, D), lambda m: (m, 0, 0)),
        compiler_params=_PARALLEL,
    )(x, w, prelu_a)


def encoder_gn_res(x, p, *, batch):
    # x: [batch * SB, T, d] -> GroupNorm(encoder(x)) + x, same shape.
    # One grid step per batch item (all its SB sequences processed together).
    total, T, d = x.shape
    SB = total // batch
    dff = p['w1'].shape[1]
    return pl.pallas_call(
        functools.partial(enc_gn_res_kernel, inv_sqrt_d=1.0 / math.sqrt(d)),
        out_shape=jax.ShapeDtypeStruct((total, T, d), jnp.float32),
        grid=(batch,),
        in_specs=[pl.BlockSpec((SB, T, d), lambda b: (b, 0, 0)),
                  pl.BlockSpec((4, d, d), lambda b: (0, 0, 0)),
                  pl.BlockSpec((d, dff), lambda b: (0, 0)),
                  pl.BlockSpec((1, dff), lambda b: (0, 0)),
                  pl.BlockSpec((dff, d), lambda b: (0, 0)),
                  pl.BlockSpec((11, d), lambda b: (0, 0))],
        out_specs=pl.BlockSpec((SB, T, d), lambda b: (b, 0, 0)),
        compiler_params=_PARALLEL,
    )(x, p['wqkvo'], p['w1'], p['b1'], p['w2'], p['vecs'])


# ---------------------------- plain-JAX glue ----------------------------

def segment(x, K):
    # [B, N, L] -> [B, N, K, S], gap   (50% overlap chunking)
    B, N, L = x.shape
    P = K // 2
    gap = K - (P + L % K) % K
    if gap > 0:
        x = jnp.concatenate([x, jnp.zeros((B, N, gap), x.dtype)], axis=2)
    pad = jnp.zeros((B, N, P), x.dtype)
    x = jnp.concatenate([pad, x, pad], axis=2)
    x1 = x[:, :, :-P].reshape(B, N, -1, K)
    x2 = x[:, :, P:].reshape(B, N, -1, K)
    x = jnp.concatenate([x1, x2], axis=3).reshape(B, N, -1, K)
    return jnp.swapaxes(x, 2, 3), gap


def over_add(x, gap):
    # [B, N, K, S] -> [B, N, L]
    B, N, K, S = x.shape
    P = K // 2
    x = jnp.swapaxes(x, 2, 3).reshape(B, N, -1, K * 2)
    x1 = x[:, :, :, :K].reshape(B, N, -1)[:, :, P:]
    x2 = x[:, :, :, K:].reshape(B, N, -1)[:, :, :-P]
    x = x1 + x2
    if gap > 0:
        x = x[:, :, :-gap]
    return x


def dual_dpa_block(x, bp):
    # x: [B, N, K, S]
    B, N, K, S = x.shape
    # intra: attention along K (chunk axis); S sequences per batch item.
    xi = jnp.transpose(x, (0, 3, 2, 1)).reshape(B * S, K, N)
    xi = encoder_gn_res(xi, bp['intra'], batch=B)        # fused enc + GN + residual
    # inter: attention along S (segment axis); K sequences per batch item.
    xo = jnp.transpose(xi.reshape(B, S, K, N), (0, 2, 1, 3)).reshape(B * K, S, N)
    xo = encoder_gn_res(xo, bp['inter'], batch=B)        # fused enc + GN + residual
    return jnp.transpose(xo.reshape(B, K, S, N), (0, 3, 1, 2))    # [B, N, K, S]


def dpa_forward(x, params, *, K, R, C):
    # x: [M, N, D] -> est_mask: [M, C, N, D]
    M, N, D = x.shape
    x = front(x, params['ln_wb'], params['bottleneck_w'])         # GN + 1x1 conv
    x, gap = segment(x, K)                                        # [M, Bch, K, S]
    for r in range(R):
        x = dual_dpa_block(x, params['blocks'][r])
    x = over_add(x, gap)                                          # [M, Bch, D]
    x = mask_conv(x, params['mask_w'], params['prelu_a'])         # PReLU+conv+ReLU
    return x.reshape(M, C, N, D)


# ---------------------------- deterministic params ----------------------------

def init_linear(key, d_in, d_out):
    k1, k2 = jax.random.split(key)
    bound = 1.0 / math.sqrt(d_in)
    # stored already transposed (in, out): y = x @ w_t + b
    w_t = jax.random.uniform(k1, (d_in, d_out), jnp.float32, -bound, bound)
    b = jax.random.uniform(k2, (1, d_out), jnp.float32, -bound, bound)
    return w_t, b


def init_encoder_packed(key, d, dff, gn_w, gn_b):
    ks = jax.random.split(key, 6)
    wq, bq = init_linear(ks[0], d, d)
    wk, bk = init_linear(ks[1], d, d)
    wv, bv = init_linear(ks[2], d, d)
    wo, bo = init_linear(ks[3], d, d)
    w1, b1 = init_linear(ks[4], d, dff)
    w2, b2 = init_linear(ks[5], dff, d)
    ones = jnp.ones((1, d), jnp.float32)
    zeros = jnp.zeros((1, d), jnp.float32)
    # vecs rows: [bq, bk, bv, bo, b2, n1w, n1b, n2w, n2b, gn_w, gn_b]
    vecs = jnp.concatenate([bq, bk, bv, bo, b2, ones, zeros, ones, zeros,
                            gn_w.reshape(1, d), gn_b.reshape(1, d)], axis=0)
    return {'wqkvo': jnp.stack([wq, wk, wv, wo], axis=0),
            'w1': w1, 'b1': b1, 'w2': w2, 'vecs': vecs}


def init_dpa_params(key, N, Bch, H, R, C):
    ks = jax.random.split(key, 2 + R)
    params = {
        'ln_wb': jnp.stack([jnp.ones((N,), jnp.float32),
                            jnp.zeros((N,), jnp.float32)]).reshape(2, N, 1),
        'bottleneck_w': jax.random.uniform(
            ks[0], (Bch, N), jnp.float32, -1 / math.sqrt(N), 1 / math.sqrt(N)),
        'mask_w': jax.random.uniform(
            ks[1], (C * N, Bch), jnp.float32, -1 / math.sqrt(Bch), 1 / math.sqrt(Bch)),
        'prelu_a': jnp.array([0.25], jnp.float32),
        'blocks': [],
    }
    gw = jnp.ones((Bch,), jnp.float32)
    gb = jnp.zeros((Bch,), jnp.float32)
    for r in range(R):
        bkeys = jax.random.split(ks[2 + r], 2)
        params['blocks'].append({
            'intra': init_encoder_packed(bkeys[0], Bch, H, gw, gb),
            'inter': init_encoder_packed(bkeys[1], Bch, H, gw, gb),
        })
    return params


# ---------------------------- main ----------------------------

if __name__ == "__main__":
    # dpa(N=8, B=8, H=16, K=8, R=2, C=2); input x: [M=2, N=8, D=16]
    M, N, D = 2, 8, 16
    Bch, H, K, R, C = 8, 16, 8, 2, 2

    key = jax.random.PRNGKey(0)
    kx, kp = jax.random.split(key)
    x = jax.random.normal(kx, (M, N, D), jnp.float32)
    params = init_dpa_params(kp, N, Bch, H, R, C)

    fwd = jax.jit(functools.partial(dpa_forward, K=K, R=R, C=C))
    out = jax.block_until_ready(fwd(x, params))

    assert out.shape == (M, C, N, D), out.shape
    assert bool(jnp.all(jnp.isfinite(out)))
    print("KERNEL_OK")
</pallas_src>

<mosaic_0001>
module attributes {stable_mosaic.version = 11 : i64} {
  func.func @front_kernel(%arg0: i32, %arg1: memref<1x8x16xf32, #tpu.memory_space<vmem>>, %arg2: memref<2x8x1xf32, #tpu.memory_space<vmem>>, %arg3: memref<8x8xf32, #tpu.memory_space<vmem>>, %arg4: memref<1x8x16xf32, #tpu.memory_space<vmem>>) attributes {dimension_semantics = [#tpu.dimension_semantics<parallel>], iteration_bounds = array<i64: 2>, scalar_prefetch = 0 : i64, scratch_operands = 0 : i64, tpu.core_type = #tpu.core_type<tc>, window_params = [{transform_indices = @transform_0, window_bounds = array<i64: 1, 8, 16>}, {pipeline_mode = #tpu.pipeline_mode<synchronous>, transform_indices = @transform_1, window_bounds = array<i64: 2, 8, 1>}, {pipeline_mode = #tpu.pipeline_mode<synchronous>, transform_indices = @transform_2, window_bounds = array<i64: 8, 8>}, {transform_indices = @transform_3, window_bounds = array<i64: 1, 8, 16>}]} {
    %c0 = arith.constant 0 : index
    %c0_0 = arith.constant 0 : index
    %c0_1 = arith.constant 0 : index
    %0 = vector.load %arg1[%c0, %c0_0, %c0_1] : memref<1x8x16xf32, #tpu.memory_space<vmem>>, vector<1x8x16xf32>
    %1 = vector.shape_cast %0 : vector<1x8x16xf32> to vector<8x16xf32>
    %2 = vector.shape_cast %1 : vector<8x16xf32> to vector<1x8x16xf32>
    %cst = arith.constant dense<0.000000e+00> : vector<1xf32>
    %3 = vector.multi_reduction <add>, %2, %cst [1, 2] : vector<1x8x16xf32> to vector<1xf32>
    %4 = vector.shape_cast %3 : vector<1xf32> to vector<1x1x1xf32>
    %5 = vector.extract %4[0, 0, 0] : f32 from vector<1x1x1xf32>
    %cst_2 = arith.constant 1.280000e+02 : f32
    %6 = arith.divf %5, %cst_2 : f32
    %7 = vector.broadcast %6 : f32 to vector<8x16xf32>
    %8 = arith.subf %1, %7 : vector<8x16xf32>
    %9 = arith.mulf %8, %8 : vector<8x16xf32>
    %10 = vector.shape_cast %9 : vector<8x16xf32> to vector<1x8x16xf32>
    %cst_3 = arith.constant dense<0.000000e+00> : vector<1xf32>
    %11 = vector.multi_reduction <add>, %10, %cst_3 [1, 2] : vector<1x8x16xf32> to vector<1xf32>
    %12 = vector.shape_cast %11 : vector<1xf32> to vector<1x1x1xf32>
    %13 = vector.extract %12[0, 0, 0] : f32 from vector<1x1x1xf32>
    %cst_4 = arith.constant 1.280000e+02 : f32
    %14 = arith.divf %13, %cst_4 : f32
    %15 = vector.broadcast %6 : f32 to vector<8x16xf32>
    %16 = arith.subf %1, %15 : vector<8x16xf32>
    %cst_5 = arith.constant 9.99999993E-9 : f32
    %17 = arith.addf %14, %cst_5 : f32
    %18 = math.rsqrt %17 : f32
    %19 = vector.broadcast %18 : f32 to vector<8x16xf32>
    %20 = arith.mulf %16, %19 : vector<8x16xf32>
    %c0_6 = arith.constant 0 : index
    %c0_7 = arith.constant 0 : index
    %c0_8 = arith.constant 0 : index
    %21 = vector.load %arg2[%c0_6, %c0_7, %c0_8] : memref<2x8x1xf32, #tpu.memory_space<vmem>>, vector<1x8x1xf32>
    %22 = vector.shape_cast %21 : vector<1x8x1xf32> to vector<8x1xf32>
    %23 = vector.broadcast %22 : vector<8x1xf32> to vector<8x16xf32>
    %24 = arith.mulf %20, %23 : vector<8x16xf32>
    %c1 = arith.constant 1 : index
    %c0_9 = arith.constant 0 : index
    %c0_10 = arith.constant 0 : index
    %25 = vector.load %arg2[%c1, %c0_9, %c0_10] : memref<2x8x1xf32, #tpu.memory_space<vmem>>, vector<1x8x1xf32>
    %26 = vector.shape_cast %25 : vector<1x8x1xf32> to vector<8x1xf32>
    %27 = vector.broadcast %26 : vector<8x1xf32> to vector<8x16xf32>
    %28 = arith.addf %24, %27 : vector<8x16xf32>
    %c0_11 = arith.constant 0 : index
    %c0_12 = arith.constant 0 : index
    %29 = vector.load %arg3[%c0_11, %c0_12] : memref<8x8xf32, #tpu.memory_space<vmem>>, vector<8x8xf32>
    %30 = arith.truncf %29 : vector<8x8xf32> to vector<8x8xbf16>
    %31 = arith.truncf %28 : vector<8x16xf32> to vector<8x16xbf16>
    %cst_13 = arith.constant dense<0.000000e+00> : vector<8x16xf32>
    %32 = tpu.matmul %30, %31, %cst_13 {dimension_numbers = #tpu.dot_dimension_numbers<[1], [0], [0], [1], [0, 0, 1, 1], [], []>} : vector<8x8xbf16>, vector<8x16xbf16>, vector<8x16xf32> -> vector<8x16xf32>
    %c0_14 = arith.constant 0 : index
    %c0_15 = arith.constant 0 : index
    %c0_16 = arith.constant 0 : index
    %33 = vector.load %arg4[%c0_14, %c0_15, %c0_16] : memref<1x8x16xf32, #tpu.memory_space<vmem>>, vector<1x8x16xf32>
    %34 = vector.shape_cast %33 : vector<1x8x16xf32> to vector<8x16xf32>
    %35 = vector.shape_cast %32 : vector<8x16xf32> to vector<1x8x16xf32>
    tpu.vector_store %arg4[%c0_14, %c0_15, %c0_16], %35 {strides = array<i32>} : memref<1x8x16xf32, #tpu.memory_space<vmem>>, vector<1x8x16xf32>,
    return
  }
  func.func @transform_0(%arg0: i32) -> (i32, i32, i32) {
    %c0_i32 = arith.constant 0 : i32
    %c0_i32_0 = arith.constant 0 : i32
    %c0_i32_1 = arith.constant 0 : i32
    return %arg0, %c0_i32, %c0_i32_0 : i32, i32, i32
  }
  func.func @transform_1(%arg0: i32) -> (i32, i32, i32) {
    %c0_i32 = arith.constant 0 : i32
    %c0_i32_0 = arith.constant 0 : i32
    %c0_i32_1 = arith.constant 0 : i32
    %c0_i32_2 = arith.constant 0 : i32
    return %c0_i32, %c0_i32_0, %c0_i32_1 : i32, i32, i32
  }
  func.func @transform_2(%arg0: i32) -> (i32, i32) {
    %c0_i32 = arith.constant 0 : i32
    %c0_i32_0 = arith.constant 0 : i32
    %c0_i32_1 = arith.constant 0 : i32
    return %c0_i32, %c0_i32_0 : i32, i32
  }
  func.func @transform_3(%arg0: i32) -> (i32, i32, i32) {
    %c0_i32 = arith.constant 0 : i32
    %c0_i32_0 = arith.constant 0 : i32
    %c0_i32_1 = arith.constant 0 : i32
    return %arg0, %c0_i32, %c0_i32_0 : i32, i32, i32
  }
}

module attributes {stable_mosaic.version = 11 : i64} {
  func.func @enc_gn_res_kernel(%arg0: i32, %arg1: memref<6x8x8xf32, #tpu.memory_space<vmem>>, %arg2: memref<4x8x8xf32, #tpu.memory_space<vmem>>, %arg3: memref<8x16xf32, #tpu.memory_space<vmem>>, %arg4: memref<1x16xf32, #tpu.memory_space<vmem>>, %arg5: memref<16x8xf32, #tpu.memory_space<vmem>>, %arg6: memref<11x8xf32, #tpu.memory_space<vmem>>, %arg7: memref<6x8x8xf32, #tpu.memory_space<vmem>>) attributes {dimension_semantics = [#tpu.dimension_semantics<parallel>], iteration_bounds = array<i64: 2>, scalar_prefetch = 0 : i64, scratch_operands = 0 : i64, tpu.core_type = #tpu.core_type<tc>, window_params = [{transform_indices = @transform_0, window_bounds = array<i64: 6, 8, 8>}, {pipeline_mode = #tpu.pipeline_mode<synchronous>, transform_indices = @transform_1, window_bounds = array<i64: 4, 8, 8>}, {pipeline_mode = #tpu.pipeline_mode<synchronous>, transform_indices = @transform_2, window_bounds = array<i64: 8, 16>}, {pipeline_mode = #tpu.pipeline_mode<synchronous>, transform_indices = @transform_3, window_bounds = array<i64: 1, 16>}, {pipeline_mode = #tpu.pipeline_mode<synchronous>, transform_indices = @transform_4, window_bounds = array<i64: 16, 8>}, {pipeline_mode = #tpu.pipeline_mode<synchronous>, transform_indices = @transform_5, window_bounds = array<i64: 11, 8>}, {transform_indices = @transform_6, window_bounds = array<i64: 6, 8, 8>}]} {
    %c0 = arith.constant 0 : index
    %c0_0 = arith.constant 0 : index
    %c0_1 = arith.constant 0 : index
    %0 = vector.load %arg1[%c0, %c0_0, %c0_1] : memref<6x8x8xf32, #tpu.memory_space<vmem>>, vector<6x8x8xf32>
    %1 = vector.shape_cast %0 : vector<6x8x8xf32> to vector<48x8xf32>
    %2 = arith.truncf %1 : vector<48x8xf32> to vector<48x8xbf16>
    %c0_2 = arith.constant 0 : index
    %c0_3 = arith.constant 0 : index
    %3 = vector.load %arg6[%c0_2, %c0_3] : memref<11x8xf32, #tpu.memory_space<vmem>>, vector<11x8xf32>
    %4 = vector.extract_strided_slice %3 {offsets = [0, 0], sizes = [1, 8], strides = [1, 1]} : vector<11x8xf32> to vector<1x8xf32>
    %5 = vector.extract_strided_slice %3 {offsets = [1, 0], sizes = [1, 8], strides = [1, 1]} : vector<11x8xf32> to vector<1x8xf32>
    %6 = vector.extract_strided_slice %3 {offsets = [2, 0], sizes = [1, 8], strides = [1, 1]} : vector<11x8xf32> to vector<1x8xf32>
    %7 = vector.extract_strided_slice %3 {offsets = [3, 0], sizes = [1, 8], strides = [1, 1]} : vector<11x8xf32> to vector<1x8xf32>
    %8 = vector.extract_strided_slice %3 {offsets = [4, 0], sizes = [1, 8], strides = [1, 1]} : vector<11x8xf32> to vector<1x8xf32>
    %9 = vector.extract_strided_slice %3 {offsets = [5, 0], sizes = [1, 8], strides = [1, 1]} : vector<11x8xf32> to vector<1x8xf32>
    %10 = vector.extract_strided_slice %3 {offsets = [6, 0], sizes = [1, 8], strides = [1, 1]} : vector<11x8xf32> to vector<1x8xf32>
    %11 = vector.extract_strided_slice %3 {offsets = [7, 0], sizes = [1, 8], strides = [1, 1]} : vector<11x8xf32> to vector<1x8xf32>
    %12 = vector.extract_strided_slice %3 {offsets = [8, 0], sizes = [1, 8], strides = [1, 1]} : vector<11x8xf32> to vector<1x8xf32>
    %13 = vector.extract_strided_slice %3 {offsets = [9, 0], sizes = [1, 8], strides = [1, 1]} : vector<11x8xf32> to vector<1x8xf32>
    %14 = vector.extract_strided_slice %3 {offsets = [10, 0], sizes = [1, 8], strides = [1, 1]} : vector<11x8xf32> to vector<1x8xf32>
    %c0_4 = arith.constant 0 : index
    %c0_5 = arith.constant 0 : index
    %c0_6 = arith.constant 0 : index
    %15 = vector.load %arg2[%c0_4, %c0_5, %c0_6] : memref<4x8x8xf32, #tpu.memory_space<vmem>>, vector<1x8x8xf32>
    %16 = vector.shape_cast %15 : vector<1x8x8xf32> to vector<8x8xf32>
    %17 = arith.truncf %16 : vector<8x8xf32> to vector<8x8xbf16>
    %c1 = arith.constant 1 : index
    %c0_7 = arith.constant 0 : index
    %c0_8 = arith.constant 0 : index
    %18 = vector.load %arg2[%c1, %c0_7, %c0_8] : memref<4x8x8xf32, #tpu.memory_space<vmem>>, vector<1x8x8xf32>
    %19 = vector.shape_cast %18 : vector<1x8x8xf32> to vector<8x8xf32>
    %20 = arith.truncf %19 : vector<8x8xf32> to vector<8x8xbf16>
    %c2 = arith.constant 2 : index
    %c0_9 = arith.constant 0 : index
    %c0_10 = arith.constant 0 : index
    %21 = vector.load %arg2[%c2, %c0_9, %c0_10] : memref<4x8x8xf32, #tpu.memory_space<vmem>>, vector<1x8x8xf32>
    %22 = vector.shape_cast %21 : vector<1x8x8xf32> to vector<8x8xf32>
    %23 = arith.truncf %22 : vector<8x8xf32> to vector<8x8xbf16>
    %c3 = arith.constant 3 : index
    %c0_11 = arith.constant 0 : index
    %c0_12 = arith.constant 0 : index
    %24 = vector.load %arg2[%c3, %c0_11, %c0_12] : memref<4x8x8xf32, #tpu.memory_space<vmem>>, vector<1x8x8xf32>
    %25 = vector.shape_cast %24 : vector<1x8x8xf32> to vector<8x8xf32>
    %26 = arith.truncf %25 : vector<8x8xf32> to vector<8x8xbf16>
    %cst = arith.constant dense<0.000000e+00> : vector<48x8xf32>
    %27 = tpu.matmul %2, %17, %cst {dimension_numbers = #tpu.dot_dimension_numbers<[1], [0], [0], [1], [0, 0, 1, 1], [], []>} : vector<48x8xbf16>, vector<8x8xbf16>, vector<48x8xf32> -> vector<48x8xf32>
    %28 = vector.broadcast %4 : vector<1x8xf32> to vector<48x8xf32>
    %29 = arith.addf %27, %28 : vector<48x8xf32>
    %cst_13 = arith.constant dense<0.000000e+00> : vector<48x8xf32>
    %30 = tpu.matmul %2, %20, %cst_13 {dimension_numbers = #tpu.dot_dimension_numbers<[1], [0], [0], [1], [0, 0, 1, 1], [], []>} : vector<48x8xbf16>, vector<8x8xbf16>, vector<48x8xf32> -> vector<48x8xf32>
    %31 = vector.broadcast %5 : vector<1x8xf32> to vector<48x8xf32>
    %32 = arith.addf %30, %31 : vector<48x8xf32>
    %cst_14 = arith.constant dense<0.000000e+00> : vector<48x8xf32>
    %33 = tpu.matmul %2, %23, %cst_14 {dimension_numbers = #tpu.dot_dimension_numbers<[1], [0], [0], [1], [0, 0, 1, 1], [], []>} : vector<48x8xbf16>, vector<8x8xbf16>, vector<48x8xf32> -> vector<48x8xf32>
    %34 = vector.broadcast %6 : vector<1x8xf32> to vector<48x8xf32>
    %35 = arith.addf %33, %34 : vector<48x8xf32>
    %36 = vector.shape_cast %29 : vector<48x8xf32> to vector<6x8x8xf32>
    %37 = arith.truncf %36 : vector<6x8x8xf32> to vector<6x8x8xbf16>
    %38 = vector.shape_cast %32 : vector<48x8xf32> to vector<6x8x8xf32>
    %39 = arith.truncf %38 : vector<6x8x8xf32> to vector<6x8x8xbf16>
    %40 = vector.shape_cast %35 : vector<48x8xf32> to vector<6x8x8xf32>
    %41 = arith.truncf %40 : vector<6x8x8xf32> to vector<6x8x8xbf16>
    "tpu.trace_start"() <{level = 10 : i32, message = "bqd,bkd->bqk"}> : () -> ()
    %cst_15 = arith.constant dense<0.000000e+00> : vector<6x8x8xf32>
    %42 = tpu.matmul %37, %39, %cst_15 {dimension_numbers = #tpu.dot_dimension_numbers<[2], [2], [1], [1], [0, 0, 0, 1, 1, 1], [0], [0]>} : vector<6x8x8xbf16>, vector<6x8x8xbf16>, vector<6x8x8xf32> -> vector<6x8x8xf32>
    "tpu.trace_stop"() : () -> ()
    %cst_16 = arith.constant 0.353553385 : f32
    %43 = vector.broadcast %cst_16 : f32 to vector<6x8x8xf32>
    %44 = arith.mulf %42, %43 : vector<6x8x8xf32>
    %cst_17 = arith.constant dense<0xFF800000> : vector<6x8xf32>
    %45 = vector.multi_reduction <maximumf>, %44, %cst_17 [2] : vector<6x8x8xf32> to vector<6x8xf32>
    %46 = vector.shape_cast %45 : vector<6x8xf32> to vector<6x8x1xf32>
    %47 = vector.broadcast %46 : vector<6x8x1xf32> to vector<6x8x8xf32>
    %48 = arith.subf %44, %47 : vector<6x8x8xf32>
    %49 = math.exp %48 : vector<6x8x8xf32>
    %cst_18 = arith.constant dense<0.000000e+00> : vector<6x8xf32>
    %50 = vector.multi_reduction <add>, %49, %cst_18 [2] : vector<6x8x8xf32> to vector<6x8xf32>
    %51 = vector.shape_cast %50 : vector<6x8xf32> to vector<6x8x1xf32>
    %52 = tpu.reciprocal %51 {approx = true} : vector<6x8x1xf32> -> vector<6x8x1xf32>
    %53 = vector.broadcast %52 : vector<6x8x1xf32> to vector<6x8x8xf32>
    %54 = arith.mulf %49, %53 : vector<6x8x8xf32>
    %55 = arith.truncf %54 : vector<6x8x8xf32> to vector<6x8x8xbf16>
    "tpu.trace_start"() <{level = 10 : i32, message = "bqk,bkd->bqd"}> : () -> ()
    %cst_19 = arith.constant dense<0.000000e+00> : vector<6x8x8xf32>
    %56 = tpu.matmul %55, %41, %cst_19 {dimension_numbers = #tpu.dot_dimension_numbers<[2], [1], [1], [2], [0, 0, 0, 1, 1, 2], [0], [0]>} : vector<6x8x8xbf16>, vector<6x8x8xbf16>, vector<6x8x8xf32> -> vector<6x8x8xf32>
    "tpu.trace_stop"() : () -> ()
    %57 = vector.shape_cast %56 : vector<6x8x8xf32> to vector<48x8xf32>
    %58 = arith.truncf %57 : vector<48x8xf32> to vector<48x8xbf16>
    %cst_20 = arith.constant dense<0.000000e+00> : vector<48x8xf32>
    %59 = tpu.matmul %58, %26, %cst_20 {dimension_numbers = #tpu.dot_dimension_numbers<[1], [0], [0], [1], [0, 0, 1, 1], [], []>} : vector<48x8xbf16>, vector<8x8xbf16>, vector<48x8xf32> -> vector<48x8xf32>
    %60 = vector.broadcast %7 : vector<1x8xf32> to vector<48x8xf32>
    %61 = arith.addf %59, %60 : vector<48x8xf32>
    %62 = arith.addf %1, %61 : vector<48x8xf32>
    %cst_21 = arith.constant dense<0.000000e+00> : vector<48xf32>
    %63 = vector.multi_reduction <add>, %62, %cst_21 [1] : vector<48x8xf32> to vector<48xf32>
    %64 = vector.shape_cast %63 : vector<48xf32> to vector<48x1xf32>
    %cst_22 = arith.constant 8.000000e+00 : f32
    %65 = vector.broadcast %cst_22 : f32 to vector<48x1xf32>
    %66 = arith.divf %64, %65 : vector<48x1xf32>
    %67 = vector.broadcast %66 : vector<48x1xf32> to vector<48x8xf32>
    %68 = arith.subf %62, %67 : vector<48x8xf32>
    %69 = arith.mulf %68, %68 : vector<48x8xf32>
    %cst_23 = arith.constant dense<0.000000e+00> : vector<48xf32>
    %70 = vector.multi_reduction <add>, %69, %cst_23 [1] : vector<48x8xf32> to vector<48xf32>
    %71 = vector.shape_cast %70 : vector<48xf32> to vector<48x1xf32>
    %cst_24 = arith.constant 8.000000e+00 : f32
    %72 = vector.broadcast %cst_24 : f32 to vector<48x1xf32>
    %73 = arith.divf %71, %72 : vector<48x1xf32>
    %74 = vector.broadcast %66 : vector<48x1xf32> to vector<48x8xf32>
    %75 = arith.subf %62, %74 : vector<48x8xf32>
    %cst_25 = arith.constant 9.99999974E-6 : f32
    %76 = vector.broadcast %cst_25 : f32 to vector<48x1xf32>
    %77 = arith.addf %73, %76 : vector<48x1xf32>
    %78 = math.rsqrt %77 : vector<48x1xf32>
    %79 = vector.broadcast %78 : vector<48x1xf32> to vector<48x8xf32>
    %80 = arith.mulf %75, %79 : vector<48x8xf32>
    %81 = vector.broadcast %9 : vector<1x8xf32> to vector<48x8xf32>
    %82 = arith.mulf %80, %81 : vector<48x8xf32>
    %83 = vector.broadcast %10 : vector<1x8xf32> to vector<48x8xf32>
    %84 = arith.addf %82, %83 : vector<48x8xf32>
    %85 = arith.truncf %84 : vector<48x8xf32> to vector<48x8xbf16>
    %c0_26 = arith.constant 0 : index
    %c0_27 = arith.constant 0 : index
    %86 = vector.load %arg3[%c0_26, %c0_27] : memref<8x16xf32, #tpu.memory_space<vmem>>, vector<8x16xf32>
    %87 = arith.truncf %86 : vector<8x16xf32> to vector<8x16xbf16>
    %cst_28 = arith.constant dense<0.000000e+00> : vector<48x16xf32>
    %88 = tpu.matmul %85, %87, %cst_28 {dimension_numbers = #tpu.dot_dimension_numbers<[1], [0], [0], [1], [0, 0, 1, 1], [], []>} : vector<48x8xbf16>, vector<8x16xbf16>, vector<48x16xf32> -> vector<48x16xf32>
    %c0_29 = arith.constant 0 : index
    %c0_30 = arith.constant 0 : index
    %89 = vector.load %arg4[%c0_29, %c0_30] : memref<1x16xf32, #tpu.memory_space<vmem>>, vector<1x16xf32>
    %90 = vector.broadcast %89 : vector<1x16xf32> to vector<48x16xf32>
    %91 = arith.addf %88, %90 : vector<48x16xf32>
    %cst_31 = arith.constant 0.000000e+00 : f32
    %92 = vector.broadcast %cst_31 : f32 to vector<48x16xf32>
    %93 = arith.maximumf %91, %92 : vector<48x16xf32>
    %94 = arith.truncf %93 : vector<48x16xf32> to vector<48x16xbf16>
    %c0_32 = arith.constant 0 : index
    %c0_33 = arith.constant 0 : index
    %95 = vector.load %arg5[%c0_32, %c0_33] : memref<16x8xf32, #tpu.memory_space<vmem>>, vector<16x8xf32>
    %96 = arith.truncf %95 : vector<16x8xf32> to vector<16x8xbf16>
    %cst_34 = arith.constant dense<0.000000e+00> : vector<48x8xf32>
    %97 = tpu.matmul %94, %96, %cst_34 {dimension_numbers = #tpu.dot_dimension_numbers<[1], [0], [0], [1], [0, 0, 1, 1], [], []>} : vector<48x16xbf16>, vector<16x8xbf16>, vector<48x8xf32> -> vector<48x8xf32>
    %98 = vector.broadcast %8 : vector<1x8xf32> to vector<48x8xf32>
    %99 = arith.addf %97, %98 : vector<48x8xf32>
    %100 = arith.addf %84, %99 : vector<48x8xf32>
    %cst_35 = arith.constant dense<0.000000e+00> : vector<48xf32>
    %101 = vector.multi_reduction <add>, %100, %cst_35 [1] : vector<48x8xf32> to vector<48xf32>
    %102 = vector.shape_cast %101 : vector<48xf32> to vector<48x1xf32>
    %cst_36 = arith.constant 8.000000e+00 : f32
    %103 = vector.broadcast %cst_36 : f32 to vector<48x1xf32>
    %104 = arith.divf %102, %103 : vector<48x1xf32>
    %105 = vector.broadcast %104 : vector<48x1xf32> to vector<48x8xf32>
    %106 = arith.subf %100, %105 : vector<48x8xf32>
    %107 = arith.mulf %106, %106 : vector<48x8xf32>
    %cst_37 = arith.constant dense<0.000000e+00> : vector<48xf32>
    %108 = vector.multi_reduction <add>, %107, %cst_37 [1] : vector<48x8xf32> to vector<48xf32>
    %109 = vector.shape_cast %108 : vector<48xf32> to vector<48x1xf32>
    %cst_38 = arith.constant 8.000000e+00 : f32
    %110 = vector.broadcast %cst_38 : f32 to vector<48x1xf32>
    %111 = arith.divf %109, %110 : vector<48x1xf32>
    %112 = vector.broadcast %104 : vector<48x1xf32> to vector<48x8xf32>
    %113 = arith.subf %100, %112 : vector<48x8xf32>
    %cst_39 = arith.constant 9.99999974E-6 : f32
    %114 = vector.broadcast %cst_39 : f32 to vector<48x1xf32>
    %115 = arith.addf %111, %114 : vector<48x1xf32>
    %116 = math.rsqrt %115 : vector<48x1xf32>
    %117 = vector.broadcast %116 : vector<48x1xf32> to vector<48x8xf32>
    %118 = arith.mulf %113, %117 : vector<48x8xf32>
    %119 = vector.broadcast %11 : vector<1x8xf32> to vector<48x8xf32>
    %120 = arith.mulf %118, %119 : vector<48x8xf32>
    %121 = vector.broadcast %12 : vector<1x8xf32> to vector<48x8xf32>
    %122 = arith.addf %120, %121 : vector<48x8xf32>
    %123 = vector.shape_cast %122 : vector<48x8xf32> to vector<1x48x8xf32>
    %cst_40 = arith.constant dense<0.000000e+00> : vector<1xf32>
    %124 = vector.multi_reduction <add>, %123, %cst_40 [1, 2] : vector<1x48x8xf32> to vector<1xf32>
    %125 = vector.shape_cast %124 : vector<1xf32> to vector<1x1x1xf32>
    %126 = vector.extract %125[0, 0, 0] : f32 from vector<1x1x1xf32>
    %cst_41 = arith.constant 3.840000e+02 : f32
    %127 = arith.divf %126, %cst_41 : f32
    %128 = vector.broadcast %127 : f32 to vector<48x8xf32>
    %129 = arith.subf %122, %128 : vector<48x8xf32>
    %130 = arith.mulf %129, %129 : vector<48x8xf32>
    %131 = vector.shape_cast %130 : vector<48x8xf32> to vector<1x48x8xf32>
    %cst_42 = arith.constant dense<0.000000e+00> : vector<1xf32>
    %132 = vector.multi_reduction <add>, %131, %cst_42 [1, 2] : vector<1x48x8xf32> to vector<1xf32>
    %133 = vector.shape_cast %132 : vector<1xf32> to vector<1x1x1xf32>
    %134 = vector.extract %133[0, 0, 0] : f32 from vector<1x1x1xf32>
    %cst_43 = arith.constant 3.840000e+02 : f32
    %135 = arith.divf %134, %cst_43 : f32
    %136 = vector.broadcast %127 : f32 to vector<48x8xf32>
    %137 = arith.subf %122, %136 : vector<48x8xf32>
    %cst_44 = arith.constant 9.99999993E-9 : f32
    %138 = arith.addf %135, %cst_44 : f32
    %139 = math.rsqrt %138 : f32
    %140 = vector.broadcast %139 : f32 to vector<48x8xf32>
    %141 = arith.mulf %137, %140 : vector<48x8xf32>
    %142 = vector.broadcast %13 : vector<1x8xf32> to vector<48x8xf32>
    %143 = arith.mulf %141, %142 : vector<48x8xf32>
    %144 = vector.broadcast %14 : vector<1x8xf32> to vector<48x8xf32>
    %145 = arith.addf %143, %144 : vector<48x8xf32>
    %146 = arith.addf %145, %1 : vector<48x8xf32>
    %147 = vector.shape_cast %146 : vector<48x8xf32> to vector<6x8x8xf32>
    %c0_45 = arith.constant 0 : index
    %c0_46 = arith.constant 0 : index
    %c0_47 = arith.constant 0 : index
    %148 = vector.load %arg7[%c0_45, %c0_46, %c0_47] : memref<6x8x8xf32, #tpu.memory_space<vmem>>, vector<6x8x8xf32>
    tpu.vector_store %arg7[%c0_45, %c0_46, %c0_47], %147 {strides = array<i32>} : memref<6x8x8xf32, #tpu.memory_space<vmem>>, vector<6x8x8xf32>,
    return
  }
  func.func @transform_0(%arg0: i32) -> (i32, i32, i32) {
    %c0_i32 = arith.constant 0 : i32
    %c0_i32_0 = arith.constant 0 : i32
    %c0_i32_1 = arith.constant 0 : i32
    return %arg0, %c0_i32, %c0_i32_0 : i32, i32, i32
  }
  func.func @transform_1(%arg0: i32) -> (i32, i32, i32) {
    %c0_i32 = arith.constant 0 : i32
    %c0_i32_0 = arith.constant 0 : i32
    %c0_i32_1 = arith.constant 0 : i32
    %c0_i32_2 = arith.constant 0 : i32
    return %c0_i32, %c0_i32_0, %c0_i32_1 : i32, i32, i32
  }
  func.func @transform_2(%arg0: i32) -> (i32, i32) {
    %c0_i32 = arith.constant 0 : i32
    %c0_i32_0 = arith.constant 0 : i32
    %c0_i32_1 = arith.constant 0 : i32
    return %c0_i32, %c0_i32_0 : i32, i32
  }
  func.func @transform_3(%arg0: i32) -> (i32, i32) {
    %c0_i32 = arith.constant 0 : i32
    %c0_i32_0 = arith.constant 0 : i32
    %c0_i32_1 = arith.constant 0 : i32
    return %c0_i32, %c0_i32_0 : i32, i32
  }
  func.func @transform_4(%arg0: i32) -> (i32, i32) {
    %c0_i32 = arith.constant 0 : i32
    %c0_i32_0 = arith.constant 0 : i32
    %c0_i32_1 = arith.constant 0 : i32
    return %c0_i32, %c0_i32_0 : i32, i32
  }
  func.func @transform_5(%arg0: i32) -> (i32, i32) {
    %c0_i32 = arith.constant 0 : i32
    %c0_i32_0 = arith.constant 0 : i32
    %c0_i32_1 = arith.constant 0 : i32
    return %c0_i32, %c0_i32_0 : i32, i32
  }
  func.func @transform_6(%arg0: i32) -> (i32, i32, i32) {
    %c0_i32 = arith.constant 0 : i32
    %c0_i32_0 = arith.constant 0 : i32
    %c0_i32_1 = arith.constant 0 : i32
    return %arg0, %c0_i32, %c0_i32_0 : i32, i32, i32
  }
}

module attributes {stable_mosaic.version = 11 : i64} {
  func.func @enc_gn_res_kernel(%arg0: i32, %arg1: memref<8x6x8xf32, #tpu.memory_space<vmem>>, %arg2: memref<4x8x8xf32, #tpu.memory_space<vmem>>, %arg3: memref<8x16xf32, #tpu.memory_space<vmem>>, %arg4: memref<1x16xf32, #tpu.memory_space<vmem>>, %arg5: memref<16x8xf32, #tpu.memory_space<vmem>>, %arg6: memref<11x8xf32, #tpu.memory_space<vmem>>, %arg7: memref<8x6x8xf32, #tpu.memory_space<vmem>>) attributes {dimension_semantics = [#tpu.dimension_semantics<parallel>], iteration_bounds = array<i64: 2>, scalar_prefetch = 0 : i64, scratch_operands = 0 : i64, tpu.core_type = #tpu.core_type<tc>, window_params = [{transform_indices = @transform_0, window_bounds = array<i64: 8, 6, 8>}, {pipeline_mode = #tpu.pipeline_mode<synchronous>, transform_indices = @transform_1, window_bounds = array<i64: 4, 8, 8>}, {pipeline_mode = #tpu.pipeline_mode<synchronous>, transform_indices = @transform_2, window_bounds = array<i64: 8, 16>}, {pipeline_mode = #tpu.pipeline_mode<synchronous>, transform_indices = @transform_3, window_bounds = array<i64: 1, 16>}, {pipeline_mode = #tpu.pipeline_mode<synchronous>, transform_indices = @transform_4, window_bounds = array<i64: 16, 8>}, {pipeline_mode = #tpu.pipeline_mode<synchronous>, transform_indices = @transform_5, window_bounds = array<i64: 11, 8>}, {transform_indices = @transform_6, window_bounds = array<i64: 8, 6, 8>}]} {
    %c0 = arith.constant 0 : index
    %c0_0 = arith.constant 0 : index
    %c0_1 = arith.constant 0 : index
    %0 = vector.load %arg1[%c0, %c0_0, %c0_1] : memref<8x6x8xf32, #tpu.memory_space<vmem>>, vector<8x6x8xf32>
    %1 = vector.shape_cast %0 : vector<8x6x8xf32> to vector<48x8xf32>
    %2 = arith.truncf %1 : vector<48x8xf32> to vector<48x8xbf16>
    %c0_2 = arith.constant 0 : index
    %c0_3 = arith.constant 0 : index
    %3 = vector.load %arg6[%c0_2, %c0_3] : memref<11x8xf32, #tpu.memory_space<vmem>>, vector<11x8xf32>
    %4 = vector.extract_strided_slice %3 {offsets = [0, 0], sizes = [1, 8], strides = [1, 1]} : vector<11x8xf32> to vector<1x8xf32>
    %5 = vector.extract_strided_slice %3 {offsets = [1, 0], sizes = [1, 8], strides = [1, 1]} : vector<11x8xf32> to vector<1x8xf32>
    %6 = vector.extract_strided_slice %3 {offsets = [2, 0], sizes = [1, 8], strides = [1, 1]} : vector<11x8xf32> to vector<1x8xf32>
    %7 = vector.extract_strided_slice %3 {offsets = [3, 0], sizes = [1, 8], strides = [1, 1]} : vector<11x8xf32> to vector<1x8xf32>
    %8 = vector.extract_strided_slice %3 {offsets = [4, 0], sizes = [1, 8], strides = [1, 1]} : vector<11x8xf32> to vector<1x8xf32>
    %9 = vector.extract_strided_slice %3 {offsets = [5, 0], sizes = [1, 8], strides = [1, 1]} : vector<11x8xf32> to vector<1x8xf32>
    %10 = vector.extract_strided_slice %3 {offsets = [6, 0], sizes = [1, 8], strides = [1, 1]} : vector<11x8xf32> to vector<1x8xf32>
    %11 = vector.extract_strided_slice %3 {offsets = [7, 0], sizes = [1, 8], strides = [1, 1]} : vector<11x8xf32> to vector<1x8xf32>
    %12 = vector.extract_strided_slice %3 {offsets = [8, 0], sizes = [1, 8], strides = [1, 1]} : vector<11x8xf32> to vector<1x8xf32>
    %13 = vector.extract_strided_slice %3 {offsets = [9, 0], sizes = [1, 8], strides = [1, 1]} : vector<11x8xf32> to vector<1x8xf32>
    %14 = vector.extract_strided_slice %3 {offsets = [10, 0], sizes = [1, 8], strides = [1, 1]} : vector<11x8xf32> to vector<1x8xf32>
    %c0_4 = arith.constant 0 : index
    %c0_5 = arith.constant 0 : index
    %c0_6 = arith.constant 0 : index
    %15 = vector.load %arg2[%c0_4, %c0_5, %c0_6] : memref<4x8x8xf32, #tpu.memory_space<vmem>>, vector<1x8x8xf32>
    %16 = vector.shape_cast %15 : vector<1x8x8xf32> to vector<8x8xf32>
    %17 = arith.truncf %16 : vector<8x8xf32> to vector<8x8xbf16>
    %c1 = arith.constant 1 : index
    %c0_7 = arith.constant 0 : index
    %c0_8 = arith.constant 0 : index
    %18 = vector.load %arg2[%c1, %c0_7, %c0_8] : memref<4x8x8xf32, #tpu.memory_space<vmem>>, vector<1x8x8xf32>
    %19 = vector.shape_cast %18 : vector<1x8x8xf32> to vector<8x8xf32>
    %20 = arith.truncf %19 : vector<8x8xf32> to vector<8x8xbf16>
    %c2 = arith.constant 2 : index
    %c0_9 = arith.constant 0 : index
    %c0_10 = arith.constant 0 : index
    %21 = vector.load %arg2[%c2, %c0_9, %c0_10] : memref<4x8x8xf32, #tpu.memory_space<vmem>>, vector<1x8x8xf32>
    %22 = vector.shape_cast %21 : vector<1x8x8xf32> to vector<8x8xf32>
    %23 = arith.truncf %22 : vector<8x8xf32> to vector<8x8xbf16>
    %c3 = arith.constant 3 : index
    %c0_11 = arith.constant 0 : index
    %c0_12 = arith.constant 0 : index
    %24 = vector.load %arg2[%c3, %c0_11, %c0_12] : memref<4x8x8xf32, #tpu.memory_space<vmem>>, vector<1x8x8xf32>
    %25 = vector.shape_cast %24 : vector<1x8x8xf32> to vector<8x8xf32>
    %26 = arith.truncf %25 : vector<8x8xf32> to vector<8x8xbf16>
    %cst = arith.constant dense<0.000000e+00> : vector<48x8xf32>
    %27 = tpu.matmul %2, %17, %cst {dimension_numbers = #tpu.dot_dimension_numbers<[1], [0], [0], [1], [0, 0, 1, 1], [], []>} : vector<48x8xbf16>, vector<8x8xbf16>, vector<48x8xf32> -> vector<48x8xf32>
    %28 = vector.broadcast %4 : vector<1x8xf32> to vector<48x8xf32>
    %29 = arith.addf %27, %28 : vector<48x8xf32>
    %cst_13 = arith.constant dense<0.000000e+00> : vector<48x8xf32>
    %30 = tpu.matmul %2, %20, %cst_13 {dimension_numbers = #tpu.dot_dimension_numbers<[1], [0], [0], [1], [0, 0, 1, 1], [], []>} : vector<48x8xbf16>, vector<8x8xbf16>, vector<48x8xf32> -> vector<48x8xf32>
    %31 = vector.broadcast %5 : vector<1x8xf32> to vector<48x8xf32>
    %32 = arith.addf %30, %31 : vector<48x8xf32>
    %cst_14 = arith.constant dense<0.000000e+00> : vector<48x8xf32>
    %33 = tpu.matmul %2, %23, %cst_14 {dimension_numbers = #tpu.dot_dimension_numbers<[1], [0], [0], [1], [0, 0, 1, 1], [], []>} : vector<48x8xbf16>, vector<8x8xbf16>, vector<48x8xf32> -> vector<48x8xf32>
    %34 = vector.broadcast %6 : vector<1x8xf32> to vector<48x8xf32>
    %35 = arith.addf %33, %34 : vector<48x8xf32>
    %36 = vector.shape_cast %29 : vector<48x8xf32> to vector<8x6x8xf32>
    %37 = arith.truncf %36 : vector<8x6x8xf32> to vector<8x6x8xbf16>
    %38 = vector.shape_cast %32 : vector<48x8xf32> to vector<8x6x8xf32>
    %39 = arith.truncf %38 : vector<8x6x8xf32> to vector<8x6x8xbf16>
    %40 = vector.shape_cast %35 : vector<48x8xf32> to vector<8x6x8xf32>
    %41 = arith.truncf %40 : vector<8x6x8xf32> to vector<8x6x8xbf16>
    "tpu.trace_start"() <{level = 10 : i32, message = "bqd,bkd->bqk"}> : () -> ()
    %cst_15 = arith.constant dense<0.000000e+00> : vector<8x6x6xf32>
    %42 = tpu.matmul %37, %39, %cst_15 {dimension_numbers = #tpu.dot_dimension_numbers<[2], [2], [1], [1], [0, 0, 0, 1, 1, 1], [0], [0]>} : vector<8x6x8xbf16>, vector<8x6x8xbf16>, vector<8x6x6xf32> -> vector<8x6x6xf32>
    "tpu.trace_stop"() : () -> ()
    %cst_16 = arith.constant 0.353553385 : f32
    %43 = vector.broadcast %cst_16 : f32 to vector<8x6x6xf32>
    %44 = arith.mulf %42, %43 : vector<8x6x6xf32>
    %cst_17 = arith.constant dense<0xFF800000> : vector<8x6xf32>
    %45 = vector.multi_reduction <maximumf>, %44, %cst_17 [2] : vector<8x6x6xf32> to vector<8x6xf32>
    %46 = vector.shape_cast %45 : vector<8x6xf32> to vector<8x6x1xf32>
    %47 = vector.broadcast %46 : vector<8x6x1xf32> to vector<8x6x6xf32>
    %48 = arith.subf %44, %47 : vector<8x6x6xf32>
    %49 = math.exp %48 : vector<8x6x6xf32>
    %cst_18 = arith.constant dense<0.000000e+00> : vector<8x6xf32>
    %50 = vector.multi_reduction <add>, %49, %cst_18 [2] : vector<8x6x6xf32> to vector<8x6xf32>
    %51 = vector.shape_cast %50 : vector<8x6xf32> to vector<8x6x1xf32>
    %52 = tpu.reciprocal %51 {approx = true} : vector<8x6x1xf32> -> vector<8x6x1xf32>
    %53 = vector.broadcast %52 : vector<8x6x1xf32> to vector<8x6x6xf32>
    %54 = arith.mulf %49, %53 : vector<8x6x6xf32>
    %55 = arith.truncf %54 : vector<8x6x6xf32> to vector<8x6x6xbf16>
    "tpu.trace_start"() <{level = 10 : i32, message = "bqk,bkd->bqd"}> : () -> ()
    %cst_19 = arith.constant dense<0.000000e+00> : vector<8x6x8xf32>
    %56 = tpu.matmul %55, %41, %cst_19 {dimension_numbers = #tpu.dot_dimension_numbers<[2], [1], [1], [2], [0, 0, 0, 1, 1, 2], [0], [0]>} : vector<8x6x6xbf16>, vector<8x6x8xbf16>, vector<8x6x8xf32> -> vector<8x6x8xf32>
    "tpu.trace_stop"() : () -> ()
    %57 = vector.shape_cast %56 : vector<8x6x8xf32> to vector<48x8xf32>
    %58 = arith.truncf %57 : vector<48x8xf32> to vector<48x8xbf16>
    %cst_20 = arith.constant dense<0.000000e+00> : vector<48x8xf32>
    %59 = tpu.matmul %58, %26, %cst_20 {dimension_numbers = #tpu.dot_dimension_numbers<[1], [0], [0], [1], [0, 0, 1, 1], [], []>} : vector<48x8xbf16>, vector<8x8xbf16>, vector<48x8xf32> -> vector<48x8xf32>
    %60 = vector.broadcast %7 : vector<1x8xf32> to vector<48x8xf32>
    %61 = arith.addf %59, %60 : vector<48x8xf32>
    %62 = arith.addf %1, %61 : vector<48x8xf32>
    %cst_21 = arith.constant dense<0.000000e+00> : vector<48xf32>
    %63 = vector.multi_reduction <add>, %62, %cst_21 [1] : vector<48x8xf32> to vector<48xf32>
    %64 = vector.shape_cast %63 : vector<48xf32> to vector<48x1xf32>
    %cst_22 = arith.constant 8.000000e+00 : f32
    %65 = vector.broadcast %cst_22 : f32 to vector<48x1xf32>
    %66 = arith.divf %64, %65 : vector<48x1xf32>
    %67 = vector.broadcast %66 : vector<48x1xf32> to vector<48x8xf32>
    %68 = arith.subf %62, %67 : vector<48x8xf32>
    %69 = arith.mulf %68, %68 : vector<48x8xf32>
    %cst_23 = arith.constant dense<0.000000e+00> : vector<48xf32>
    %70 = vector.multi_reduction <add>, %69, %cst_23 [1] : vector<48x8xf32> to vector<48xf32>
    %71 = vector.shape_cast %70 : vector<48xf32> to vector<48x1xf32>
    %cst_24 = arith.constant 8.000000e+00 : f32
    %72 = vector.broadcast %cst_24 : f32 to vector<48x1xf32>
    %73 = arith.divf %71, %72 : vector<48x1xf32>
    %74 = vector.broadcast %66 : vector<48x1xf32> to vector<48x8xf32>
    %75 = arith.subf %62, %74 : vector<48x8xf32>
    %cst_25 = arith.constant 9.99999974E-6 : f32
    %76 = vector.broadcast %cst_25 : f32 to vector<48x1xf32>
    %77 = arith.addf %73, %76 : vector<48x1xf32>
    %78 = math.rsqrt %77 : vector<48x1xf32>
    %79 = vector.broadcast %78 : vector<48x1xf32> to vector<48x8xf32>
    %80 = arith.mulf %75, %79 : vector<48x8xf32>
    %81 = vector.broadcast %9 : vector<1x8xf32> to vector<48x8xf32>
    %82 = arith.mulf %80, %81 : vector<48x8xf32>
    %83 = vector.broadcast %10 : vector<1x8xf32> to vector<48x8xf32>
    %84 = arith.addf %82, %83 : vector<48x8xf32>
    %85 = arith.truncf %84 : vector<48x8xf32> to vector<48x8xbf16>
    %c0_26 = arith.constant 0 : index
    %c0_27 = arith.constant 0 : index
    %86 = vector.load %arg3[%c0_26, %c0_27] : memref<8x16xf32, #tpu.memory_space<vmem>>, vector<8x16xf32>
    %87 = arith.truncf %86 : vector<8x16xf32> to vector<8x16xbf16>
    %cst_28 = arith.constant dense<0.000000e+00> : vector<48x16xf32>
    %88 = tpu.matmul %85, %87, %cst_28 {dimension_numbers = #tpu.dot_dimension_numbers<[1], [0], [0], [1], [0, 0, 1, 1], [], []>} : vector<48x8xbf16>, vector<8x16xbf16>, vector<48x16xf32> -> vector<48x16xf32>
    %c0_29 = arith.constant 0 : index
    %c0_30 = arith.constant 0 : index
    %89 = vector.load %arg4[%c0_29, %c0_30] : memref<1x16xf32, #tpu.memory_space<vmem>>, vector<1x16xf32>
    %90 = vector.broadcast %89 : vector<1x16xf32> to vector<48x16xf32>
    %91 = arith.addf %88, %90 : vector<48x16xf32>
    %cst_31 = arith.constant 0.000000e+00 : f32
    %92 = vector.broadcast %cst_31 : f32 to vector<48x16xf32>
    %93 = arith.maximumf %91, %92 : vector<48x16xf32>
    %94 = arith.truncf %93 : vector<48x16xf32> to vector<48x16xbf16>
    %c0_32 = arith.constant 0 : index
    %c0_33 = arith.constant 0 : index
    %95 = vector.load %arg5[%c0_32, %c0_33] : memref<16x8xf32, #tpu.memory_space<vmem>>, vector<16x8xf32>
    %96 = arith.truncf %95 : vector<16x8xf32> to vector<16x8xbf16>
    %cst_34 = arith.constant dense<0.000000e+00> : vector<48x8xf32>
    %97 = tpu.matmul %94, %96, %cst_34 {dimension_numbers = #tpu.dot_dimension_numbers<[1], [0], [0], [1], [0, 0, 1, 1], [], []>} : vector<48x16xbf16>, vector<16x8xbf16>, vector<48x8xf32> -> vector<48x8xf32>
    %98 = vector.broadcast %8 : vector<1x8xf32> to vector<48x8xf32>
    %99 = arith.addf %97, %98 : vector<48x8xf32>
    %100 = arith.addf %84, %99 : vector<48x8xf32>
    %cst_35 = arith.constant dense<0.000000e+00> : vector<48xf32>
    %101 = vector.multi_reduction <add>, %100, %cst_35 [1] : vector<48x8xf32> to vector<48xf32>
    %102 = vector.shape_cast %101 : vector<48xf32> to vector<48x1xf32>
    %cst_36 = arith.constant 8.000000e+00 : f32
    %103 = vector.broadcast %cst_36 : f32 to vector<48x1xf32>
    %104 = arith.divf %102, %103 : vector<48x1xf32>
    %105 = vector.broadcast %104 : vector<48x1xf32> to vector<48x8xf32>
    %106 = arith.subf %100, %105 : vector<48x8xf32>
    %107 = arith.mulf %106, %106 : vector<48x8xf32>
    %cst_37 = arith.constant dense<0.000000e+00> : vector<48xf32>
    %108 = vector.multi_reduction <add>, %107, %cst_37 [1] : vector<48x8xf32> to vector<48xf32>
    %109 = vector.shape_cast %108 : vector<48xf32> to vector<48x1xf32>
    %cst_38 = arith.constant 8.000000e+00 : f32
    %110 = vector.broadcast %cst_38 : f32 to vector<48x1xf32>
    %111 = arith.divf %109, %110 : vector<48x1xf32>
    %112 = vector.broadcast %104 : vector<48x1xf32> to vector<48x8xf32>
    %113 = arith.subf %100, %112 : vector<48x8xf32>
    %cst_39 = arith.constant 9.99999974E-6 : f32
    %114 = vector.broadcast %cst_39 : f32 to vector<48x1xf32>
    %115 = arith.addf %111, %114 : vector<48x1xf32>
    %116 = math.rsqrt %115 : vector<48x1xf32>
    %117 = vector.broadcast %116 : vector<48x1xf32> to vector<48x8xf32>
    %118 = arith.mulf %113, %117 : vector<48x8xf32>
    %119 = vector.broadcast %11 : vector<1x8xf32> to vector<48x8xf32>
    %120 = arith.mulf %118, %119 : vector<48x8xf32>
    %121 = vector.broadcast %12 : vector<1x8xf32> to vector<48x8xf32>
    %122 = arith.addf %120, %121 : vector<48x8xf32>
    %123 = vector.shape_cast %122 : vector<48x8xf32> to vector<1x48x8xf32>
    %cst_40 = arith.constant dense<0.000000e+00> : vector<1xf32>
    %124 = vector.multi_reduction <add>, %123, %cst_40 [1, 2] : vector<1x48x8xf32> to vector<1xf32>
    %125 = vector.shape_cast %124 : vector<1xf32> to vector<1x1x1xf32>
    %126 = vector.extract %125[0, 0, 0] : f32 from vector<1x1x1xf32>
    %cst_41 = arith.constant 3.840000e+02 : f32
    %127 = arith.divf %126, %cst_41 : f32
    %128 = vector.broadcast %127 : f32 to vector<48x8xf32>
    %129 = arith.subf %122, %128 : vector<48x8xf32>
    %130 = arith.mulf %129, %129 : vector<48x8xf32>
    %131 = vector.shape_cast %130 : vector<48x8xf32> to vector<1x48x8xf32>
    %cst_42 = arith.constant dense<0.000000e+00> : vector<1xf32>
    %132 = vector.multi_reduction <add>, %131, %cst_42 [1, 2] : vector<1x48x8xf32> to vector<1xf32>
    %133 = vector.shape_cast %132 : vector<1xf32> to vector<1x1x1xf32>
    %134 = vector.extract %133[0, 0, 0] : f32 from vector<1x1x1xf32>
    %cst_43 = arith.constant 3.840000e+02 : f32
    %135 = arith.divf %134, %cst_43 : f32
    %136 = vector.broadcast %127 : f32 to vector<48x8xf32>
    %137 = arith.subf %122, %136 : vector<48x8xf32>
    %cst_44 = arith.constant 9.99999993E-9 : f32
    %138 = arith.addf %135, %cst_44 : f32
    %139 = math.rsqrt %138 : f32
    %140 = vector.broadcast %139 : f32 to vector<48x8xf32>
    %141 = arith.mulf %137, %140 : vector<48x8xf32>
    %142 = vector.broadcast %13 : vector<1x8xf32> to vector<48x8xf32>
    %143 = arith.mulf %141, %142 : vector<48x8xf32>
    %144 = vector.broadcast %14 : vector<1x8xf32> to vector<48x8xf32>
    %145 = arith.addf %143, %144 : vector<48x8xf32>
    %146 = arith.addf %145, %1 : vector<48x8xf32>
    %147 = vector.shape_cast %146 : vector<48x8xf32> to vector<8x6x8xf32>
    %c0_45 = arith.constant 0 : index
    %c0_46 = arith.constant 0 : index
    %c0_47 = arith.constant 0 : index
    %148 = vector.load %arg7[%c0_45, %c0_46, %c0_47] : memref<8x6x8xf32, #tpu.memory_space<vmem>>, vector<8x6x8xf32>
    tpu.vector_store %arg7[%c0_45, %c0_46, %c0_47], %147 {strides = array<i32>} : memref<8x6x8xf32, #tpu.memory_space<vmem>>, vector<8x6x8xf32>,
    return
  }
  func.func @transform_0(%arg0: i32) -> (i32, i32, i32) {
    %c0_i32 = arith.constant 0 : i32
    %c0_i32_0 = arith.constant 0 : i32
    %c0_i32_1 = arith.constant 0 : i32
    return %arg0, %c0_i32, %c0_i32_0 : i32, i32, i32
  }
  func.func @transform_1(%arg0: i32) -> (i32, i32, i32) {
    %c0_i32 = arith.constant 0 : i32
    %c0_i32_0 = arith.constant 0 : i32
    %c0_i32_1 = arith.constant 0 : i32
    %c0_i32_2 = arith.constant 0 : i32
    return %c0_i32, %c0_i32_0, %c0_i32_1 : i32, i32, i32
  }
  func.func @transform_2(%arg0: i32) -> (i32, i32) {
    %c0_i32 = arith.constant 0 : i32
    %c0_i32_0 = arith.constant 0 : i32
    %c0_i32_1 = arith.constant 0 : i32
    return %c0_i32, %c0_i32_0 : i32, i32
  }
  func.func @transform_3(%arg0: i32) -> (i32, i32) {
    %c0_i32 = arith.constant 0 : i32
    %c0_i32_0 = arith.constant 0 : i32
    %c0_i32_1 = arith.constant 0 : i32
    return %c0_i32, %c0_i32_0 : i32, i32
  }
  func.func @transform_4(%arg0: i32) -> (i32, i32) {
    %c0_i32 = arith.constant 0 : i32
    %c0_i32_0 = arith.constant 0 : i32
    %c0_i32_1 = arith.constant 0 : i32
    return %c0_i32, %c0_i32_0 : i32, i32
  }
  func.func @transform_5(%arg0: i32) -> (i32, i32) {
    %c0_i32 = arith.constant 0 : i32
    %c0_i32_0 = arith.constant 0 : i32
    %c0_i32_1 = arith.constant 0 : i32
    return %c0_i32, %c0_i32_0 : i32, i32
  }
  func.func @transform_6(%arg0: i32) -> (i32, i32, i32) {
    %c0_i32 = arith.constant 0 : i32
    %c0_i32_0 = arith.constant 0 : i32
    %c0_i32_1 = arith.constant 0 : i32
    return %arg0, %c0_i32, %c0_i32_0 : i32, i32, i32
  }
}

module attributes {stable_mosaic.version = 11 : i64} {
  func.func @mask_kernel(%arg0: i32, %arg1: memref<1x8x16xf32, #tpu.memory_space<vmem>>, %arg2: memref<16x8xf32, #tpu.memory_space<vmem>>, %arg3: memref<1xf32, #tpu.memory_space<smem>>, %arg4: memref<1x16x16xf32, #tpu.memory_space<vmem>>) attributes {dimension_semantics = [#tpu.dimension_semantics<parallel>], iteration_bounds = array<i64: 2>, scalar_prefetch = 0 : i64, scratch_operands = 0 : i64, tpu.core_type = #tpu.core_type<tc>, window_params = [{transform_indices = @transform_0, window_bounds = array<i64: 1, 8, 16>}, {pipeline_mode = #tpu.pipeline_mode<synchronous>, transform_indices = @transform_1, window_bounds = array<i64: 16, 8>}, {transform_indices = @transform_2, window_bounds = array<i64: 1>}, {transform_indices = @transform_3, window_bounds = array<i64: 1, 16, 16>}]} {
    %c0 = arith.constant 0 : index
    %c0_0 = arith.constant 0 : index
    %c0_1 = arith.constant 0 : index
    %0 = vector.load %arg1[%c0, %c0_0, %c0_1] : memref<1x8x16xf32, #tpu.memory_space<vmem>>, vector<1x8x16xf32>
    %1 = vector.shape_cast %0 : vector<1x8x16xf32> to vector<8x16xf32>
    %c0_2 = arith.constant 0 : index
    %2 = memref.load %arg3[%c0_2] : memref<1xf32, #tpu.memory_space<smem>>
    %cst = arith.constant 0.000000e+00 : f32
    %3 = vector.broadcast %cst : f32 to vector<8x16xf32>
    %4 = arith.cmpf ogt, %1, %3 : vector<8x16xf32>
    %5 = vector.broadcast %2 : f32 to vector<8x16xf32>
    %6 = arith.mulf %5, %1 : vector<8x16xf32>
    %7 = arith.select %4, %1, %6 : vector<8x16xi1>, vector<8x16xf32>
    %c0_3 = arith.constant 0 : index
    %c0_4 = arith.constant 0 : index
    %8 = vector.load %arg2[%c0_3, %c0_4] : memref<16x8xf32, #tpu.memory_space<vmem>>, vector<16x8xf32>
    %9 = arith.truncf %8 : vector<16x8xf32> to vector<16x8xbf16>
    %10 = arith.truncf %7 : vector<8x16xf32> to vector<8x16xbf16>
    %cst_5 = arith.constant dense<0.000000e+00> : vector<16x16xf32>
    %11 = tpu.matmul %9, %10, %cst_5 {dimension_numbers = #tpu.dot_dimension_numbers<[1], [0], [0], [1], [0, 0, 1, 1], [], []>} : vector<16x8xbf16>, vector<8x16xbf16>, vector<16x16xf32> -> vector<16x16xf32>
    %cst_6 = arith.constant 0.000000e+00 : f32
    %12 = vector.broadcast %cst_6 : f32 to vector<16x16xf32>
    %13 = arith.maximumf %11, %12 : vector<16x16xf32>
    %c0_7 = arith.constant 0 : index
    %c0_8 = arith.constant 0 : index
    %c0_9 = arith.constant 0 : index
    %14 = vector.load %arg4[%c0_7, %c0_8, %c0_9] : memref<1x16x16xf32, #tpu.memory_space<vmem>>, vector<1x16x16xf32>
    %15 = vector.shape_cast %14 : vector<1x16x16xf32> to vector<16x16xf32>
    %16 = vector.shape_cast %13 : vector<16x16xf32> to vector<1x16x16xf32>
    tpu.vector_store %arg4[%c0_7, %c0_8, %c0_9], %16 {strides = array<i32>} : memref<1x16x16xf32, #tpu.memory_space<vmem>>, vector<1x16x16xf32>,
    return
  }
  func.func @transform_0(%arg0: i32) -> (i32, i32, i32) {
    %c0_i32 = arith.constant 0 : i32
    %c0_i32_0 = arith.constant 0 : i32
    %c0_i32_1 = arith.constant 0 : i32
    return %arg0, %c0_i32, %c0_i32_0 : i32, i32, i32
  }
  func.func @transform_1(%arg0: i32) -> (i32, i32) {
    %c0_i32 = arith.constant 0 : i32
    %c0_i32_0 = arith.constant 0 : i32
    %c0_i32_1 = arith.constant 0 : i32
    return %c0_i32, %c0_i32_0 : i32, i32
  }
  func.func @transform_2(%arg0: i32) -> i32 {
    %c0_i32 = arith.constant 0 : i32
    %c0_i32_0 = arith.constant 0 : i32
    return %c0_i32 : i32
  }
  func.func @transform_3(%arg0: i32) -> (i32, i32, i32) {
    %c0_i32 = arith.constant 0 : i32
    %c0_i32_0 = arith.constant 0 : i32
    %c0_i32_1 = arith.constant 0 : i32
    return %arg0, %c0_i32, %c0_i32_0 : i32, i32, i32
  }
}

</mosaic_0001>

<bundles_post_ra>
// kernel: dpa_forward.6
= control target key start
LH: loop header
LB: loop body
LE: loop exit
PB: predicated region body
PF: predicated region fallthrough
CT: control target
= control target key end

     0   :  { %s383_s12 = smov 0   ;;  %s419_s0 = inlined_call_operand.vmem [shape: f32[2,8,16], index: 0, kind: input, shape index: {}]   ;;  %s420_s1 = inlined_call_operand.vmem [shape: f32[2,8,1], index: 1, kind: input, shape index: {}]   ;;  %s421_s2 = inlined_call_operand.vmem [shape: f32[8,8], index: 2, kind: input, shape index: {}]   ;;  %s422_s3 = inlined_call_operand.vmem [shape: f32[2,8,16], index: 3, kind: output, shape index: {}]  }
   0x1 LB: > { %s318_s13 = sadd.s32 4294967295, %s359_s12   ;;  %p322_p0 = scmp.ge.s32.totalorder %s359_s12, 1  ;;  %s359_s12 = sphi %s383_s12, %s13_s12  }
   0x2   : > { %p136_p1 = scmp.lt.s32.totalorder %s359_s12, 3 }
   0x4   : > { %p137_p2 = pnand %p322_p0, %p136_p1 }
   0x5   : > { %p158_p3 = scmp.lt.s32.totalorder (!%p137_p2), %s318_s13, 1 }
   0x6   : > { %140 = sbr.rel (%p137_p2) target bundleno = 601 (0x259), region = 32 }
   0xb   : > { %s424_s13 = smov (!%p158_p3, %s318_s13), 1  ;;  %vm168_vm0 = vcmask 130048   ;;  %v361_v2 = vmov 128.0   ;;  %v225_v20 = vld [vmem:[%s420_s1] sm:$0xff]  ;;  %v362_v21 = vmov 0   ;;  %v325_v22 = vld [vmem:[%s420_s1 + $0x8] sm:$0xff] }
   0xc   : > { %s323_s14 = sshll.u32 %s424_s13, 3  ;;  %349 = vrcp.f32 %v361_v2  ;;  %347 = vset.pattern.permute.xlu1 %v362_v21  ;;  %348 = vset.pattern.permute.xlu0 %v362_v21  ;;  %vm247_vm5 = vcmask 1043456   ;;  %v240_v44 = vld [vmem:[%s421_s2] sm:$0xff]  ;;  %vm243_vm6 = vcmask 64512  }
   0xd   : > { %s161_s17 = scalar_lea.vmem %s419_s0, %s323_s14  ;;  %228 = vperm.xlu1 %347, %v225_v20   ;;  %v241_v47 = vpack.c.bf16 %v240_v44, %v240_v44  ;;  %s165_s6 = scalar_lea.vmem %s422_s3, %s323_s14 }
   0xe   : > { %v167_v0 = vld [vmem:[%s161_s17] sm:$0xff] }
   0xf   : > { %v169_v1 = vsel %vm168_vm0, %v167_v0, 0.0 }
  0x10   : > { %170 = vadd.xlane.f32.xlu0 %v169_v1 }
  0x12   : > { %v350_v3 = vpop.eup %349 }
  0x13   : > { %v180_v4 = vmul.f32 128.0, %v350_v3  ;;  %vm184_vm1 = vweird.f32 %v350_v3 }
  0x15   : > { %v181_v5 = vsub.f32 1.0, %v180_v4  ;;  %236 = vperm.xlu1 %347, %v325_v22  }
  0x17   : > { %v182_v9 = vmul.f32 %v350_v3, %v181_v5 }
  0x19   : > { %v183_v12 = vadd.f32 %v350_v3, %v182_v9 }
  0x1b   : > { %v185_v15 = vsel %vm184_vm1, %v350_v3, %v183_v12 }
  0x7f   : > { %v229_v38 = vpop.permute.xlu1 %228 }
  0x83   : > { %v171_v6 = vpop.xlane.xlu0 %170 }
  0x84   : > { %v172_v7 = vrot.slane %v171_v6, 4 }
  0x86   : > { %v173_v8 = vadd.f32 %v172_v7, %v171_v6 }
  0x87   : > { %v237_v42 = vpop.permute.xlu1 %236 }
  0x88   : > { %v174_v10 = vrot.slane %v173_v8, 2 }
  0x8a   : > { %v175_v11 = vadd.f32 %v174_v10, %v173_v8 }
  0x8c   : > { %v176_v13 = vrot.slane %v175_v11, 1 }
  0x8e   : > { %v177_v14 = vadd.f32 %v176_v13, %v175_v11 }
  0x90   : > { %329 = vpush %v177_v14 }
  0x91   : > { %331 = vpush %v185_v15 }
  0xc1   : > { %s330_s18 = spop %329 }
  0xc2   : > { %s332_s19 = spop %331 }
  0xc3   : > { %s187_s20 = smul.f32 %s332_s19, %s330_s18 }
  0xc5   : > { %v188_v16 = vstv %s187_s20 }
  0xc6   : > { %v189_v17 = vsub.f32 %v167_v0, %v188_v16 }
  0xc8   : > { %v190_v18 = vmul.f32 %v189_v17, %v189_v17 }
  0xca   : > { %v191_v19 = vsel %vm168_vm0, %v190_v18, 0.0 }
  0xcb   : > { %192 = vadd.xlane.f32.xlu0 %v191_v19 }
 0x13e   : > { %v193_v23 = vpop.xlane.xlu0 %192 }
 0x13f   : > { %v194_v24 = vrot.slane %v193_v23, 4 }
 0x141   : > { %v195_v25 = vadd.f32 %v194_v24, %v193_v23 }
 0x143   : > { %v196_v26 = vrot.slane %v195_v25, 2 }
 0x145   : > { %v197_v27 = vadd.f32 %v196_v26, %v195_v25 }
 0x147   : > { %v198_v28 = vrot.slane %v197_v27, 1 }
 0x149   : > { %v199_v29 = vadd.f32 %v198_v28, %v197_v27 }
 0x14b   : > { %333 = vpush %v199_v29 }
 0x17c   : > { %s334_s25 = spop %333 }
 0x17d   : > { %s209_s26 = smul.f32 %s334_s25, %s332_s19 }
 0x17f   : > { %s210_s27 = sadd.f32 1e-08, %s209_s26 }
 0x181   : > { %v211_v30 = vstv %s210_s27 }
 0x182   : > { %351 = vrsqrt.f32 %v211_v30  ;;  %vm218_vm3 = vweird.f32 %v211_v30 }
 0x188   : > { %v352_v31 = vpop.eup %351 }
 0x189   : > { %v213_v32 = vmul.f32 %v352_v31, %v211_v30  ;;  %vm219_vm2 = vweird.f32 %v352_v31 }
 0x18a   : > { %vm220_vm4 = vmor %vm218_vm3, %vm219_vm2 }
 0x18b   : > { %v214_v33 = vmul.f32 %v352_v31, %v213_v32 }
 0x18d   : > { %v215_v34 = vmul.f32 0.5, %v214_v33 }
 0x18f   : > { %v216_v35 = vsub.f32 1.5, %v215_v34 }
 0x191   : > { %v217_v36 = vmul.f32 %v352_v31, %v216_v35 }
 0x193   : > { %v221_v37 = vsel %vm220_vm4, %v352_v31, %v217_v36 }
 0x194   : > { %335 = vpush %v221_v37 }
 0x1c5   : > { %s336_s28 = spop %335 }
 0x1c6   : > { %v223_v39 = vstv %s336_s28 }
 0x1c7   : > { %v224_v40 = vmul.f32 %v223_v39, %v189_v17 }
 0x1c9   : > { %v231_v41 = vmul.f32 %v229_v38, %v224_v40 }
 0x1cb   : > { %v239_v43 = vadd.f32 %v237_v42, %v231_v41 }
 0x1cd   : > { %v242_v45 = vpack.c.bf16 %v239_v43, %v239_v43 }
 0x1cf   : > { %v249_v46 = vsel %vm247_vm5, %v242_v45, 0 }
 0x1d0   : > { %258 = vmatpush.bf16.msra.mxu0 %v249_v46 }
 0x1d3   : > { %326 = vmatmul.msk.bf16.vlgmr.msra.gmra.mxu0 %vm243_vm6, %v241_v47 }
 0x250   : > { %v260_v48 = vpop.f32.mrf.mxu0 }
 0x251   : > { %264 = vst.msk [vmem:[%s165_s6] sm:$0xff] %vm168_vm0, %v260_v48 }
 0x258   : > { %v262_v49 = vpop.f32.mrf.mxu0 }
 0x259 PF: > { %s13_s12 = sadd.s32 1, %s359_s12  }
 0x25a   : > { %p10_p4 = scmp.ge.s32.totalorder %s13_s12, 4  }
 0x25c   :  { %12 = sbr.rel (!%p10_p4) target bundleno = 1 (0x1), region = 63 }

// kernel: dpa_forward.11
= control target key start
LH: loop header
LB: loop body
LE: loop exit
PB: predicated region body
PF: predicated region fallthrough
CT: control target
= control target key end

     0   :  { %s517_s0 = inlined_call_operand.vmem [shape: f32[2,8,16], index: 0, kind: input, shape index: {}]   ;;  %s518_s1 = inlined_call_operand.vmem [shape: f32[16,8], index: 1, kind: input, shape index: {}]   ;;  %s519_s2 = inlined_call_operand.<no memory space> [shape: f32[1], index: 2, kind: input, shape index: {}]   ;;  %s520_s3 = inlined_call_operand.hbm [shape: f32[2,16,16], index: 3, kind: output, shape index: {}]  }
   0x1   :  { %8 = sst [smem:[#allocation2]] %s519_s2 }
   0x2   :  { %9 = vsyncpa [#allocation4], 0 }
   0x3   :  { %11 = vsyncpa [#allocation4 + $0x1], 0  ;;  %s426_s14 = smov 0   ;;  %s428_s15 = smov 0  }
   0x4   :  { %s430_s16 = smov 0   ;;  %s432_s17 = smov 0  }
   0x5 LB: > { %s447_s2 = sadd.s32 4294967295, %s399_s17   ;;  %s283_s18 = sadd.s32 4294967294, %s399_s17   ;;  %s399_s17 = sphi %s432_s17, %s526_s17   ;;  %s395_s16 = sphi %s430_s16, %s525_s16   ;;  %s391_s15 = sphi %s428_s15, %s524_s15   ;;  %s387_s14 = sphi %s426_s14, %s523_s14  }
   0x6   : > { %s451_s19 = sadd.s32 1, %s399_s17   ;;  %s92_s20 = sadd.s32 1, %s395_s16 }
   0x7   : > { %s89_s21 = ssub.s32 %s399_s17, %s451_s19  ;;  %p102_p0 = scmp.ne.s32.totalorder %s395_s16, %s391_s15 }
   0x8   : > { %p90_p1 = scmp.eq.s32.totalorder %s89_s21, 0  ;;  %p103_p2 = scmp.eq.s32.totalorder %s447_s2, 1 }
   0x9   : > { %p108_p3 = scmp.ne.s32.totalorder %s391_s15, %s387_s14  ;;  %p109_p4 = scmp.eq.s32.totalorder %s283_s18, 1 }
   0xa   : > { %s462_s22 = scalar_select %p90_p1, %s395_s16, %s92_s20  }
   0xb   : > { %p464_p5 = por %p103_p2, %p102_p0  ;;  %p468_p6 = por %p109_p4, %p108_p3 }
   0xc   : > { %p286_p7 = scmp.ge.s32.totalorder %s399_s17, 1  ;;  %p140_p8 = scmp.lt.s32.totalorder %s399_s17, 3 }
   0xe   : > { %p141_p9 = pnand %p286_p7, %p140_p8 }
   0xf   : > { %p163_p10 = scmp.lt.s32.totalorder (!%p141_p9), %s447_s2, 1  ;;  %s169_s25 = sld [smem:[#allocation2]] (!%p141_p9) }
  0x10   : > { %144 = sbr.rel (%p141_p9) target bundleno = 175 (0xaf), region = 32  ;;  %s160_s8 = sand.u32 (!%p141_p9), 1, %s391_s15  }
  0x11   : > { %s287_s9 = sshll.u32 (!%p141_p9), %s160_s8, 4  ;;  %s295_s10 = sshll.u32 (!%p141_p9), %s447_s2, 4 }
  0x12   : > { %s217_s13 = scalar_lea.hbm (!%p141_p9), %s520_s3, %s295_s10  ;;  %s162_s18 = scalar_lea.vmem (!%p141_p9), [#allocation3], %s287_s9 }
  0x13   : > { %s218_s20 = sshll.u32 (!%p141_p9), %s162_s18, 4  ;;  %s220_s21 = sshll.u32 (!%p141_p9), %s217_s13, 4  ;;  %s219_s20 = int_to_ptr.vmem [resolvable:$true] %s218_s20  ;;  %s221_s21 = int_to_ptr.hbm [resolvable:$true] %s220_s21 }
  0x14   : > { %s357_s29 = scalar_lea.hbm (!%p141_p9), %s520_s3, 32 }
  0x15   : > { %s164_s26 = scalar_select %p163_p10, %s447_s2, 1  ;;  %v171_v1 = vstv %s169_s25  ;;  %vm182_vm1 = vcmask 1043456   ;;  %v174_v4 = vld [vmem:[%s518_s1] sm:$0xff]  ;;  %v175_v5 = vld [vmem:[%s518_s1 + $0x8] sm:$0xff]  ;;  %vm178_vm2 = vcmask 64512   ;;  %vm202_vm3 = vcmask 130048  }
  0x16   : > { %v176_v8 = vpack.c.bf16 %v175_v5, %v174_v4  ;;  %s206_s25 = scalar_lea.sflag [#allocation4], %s160_s8 }
  0x17   : > { %s288_s27 = sshll.u32 %s164_s26, 3  ;;  %s351_s26 = sshra.s32 %s221_s21, 4  ;;  %s352_s26 = int_to_ptr.hbm [resolvable:$true] %s351_s26 }
  0x18   : > { %s166_s30 = scalar_lea.vmem %s517_s0, %s288_s27  ;;  %s353_s2 = scalar_lea.hbm %s352_s26, 16 }
  0x19   : > { %v168_v0 = vld [vmem:[%s166_s30] sm:$0xff]  ;;  %p354_p11 = scmp.ne.s32.totalorder %s352_s26, %s353_s2  ;;  %p358_p0 = scmp.lt.s32.totalorder %s352_s26, %s520_s3 }
  0x1a   : > { %vm170_vm0 = vcmp.gt.f32.partialorder %v168_v0, 0.0  ;;  %v172_v2 = vmul.f32 %v171_v1, %v168_v0  ;;  %p359_p1 = scmp.lt.s32.totalorder %s357_s29, %s353_s2 }
  0x1b   : > { %p355_p12 = pnand %p354_p11, %p464_p5 }
  0x1c   : > { %v173_v3 = vsel %vm170_vm0, %v168_v0, %v172_v2  ;;  %p360_p2 = por %p359_p1, %p358_p0 }
  0x1d   : > { %v177_v6 = vpack.c.bf16 %v173_v3, %v173_v3  ;;  %p356_p13 = pneg %p355_p12 }
  0x1f   : > { %v184_v7 = vsel %vm182_vm1, %v177_v6, 0  ;;  %p361_p3 = pnand %p360_p2, %p356_p13 }
  0x20   : > { %193 = vmatpush.bf16.msra.mxu0 %v184_v7 }
  0x23   : > { %289 = vmatmul.msk.bf16.vlgmr.msra.gmra.mxu0 %vm178_vm2, %v176_v8 }
  0xa0   : > { %v195_v9 = vpop.f32.mrf.mxu0 }
  0xa1   : > { %v200_v10 = vmax.f32 %v195_v9, 0.0 }
  0xa3   : > { %203 = vst.msk [vmem:[%s162_s18] sm:$0xff] %vm202_vm3, %v200_v10 }
  0xa8   : > { %v197_v11 = vpop.f32.mrf.mxu0 }
  0xa9   : > { %v201_v12 = vmax.f32 %v197_v11, 0.0 }
  0xab   : > { %204 = vst.msk [vmem:[%s162_s18 + $0x8] sm:$0xff] %vm202_vm3, %v201_v12 }
  0xac   : > { %364 = shalt.err (!%p361_p3)
}
  0xad   : > { %s401_s5 = smov 128   ;;  %s402_s6 = smov 8  }
  0xae   : > { %296 = dma.vmem_to_hbm [thread:$0]  (%p464_p5), %s219_s20, 256, %s221_s21, %s206_s25, %s401_s5, %s401_s5, %s402_s6  }
  0xaf PF: > { %p302_p4 = scmp.ge.s32.totalorder %s399_s17, 2  ;;  %s235_s7 = sand.u32 1, %s387_s14  }
  0xb0   : > { %s236_s8 = scalar_lea.sflag [#allocation4], %s235_s7 }
  0xb1   : > { %p299_p7 = pnand %p302_p4, %p468_p6 }
  0xb3   : > { %p300_p8 = pneg %p299_p7 }
  0xb5   : > { %382 = dma.done.wait (%p300_p8), %s236_s8, 256  }
  0xb6   : > { %384 = vsyncadd (%p300_p8), %s236_s8, 4294967040  ;;  %p14_p9 = scmp.ge.s32.totalorder %s451_s19, 4   ;;  %s523_s14 = smov %s391_s15 }
  0xb7   : > { %s524_s15 = smov %s395_s16  ;;  %s525_s16 = smov %s462_s22 }
  0xb8   : > { %s526_s17 = smov %s451_s19  ;;  %16 = sbr.rel (!%p14_p9) target bundleno = 5 (0x5), region = 67 }
  0xbd   :  { %242 = vsyncpa [#allocation4], 1 }
  0xbe   :  { %244 = vsyncpa [#allocation4 + $0x1], 1 }

// kernel: dpa_forward.7
= control target key start
LH: loop header
LB: loop body
LE: loop exit
PB: predicated region body
PF: predicated region fallthrough
CT: control target
= control target key end

     0   :  { %s1480_s21 = smov 0   ;;  %s1818_s0 = inlined_call_operand.vmem [shape: f32[12,8,8], index: 0, kind: input, shape index: {}]   ;;  %s1819_s1 = inlined_call_operand.vmem [shape: f32[4,8,8], index: 1, kind: input, shape index: {}]   ;;  %s1820_s2 = inlined_call_operand.vmem [shape: f32[8,16], index: 2, kind: input, shape index: {}]   ;;  %s1821_s3 = inlined_call_operand.vmem [shape: f32[1,16], index: 3, kind: input, shape index: {}]   ;;  %s1822_s4 = inlined_call_operand.vmem [shape: f32[16,8], index: 4, kind: input, shape index: {}]   ;;  %s1823_s5 = inlined_call_operand.vmem [shape: f32[11,8], index: 5, kind: input, shape index: {}]   ;;  %s1824_s6 = inlined_call_operand.vmem [shape: f32[12,8,8], index: 6, kind: output, shape index: {}]  }
   0x1 LB: > { %s1313_s22 = sadd.s32 4294967295, %s1441_s21   ;;  %p1317_p0 = scmp.ge.s32.totalorder %s1441_s21, 1  ;;  %s1441_s21 = sphi %s1480_s21, %s16_s21  }
   0x2   : > { %p213_p1 = scmp.lt.s32.totalorder %s1441_s21, 3 }
   0x4   : > { %p214_p2 = pnand %p1317_p0, %p213_p1 }
   0x5   : > { %s243_s25 = smul.u32 (!%p214_p2), 6, %s1313_s22 }
   0x6   : > { %217 = sbr.rel (%p214_p2) target bundleno = 2149 (0x865), region = 44 }
   0x7   : > { %p244_p3 = scmp.lt.s32.totalorder (!%p214_p2), %s243_s25, 11 }
   0xb   : > { %v1320_v0 = vld [vmem:[%s1819_s1 + $0x8] sm:$0xff]  ;;  %vm289_vm0 = vcmask 1043456   ;;  %v267_v1 = vld [vmem:[%s1819_s1] sm:$0xff]  ;;  %s1828_s25 = smov (!%p244_p3, %s243_s25), 11  ;;  %vm279_vm1 = vcmask 64512   ;;  %v1321_v15 = vld [vmem:[%s1819_s1 + $0x10] sm:$0xff] }
   0xc   : > { %v271_v2 = vpack.c.bf16 %v1320_v0, %v1320_v0  ;;  %v268_v3 = vpack.c.bf16 %v267_v1, %v267_v1  ;;  %s1318_s28 = sshll.u32 %s1828_s25, 3  ;;  %v274_v16 = vpack.c.bf16 %v1321_v15, %v1321_v15  ;;  %v1545_v18 = vld [vmem:[%s1823_s5] sm:$0xff] }
   0xd   : > { %s1504_s7 = scalar_lea.vmem %s1818_s0, %s1318_s28  ;;  %v317_v19 = vperm.slane %v1545_v18, 1  ;;  %v278_v23 = vperm.slane %v1545_v18, 0  ;;  %v345_v63 = vperm.slane %v1545_v18, 2  ;;  %s253_s15 = scalar_lea.vmem %s1824_s6, %s1318_s28 }
   0xe   : > { %v319_v4 = vsel %vm289_vm0, %v271_v2, 0  ;;  %v291_v5 = vsel %vm289_vm0, %v268_v3, 0  ;;  %v1507_v6 = vld [vmem:[%s1504_s7] sm:$0xff]  ;;  %v1510_v7 = vld [vmem:[%s1504_s7 + $0x8] sm:$0xff]  ;;  %v1517_v9 = vld [vmem:[%s1504_s7 + $0x10] sm:$0xff]  ;;  %v347_v17 = vsel %vm289_vm0, %v274_v16, 0 }
   0xf   : > { %328 = vmatpush.bf16.msra.mxu1 %v319_v4  ;;  %300 = vmatpush.bf16.msra.mxu0 %v291_v5  ;;  %v262_v8 = vpack.c.bf16 %v1510_v7, %v1507_v6  ;;  %v1520_v10 = vld [vmem:[%s1504_s7 + $0x18] sm:$0xff]  ;;  %v1527_v12 = vld [vmem:[%s1504_s7 + $0x20] sm:$0xff]  ;;  %v1530_v13 = vld [vmem:[%s1504_s7 + $0x28] sm:$0xff] }
  0x10   : > { %v263_v11 = vpack.c.bf16 %v1520_v10, %v1517_v9  ;;  %v264_v14 = vpack.c.bf16 %v1530_v13, %v1527_v12  ;;  %356 = vmatpush.bf16.msra.mxu2 %v347_v17 }
  0x12   : > { %1326 = vmatmul.msk.bf16.vlgmr.msra.gmra.mxu1 %vm279_vm1, %v262_v8  ;;  %1323 = vmatmul.msk.bf16.vlgmr.msra.gmra.mxu0 %vm279_vm1, %v262_v8 }
  0x13   : > { %1329 = vmatmul.msk.bf16.vlgmr.msra.gmra.mxu2 %vm279_vm1, %v262_v8 }
  0x22   : > { %1327 = vmatmul.msk.bf16.gmra.mxu1 %vm279_vm1, %v263_v11  ;;  %1324 = vmatmul.msk.bf16.gmra.mxu0 %vm279_vm1, %v263_v11 }
  0x23   : > { %1330 = vmatmul.msk.bf16.gmra.mxu2 %vm279_vm1, %v263_v11 }
  0x32   : > { %1328 = vmatmul.msk.bf16.gmra.mxu1 %vm279_vm1, %v264_v14  ;;  %1325 = vmatmul.msk.bf16.gmra.mxu0 %vm279_vm1, %v264_v14 }
  0x33   : > { %1331 = vmatmul.msk.bf16.gmra.mxu2 %vm279_vm1, %v264_v14 }
  0x8f   : > { %v330_v20 = vpop.f32.mrf.mxu1  ;;  %v302_v21 = vpop.f32.mrf.mxu0 }
  0x90   : > { %v331_v22 = vadd.f32 %v330_v20, %v317_v19  ;;  %v303_v26 = vadd.f32 %v302_v21, %v278_v23 }
  0x92   : > { %v379_v24 = vpack.c.bf16 %v331_v22, %v331_v22  ;;  %v373_v29 = vpack.c.bf16 %v303_v26, %v303_v26 }
  0x94   : > { %v395_v25 = vsel %vm279_vm1, %v379_v24, 0 }
  0x95   : > { %404 = vmatpush.bf16.xpose.msrb.mxu0 %v395_v25 }
  0x96   : > { %v358_v0 = vpop.f32.mrf.mxu2 }
  0x97   : > { %v332_v27 = vpop.f32.mrf.mxu1  ;;  %v304_v28 = vpop.f32.mrf.mxu0  ;;  %v359_v1 = vadd.f32 %v358_v0, %v345_v63 }
  0x98   : > { %v333_v30 = vadd.f32 %v332_v27, %v317_v19  ;;  %v305_v33 = vadd.f32 %v304_v28, %v278_v23 }
  0x99   : > { %v385_v2 = vpack.c.bf16 %v359_v1, %v359_v1 }
  0x9a   : > { %v380_v31 = vpack.c.bf16 %v333_v30, %v333_v30  ;;  %v374_v37 = vpack.c.bf16 %v305_v33, %v305_v33 }
  0x9b   : > { %v587_v3 = vsel %vm289_vm0, %v385_v2, 0 }
  0x9c   : > { %1332 = vmatmul.msk.bf16.vlgmr.msrb.gmra.mxu0 %vm279_vm1, %v373_v29  ;;  %v414_v32 = vsel %vm279_vm1, %v380_v31, 0 }
  0x9d   : > { %423 = vmatpush.bf16.xpose.msra.mxu3 %v414_v32 }
  0x9e   : > { %v360_v4 = vpop.f32.mrf.mxu2 }
  0x9f   : > { %v335_v34 = vpop.f32.mrf.mxu1  ;;  %v307_v35 = vpop.f32.mrf.mxu0  ;;  %v361_v5 = vadd.f32 %v360_v4, %v345_v63 }
  0xa0   : > { %v336_v36 = vadd.f32 %v335_v34, %v317_v19  ;;  %v308_v45 = vadd.f32 %v307_v35, %v278_v23 }
  0xa1   : > { %v386_v8 = vpack.c.bf16 %v361_v5, %v361_v5 }
  0xa2   : > { %v381_v38 = vpack.c.bf16 %v336_v36, %v336_v36  ;;  %v375_v50 = vpack.c.bf16 %v308_v45, %v308_v45 }
  0xa3   : > { %v606_v11 = vsel %vm289_vm0, %v386_v8, 0 }
  0xa4   : > { %1333 = vmatmul.msk.bf16.vlgmr.msra.gmra.mxu3 %vm279_vm1, %v374_v37  ;;  %v433_v39 = vsel %vm279_vm1, %v381_v38, 0 }
  0xa5   : > { %442 = vmatpush.bf16.xpose.msrb.mxu3 %v433_v39 }
  0xa6   : > { %v363_v14 = vpop.f32.mrf.mxu2 }
  0xa7   : > { %v337_v40 = vpop.f32.mrf.mxu1  ;;  %v309_v42 = vpop.f32.mrf.mxu0  ;;  %v364_v15 = vadd.f32 %v363_v14, %v345_v63 }
  0xa8   : > { %v338_v41 = vadd.f32 %v337_v40, %v317_v19  ;;  %v310_v46 = vadd.f32 %v309_v42, %v278_v23 }
  0xa9   : > { %v387_v16 = vpack.c.bf16 %v364_v15, %v364_v15 }
  0xaa   : > { %v382_v43 = vpack.c.bf16 %v338_v41, %v338_v41  ;;  %v376_v51 = vpack.c.bf16 %v310_v46, %v310_v46 }
  0xab   : > { %v625_v17 = vsel %vm289_vm0, %v387_v16, 0 }
  0xac   : > { %v452_v44 = vsel %vm279_vm1, %v382_v43, 0 }
  0xad   : > { %461 = vmatpush.bf16.xpose.msra.mxu0 %v452_v44  ;;  %596 = vmatpush.bf16.msra.mxu3 %v587_v3 }
  0xaf   : > { %v340_v47 = vpop.f32.mrf.mxu1  ;;  %v312_v49 = vpop.f32.mrf.mxu0 }
  0xb0   : > { %v341_v48 = vadd.f32 %v340_v47, %v317_v19  ;;  %v313_v54 = vadd.f32 %v312_v49, %v278_v23 }
  0xb2   : > { %v383_v52 = vpack.c.bf16 %v341_v48, %v341_v48  ;;  %v377_v56 = vpack.c.bf16 %v313_v54, %v313_v54 }
  0xb4   : > { %1335 = vmatmul.msk.bf16.vlgmr.msra.gmra.mxu0 %vm279_vm1, %v376_v51  ;;  %v471_v53 = vsel %vm279_vm1, %v383_v52, 0  ;;  %1334 = vmatmul.msk.bf16.vlgmr.msrb.gmra.mxu3 %vm279_vm1, %v375_v50 }
  0xb5   : > { %480 = vmatpush.bf16.xpose.msrb.mxu1 %v471_v53  ;;  %615 = vmatpush.bf16.msrb.mxu0 %v606_v11 }
  0xb7   : > { %v342_v55 = vpop.f32.mrf.mxu1  ;;  %v314_v59 = vpop.f32.mrf.mxu0 }
  0xb8   : > { %v343_v57 = vadd.f32 %v342_v55, %v317_v19  ;;  %v315_v61 = vadd.f32 %v314_v59, %v278_v23  ;;  %v365_v19 = vpop.f32.mrf.mxu2 }
  0xb9   : > { %v366_v20 = vadd.f32 %v365_v19, %v345_v63 }
  0xba   : > { %v384_v58 = vpack.c.bf16 %v343_v57, %v343_v57  ;;  %v378_v62 = vpack.c.bf16 %v315_v61, %v315_v61 }
  0xbb   : > { %v388_v21 = vpack.c.bf16 %v366_v20, %v366_v20 }
  0xbc   : > { %1336 = vmatmul.msk.bf16.vlgmr.msrb.gmra.mxu1 %vm279_vm1, %v377_v56  ;;  %v490_v60 = vsel %vm279_vm1, %v384_v58, 0 }
  0xbd   : > { %499 = vmatpush.bf16.xpose.msrb.mxu2 %v490_v60  ;;  %634 = vmatpush.bf16.msra.mxu1 %v625_v17  ;;  %v644_v22 = vsel %vm289_vm0, %v388_v21, 0 }
  0xc0   : > { %v368_v23 = vpop.f32.mrf.mxu2 }
  0xc1   : > { %v369_v24 = vadd.f32 %v368_v23, %v345_v63 }
  0xc3   : > { %v389_v25 = vpack.c.bf16 %v369_v24, %v369_v24 }
  0xc4   : > { %1337 = vmatmul.msk.bf16.vlgmr.msrb.gmra.mxu2 %vm279_vm1, %v378_v62 }
  0xc5   : > { %653 = vmatpush.bf16.msra.mxu2 %v644_v22  ;;  %v663_v27 = vsel %vm289_vm0, %v389_v25, 0 }
  0xc6   : > { %672 = vmatpush.bf16.msrb.mxu3 %v663_v27 }
  0xc8   : > { %v370_v28 = vpop.f32.mrf.mxu2 }
  0xc9   : > { %v371_v30 = vadd.f32 %v370_v28, %v345_v63 }
  0xcb   : > { %v390_v32 = vpack.c.bf16 %v371_v30, %v371_v30 }
  0xcd   : > { %v682_v33 = vsel %vm289_vm0, %v390_v32, 0 }
  0xce   : > { %691 = vmatpush.bf16.msra.mxu0 %v682_v33 }
 0x119   : > { %v406_v26 = vpop.f32.mrf.mxu0 }
 0x11a   : > { %v505_v29 = vmul.f32 0.35355338, %v406_v26 }
 0x11c   : > { %v511_v31 = vsel %vm279_vm1, %v505_v29, -inf }
 0x11d   : > { %512 = vmax.xlane.f32.xlu0 %v511_v31 }
 0x121   : > { %v408_v34 = vpop.f32.mrf.mxu0 }
 0x127   : > { %v425_v35 = vpop.f32.mrf.mxu3 }
 0x128   : > { %v506_v36 = vmul.f32 0.35355338, %v425_v35 }
 0x12a   : > { %v514_v37 = vsel %vm279_vm1, %v506_v36, -inf }
 0x12b   : > { %515 = vmax.xlane.f32.xlu0 %v514_v37 }
 0x12f   : > { %v427_v38 = vpop.f32.mrf.mxu3 }
 0x131   : > { %v463_v39 = vpop.f32.mrf.mxu0 }
 0x132   : > { %v508_v40 = vmul.f32 0.35355338, %v463_v39 }
 0x134   : > { %v520_v41 = vsel %vm279_vm1, %v508_v40, -inf }
 0x135   : > { %521 = vmax.xlane.f32.xlu1 %v520_v41 }
 0x137   : > { %v444_v42 = vpop.f32.mrf.mxu3 }
 0x138   : > { %v507_v43 = vmul.f32 0.35355338, %v444_v42 }
 0x139   : > { %v482_v44 = vpop.f32.mrf.mxu1  ;;  %v465_v45 = vpop.f32.mrf.mxu0 }
 0x13a   : > { %v509_v46 = vmul.f32 0.35355338, %v482_v44  ;;  %v517_v48 = vsel %vm279_vm1, %v507_v43, -inf }
 0x13c   : > { %v523_v47 = vsel %vm279_vm1, %v509_v46, -inf }
 0x13d   : > { %524 = vmax.xlane.f32.xlu2 %v523_v47  ;;  %518 = vmax.xlane.f32.xlu1 %v517_v48 }
 0x13f   : > { %v446_v49 = vpop.f32.mrf.mxu3 }
 0x141   : > { %v484_v50 = vpop.f32.mrf.mxu1 }
 0x147   : > { %v501_v51 = vpop.f32.mrf.mxu2 }
 0x148   : > { %v510_v52 = vmul.f32 0.35355338, %v501_v51 }
 0x14a   : > { %v526_v53 = vsel %vm279_vm1, %v510_v52, -inf }
 0x14b   : > { %527 = vmax.xlane.f32.xlu2 %v526_v53 }
 0x14f   : > { %v503_v54 = vpop.f32.mrf.mxu2 }
 0x190   : > { %v513_v55 = vpop.xlane.xlu0 %512 }
 0x191   : > { %v529_v56 = vsub.f32 %v505_v29, %v513_v55 }
 0x193   : > { %v535_v57 = vmul.f32 1.442695, %v529_v56 }
 0x195   : > { %1374 = vpow2.f32 %v535_v57 }
 0x19b   : > { %v1375_v58 = vpop.eup %1374 }
 0x19c   : > { %v547_v59 = vsel %vm279_vm1, %v1375_v58, 0.0 }
 0x19d   : > { %548 = vadd.xlane.f32.xlu0 %v547_v59 }
 0x19e   : > { %v516_v60 = vpop.xlane.xlu0 %515 }
 0x19f   : > { %v530_v61 = vsub.f32 %v506_v36, %v516_v60 }
 0x1a1   : > { %v537_v62 = vmul.f32 1.442695, %v530_v61 }
 0x1a3   : > { %1376 = vpow2.f32 %v537_v62 }
 0x1a8   : > { %v522_v63 = vpop.xlane.xlu1 %521 }
 0x1a9   : > { %v1377_v0 = vpop.eup %1376  ;;  %v532_v1 = vsub.f32 %v508_v40, %v522_v63 }
 0x1aa   : > { %v550_v2 = vsel %vm279_vm1, %v1377_v0, 0.0 }
 0x1ab   : > { %v541_v3 = vmul.f32 1.442695, %v532_v1  ;;  %551 = vadd.xlane.f32.xlu1 %v550_v2 }
 0x1ad   : > { %1378 = vpow2.f32 %v541_v3 }
 0x1b0   : > { %v525_v4 = vpop.xlane.xlu2 %524  ;;  %v519_v5 = vpop.xlane.xlu1 %518 }
 0x1b1   : > { %v533_v8 = vsub.f32 %v509_v46, %v525_v4  ;;  %v531_v11 = vsub.f32 %v507_v43, %v519_v5 }
 0x1b3   : > { %v1379_v14 = vpop.eup %1378  ;;  %v543_v15 = vmul.f32 1.442695, %v533_v8  ;;  %v539_v16 = vmul.f32 1.442695, %v531_v11  ;;  %v700_v8 = vperm.slane %v1545_v18, 3 }
 0x1b4   : > { %v556_v17 = vsel %vm279_vm1, %v1379_v14, 0.0 }
 0x1b5   : > { %1380 = vpow2.f32 %v543_v15  ;;  %557 = vadd.xlane.f32.xlu2 %v556_v17 }
 0x1b6   : > { %1382 = vpow2.f32 %v539_v16 }
 0x1bb   : > { %v1381_v19 = vpop.eup %1380 }
 0x1bc   : > { %v1383_v20 = vpop.eup %1382  ;;  %v559_v21 = vsel %vm279_vm1, %v1381_v19, 0.0 }
 0x1bd   : > { %560 = vadd.xlane.f32.xlu1 %v559_v21  ;;  %v553_v22 = vsel %vm279_vm1, %v1383_v20, 0.0 }
 0x1be   : > { %554 = vadd.xlane.f32.xlu0 %v553_v22  ;;  %v528_v23 = vpop.xlane.xlu2 %527 }
 0x1bf   : > { %v534_v24 = vsub.f32 %v510_v52, %v528_v23  ;;  %v1322_v52 = vld [vmem:[%s1819_s1 + $0x18] sm:$0xff] }
 0x1c0   : > { %v277_v53 = vpack.c.bf16 %v1322_v52, %v1322_v52 }
 0x1c1   : > { %v545_v25 = vmul.f32 1.442695, %v534_v24 }
 0x1c2   : > { %v711_v54 = vsel %vm289_vm0, %v277_v53, 0 }
 0x1c3   : > { %1384 = vpow2.f32 %v545_v25  ;;  %720 = vmatpush.bf16.msrb.mxu1 %v711_v54 }
 0x1c9   : > { %v1385_v26 = vpop.eup %1384 }
 0x1ca   : > { %v562_v27 = vsel %vm279_vm1, %v1385_v26, 0.0 }
 0x1cb   : > { %563 = vadd.xlane.f32.xlu2 %v562_v27 }
 0x210   : > { %v549_v28 = vpop.xlane.xlu0 %548 }
 0x211   : > { %1386 = vrcp.f32 %v549_v28 }
 0x217   : > { %v1387_v29 = vpop.eup %1386 }
 0x218   : > { %v571_v30 = vmul.f32 %v1387_v29, %v1375_v58 }
 0x21a   : > { %v577_v31 = vpack.c.bf16 %v571_v30, %v571_v30 }
 0x21c   : > { %1338 = vmatmul.msk.bf16.vlgmr.msra.gmra.mxu3 %vm279_vm1, %v577_v31 }
 0x21e   : > { %v552_v32 = vpop.xlane.xlu1 %551 }
 0x21f   : > { %1388 = vrcp.f32 %v552_v32 }
 0x225   : > { %v1389_v33 = vpop.eup %1388 }
 0x226   : > { %v572_v34 = vmul.f32 %v1389_v33, %v1377_v0 }
 0x228   : > { %v578_v35 = vpack.c.bf16 %v572_v34, %v572_v34  ;;  %v558_v36 = vpop.xlane.xlu2 %557 }
 0x229   : > { %1390 = vrcp.f32 %v558_v36 }
 0x22a   : > { %1339 = vmatmul.msk.bf16.vlgmr.msrb.gmra.mxu0 %vm279_vm1, %v578_v35  ;;  %v1443_v35 = vmov 8.0  }
 0x22f   : > { %v1391_v37 = vpop.eup %1390 }
 0x230   : > { %v574_v38 = vmul.f32 %v1391_v37, %v1379_v14  ;;  %v561_v39 = vpop.xlane.xlu1 %560 }
 0x231   : > { %v555_v40 = vpop.xlane.xlu0 %554  ;;  %1392 = vrcp.f32 %v561_v39 }
 0x232   : > { %v580_v41 = vpack.c.bf16 %v574_v38, %v574_v38  ;;  %1394 = vrcp.f32 %v555_v40 }
 0x234   : > { %1341 = vmatmul.msk.bf16.vlgmr.msra.gmra.mxu2 %vm279_vm1, %v580_v41 }
 0x237   : > { %v1393_v42 = vpop.eup %1392 }
 0x238   : > { %v1395_v43 = vpop.eup %1394  ;;  %v575_v44 = vmul.f32 %v1393_v42, %v1381_v19 }
 0x239   : > { %v573_v45 = vmul.f32 %v1395_v43, %v1383_v20 }
 0x23a   : > { %v581_v46 = vpack.c.bf16 %v575_v44, %v575_v44 }
 0x23b   : > { %v579_v47 = vpack.c.bf16 %v573_v45, %v573_v45 }
 0x23c   : > { %1342 = vmatmul.msk.bf16.vlgmr.msrb.gmra.mxu3 %vm279_vm1, %v581_v46 }
 0x23d   : > { %1340 = vmatmul.msk.bf16.vlgmr.msra.gmra.mxu1 %vm279_vm1, %v579_v47 }
 0x23e   : > { %v564_v48 = vpop.xlane.xlu2 %563 }
 0x23f   : > { %1396 = vrcp.f32 %v564_v48 }
 0x240   : > { %1398 = vrcp.f32 %v1443_v35 }
 0x245   : > { %v1397_v49 = vpop.eup %1396 }
 0x246   : > { %v576_v50 = vmul.f32 %v1397_v49, %v1385_v26 }
 0x248   : > { %v582_v51 = vpack.c.bf16 %v576_v50, %v576_v50 }
 0x24a   : > { %1343 = vmatmul.msk.bf16.vlgmr.msra.gmra.mxu0 %vm279_vm1, %v582_v51 }
 0x29f   : > { %v598_v55 = vpop.f32.mrf.mxu3 }
 0x2a7   : > { %v600_v56 = vpop.f32.mrf.mxu3  ;;  %v617_v57 = vpop.f32.mrf.mxu0 }
 0x2a8   : > { %v697_v58 = vpack.c.bf16 %v617_v57, %v598_v55 }
 0x2aa   : > { %1344 = vmatmul.msk.bf16.vlgmr.msrb.gmra.mxu1 %vm279_vm1, %v697_v58 }
 0x2af   : > { %v619_v59 = vpop.f32.mrf.mxu0 }
 0x2b7   : > { %v655_v60 = vpop.f32.mrf.mxu2 }
 0x2ba   : > { %v636_v61 = vpop.f32.mrf.mxu1 }
 0x2bb   : > { %v698_v62 = vpack.c.bf16 %v655_v60, %v636_v61 }
 0x2bd   : > { %1345 = vmatmul.msk.bf16.gmra.mxu1 %vm279_vm1, %v698_v62 }
 0x2bf   : > { %v657_v63 = vpop.f32.mrf.mxu2  ;;  %v674_v0 = vpop.f32.mrf.mxu3 }
 0x2c2   : > { %v638_v1 = vpop.f32.mrf.mxu1 }
 0x2c7   : > { %v676_v2 = vpop.f32.mrf.mxu3  ;;  %v693_v3 = vpop.f32.mrf.mxu0 }
 0x2c8   : > { %v699_v4 = vpack.c.bf16 %v693_v3, %v674_v0 }
 0x2cd   : > { %1346 = vmatmul.msk.bf16.gmra.mxu1 %vm279_vm1, %v699_v4 }
 0x2cf   : > { %v695_v5 = vpop.f32.mrf.mxu0 }
 0x327   : > { %v722_v11 = vpop.f32.mrf.mxu1 }
 0x328   : > { %v723_v14 = vadd.f32 %v722_v11, %v700_v8  ;;  %v899_v11 = vld [vmem:[%s1820_s2] sm:$0xff] }
 0x32a   : > { %v737_v15 = vadd.f32 %v723_v14, %v1507_v6  ;;  %v900_v14 = vpack.c.bf16 %v899_v11, %v899_v11 }
 0x32c   : > { %v743_v16 = vsel %vm279_vm1, %v737_v15, 0.0 }
 0x32d   : > { %744 = vadd.xlane.f32.xlu0 %v743_v16  ;;  %v915_v16 = vsel %vm289_vm0, %v900_v14, 0 }
 0x32e   : > { %924 = vmatpush.bf16.msrb.mxu2 %v915_v16 }
 0x32f   : > { %v724_v17 = vpop.f32.mrf.mxu1 }
 0x330   : > { %v725_v19 = vadd.f32 %v724_v17, %v700_v8 }
 0x332   : > { %v738_v20 = vadd.f32 %v725_v19, %v1510_v7 }
 0x334   : > { %v746_v21 = vsel %vm279_vm1, %v738_v20, 0.0 }
 0x335   : > { %747 = vadd.xlane.f32.xlu1 %v746_v21 }
 0x33a   : > { %v727_v22 = vpop.f32.mrf.mxu1 }
 0x33b   : > { %v728_v23 = vadd.f32 %v727_v22, %v700_v8 }
 0x33d   : > { %v739_v24 = vadd.f32 %v728_v23, %v1517_v9 }
 0x33f   : > { %v749_v25 = vsel %vm279_vm1, %v739_v24, 0.0 }
 0x340   : > { %750 = vadd.xlane.f32.xlu2 %v749_v25 }
 0x342   : > { %v729_v26 = vpop.f32.mrf.mxu1 }
 0x343   : > { %v730_v27 = vadd.f32 %v729_v26, %v700_v8 }
 0x345   : > { %v740_v6 = vadd.f32 %v730_v27, %v1520_v10  ;;  %v1399_v10 = vpop.eup %1398 }
 0x346   : > { %v762_v36 = vmul.f32 8.0, %v1399_v10  ;;  %vm766_vm2 = vweird.f32 %v1399_v10 }
 0x347   : > { %v752_v28 = vsel %vm279_vm1, %v740_v6, 0.0 }
 0x348   : > { %753 = vadd.xlane.f32.xlu0 %v752_v28  ;;  %v763_v37 = vsub.f32 1.0, %v762_v36 }
 0x34a   : > { %v732_v29 = vpop.f32.mrf.mxu1  ;;  %v764_v38 = vmul.f32 %v1399_v10, %v763_v37 }
 0x34b   : > { %v733_v30 = vadd.f32 %v732_v29, %v700_v8 }
 0x34c   : > { %v765_v39 = vadd.f32 %v1399_v10, %v764_v38 }
 0x34d   : > { %v741_v7 = vadd.f32 %v733_v30, %v1527_v12 }
 0x34e   : > { %v1607_v40 = vsel %vm766_vm2, %v1399_v10, %v765_v39 }
 0x34f   : > { %v755_v31 = vsel %vm279_vm1, %v741_v7, 0.0 }
 0x350   : > { %756 = vadd.xlane.f32.xlu1 %v755_v31 }
 0x352   : > { %v734_v32 = vpop.f32.mrf.mxu1 }
 0x353   : > { %v735_v33 = vadd.f32 %v734_v32, %v700_v8 }
 0x355   : > { %v742_v9 = vadd.f32 %v735_v33, %v1530_v13 }
 0x357   : > { %v758_v34 = vsel %vm279_vm1, %v742_v9, 0.0 }
 0x358   : > { %759 = vadd.xlane.f32.xlu2 %v758_v34 }
 0x3a0   : > { %v745_v12 = vpop.xlane.xlu0 %744 }
 0x3a1   : > { %v768_v41 = vmul.f32 %v1607_v40, %v745_v12  ;;  %v1658_v12 = vperm.slane %v1545_v18, 6 }
 0x3a3   : > { %v1610_v42 = vsub.f32 %v737_v15, %v768_v41 }
 0x3a5   : > { %v780_v13 = vmul.f32 %v1610_v42, %v1610_v42 }
 0x3a7   : > { %v786_v43 = vsel %vm279_vm1, %v780_v13, 0.0 }
 0x3a8   : > { %v748_v44 = vpop.xlane.xlu1 %747  ;;  %787 = vadd.xlane.f32.xlu0 %v786_v43 }
 0x3a9   : > { %v769_v45 = vmul.f32 %v1607_v40, %v748_v44 }
 0x3ab   : > { %v1616_v46 = vsub.f32 %v738_v20, %v769_v45 }
 0x3ad   : > { %v781_v47 = vmul.f32 %v1616_v46, %v1616_v46 }
 0x3af   : > { %v789_v48 = vsel %vm279_vm1, %v781_v47, 0.0 }
 0x3b0   : > { %790 = vadd.xlane.f32.xlu1 %v789_v48 }
 0x3b3   : > { %v751_v49 = vpop.xlane.xlu2 %750 }
 0x3b4   : > { %v770_v50 = vmul.f32 %v1607_v40, %v751_v49 }
 0x3b6   : > { %v1622_v51 = vsub.f32 %v739_v24, %v770_v50 }
 0x3b8   : > { %v782_v52 = vmul.f32 %v1622_v51, %v1622_v51 }
 0x3ba   : > { %v792_v53 = vsel %vm279_vm1, %v782_v52, 0.0 }
 0x3bb   : > { %v754_v54 = vpop.xlane.xlu0 %753  ;;  %793 = vadd.xlane.f32.xlu2 %v792_v53 }
 0x3bc   : > { %v771_v55 = vmul.f32 %v1607_v40, %v754_v54 }
 0x3be   : > { %v1628_v56 = vsub.f32 %v740_v6, %v771_v55 }
 0x3c0   : > { %v783_v57 = vmul.f32 %v1628_v56, %v1628_v56 }
 0x3c2   : > { %v795_v58 = vsel %vm279_vm1, %v783_v57, 0.0 }
 0x3c3   : > { %796 = vadd.xlane.f32.xlu0 %v795_v58  ;;  %v757_v59 = vpop.xlane.xlu1 %756 }
 0x3c4   : > { %v772_v60 = vmul.f32 %v1607_v40, %v757_v59 }
 0x3c6   : > { %v1634_v61 = vsub.f32 %v741_v7, %v772_v60 }
 0x3c8   : > { %v784_v62 = vmul.f32 %v1634_v61, %v1634_v61 }
 0x3ca   : > { %v798_v63 = vsel %vm279_vm1, %v784_v62, 0.0 }
 0x3cb   : > { %v760_v0 = vpop.xlane.xlu2 %759  ;;  %799 = vadd.xlane.f32.xlu1 %v798_v63 }
 0x3cc   : > { %v773_v1 = vmul.f32 %v1607_v40, %v760_v0 }
 0x3ce   : > { %v1640_v2 = vsub.f32 %v742_v9, %v773_v1  ;;  %v1653_v9 = vperm.slane %v1545_v18, 5 }
 0x3d0   : > { %v785_v3 = vmul.f32 %v1640_v2, %v1640_v2 }
 0x3d2   : > { %v801_v4 = vsel %vm279_vm1, %v785_v3, 0.0 }
 0x3d3   : > { %802 = vadd.xlane.f32.xlu2 %v801_v4 }
 0x41b   : > { %v788_v5 = vpop.xlane.xlu0 %787 }
 0x41c   : > { %v804_v8 = vmul.f32 %v788_v5, %v1607_v40 }
 0x41e   : > { %v810_v15 = vadd.f32 1e-05, %v804_v8 }
 0x420   : > { %1400 = vrsqrt.f32 %v810_v15  ;;  %vm822_vm4 = vweird.f32 %v810_v15 }
 0x423   : > { %v791_v17 = vpop.xlane.xlu1 %790 }
 0x424   : > { %v805_v19 = vmul.f32 %v791_v17, %v1607_v40 }
 0x426   : > { %v1401_v20 = vpop.eup %1400  ;;  %v811_v21 = vadd.f32 1e-05, %v805_v19 }
 0x427   : > { %v817_v22 = vmul.f32 %v1401_v20, %v810_v15  ;;  %vm823_vm3 = vweird.f32 %v1401_v20 }
 0x428   : > { %1402 = vrsqrt.f32 %v811_v21  ;;  %vm824_vm5 = vmor %vm822_vm4, %vm823_vm3  ;;  %vm832_vm7 = vweird.f32 %v811_v21 }
 0x429   : > { %v818_v23 = vmul.f32 %v1401_v20, %v817_v22 }
 0x42b   : > { %v819_v24 = vmul.f32 0.5, %v818_v23 }
 0x42d   : > { %v820_v25 = vsub.f32 1.5, %v819_v24 }
 0x42e   : > { %v1403_v26 = vpop.eup %1402  ;;  %v794_v27 = vpop.xlane.xlu2 %793 }
 0x42f   : > { %v821_v6 = vmul.f32 %v1401_v20, %v820_v25  ;;  %v827_v28 = vmul.f32 %v1403_v26, %v811_v21  ;;  %v806_v29 = vmul.f32 %v794_v27, %v1607_v40  ;;  %vm833_vm6 = vweird.f32 %v1403_v26 }
 0x430   : > { %vm834_vm8 = vmor %vm832_vm7, %vm833_vm6  ;;  %vm954_vm6 = vcmask 130048  }
 0x431   : > { %v828_v30 = vmul.f32 %v1403_v26, %v827_v28  ;;  %v812_v7 = vadd.f32 1e-05, %v806_v29  ;;  %v825_v31 = vsel %vm824_vm5, %v1401_v20, %v821_v6 }
 0x432   : > { %v876_v34 = vmul.f32 %v825_v31, %v1610_v42 }
 0x433   : > { %v829_v32 = vmul.f32 0.5, %v828_v30  ;;  %1404 = vrsqrt.f32 %v812_v7  ;;  %vm842_vm10 = vweird.f32 %v812_v7 }
 0x434   : > { %v883_v41 = vmul.f32 %v1653_v9, %v876_v34 }
 0x435   : > { %v830_v33 = vsub.f32 1.5, %v829_v32 }
 0x436   : > { %v797_v35 = vpop.xlane.xlu0 %796  ;;  %v1664_v45 = vadd.f32 %v1658_v12, %v883_v41 }
 0x437   : > { %v831_v10 = vmul.f32 %v1403_v26, %v830_v33  ;;  %v807_v36 = vmul.f32 %v797_v35, %v1607_v40 }
 0x439   : > { %v1405_v37 = vpop.eup %1404  ;;  %v835_v38 = vsel %vm834_vm8, %v1403_v26, %v831_v10  ;;  %v813_v39 = vadd.f32 1e-05, %v807_v36  ;;  %v951_v10 = vld [vmem:[%s1822_s4 + $0x8] sm:$0xff] }
 0x43a   : > { %v877_v13 = vmul.f32 %v835_v38, %v1616_v46  ;;  %v837_v43 = vmul.f32 %v1405_v37, %v812_v7  ;;  %vm843_vm9 = vweird.f32 %v1405_v37 }
 0x43b   : > { %1406 = vrsqrt.f32 %v813_v39  ;;  %vm844_vm11 = vmor %vm842_vm10, %vm843_vm9  ;;  %vm852_vm13 = vweird.f32 %v813_v39 }
 0x43c   : > { %v884_v42 = vmul.f32 %v1653_v9, %v877_v13  ;;  %v838_v44 = vmul.f32 %v1405_v37, %v837_v43 }
 0x43e   : > { %v1667_v47 = vadd.f32 %v1658_v12, %v884_v42  ;;  %v839_v48 = vmul.f32 0.5, %v838_v44  ;;  %v800_v49 = vpop.xlane.xlu1 %799 }
 0x43f   : > { %v808_v50 = vmul.f32 %v800_v49, %v1607_v40 }
 0x440   : > { %v840_v52 = vsub.f32 1.5, %v839_v48  ;;  %v896_v53 = vpack.c.bf16 %v1667_v47, %v1664_v45 }
 0x441   : > { %v1407_v46 = vpop.eup %1406  ;;  %v814_v54 = vadd.f32 1e-05, %v808_v50 }
 0x442   : > { %v841_v55 = vmul.f32 %v1405_v37, %v840_v52  ;;  %v847_v57 = vmul.f32 %v1407_v46, %v813_v39  ;;  %1347 = vmatmul.msk.bf16.vlgmr.msrb.gmra.mxu2 %vm279_vm1, %v896_v53  ;;  %vm853_vm12 = vweird.f32 %v1407_v46 }
 0x443   : > { %1408 = vrsqrt.f32 %v814_v54  ;;  %vm854_vm14 = vmor %vm852_vm13, %vm853_vm12  ;;  %vm862_vm0 = vweird.f32 %v814_v54 }
 0x444   : > { %v848_v58 = vmul.f32 %v1407_v46, %v847_v57  ;;  %v845_v59 = vsel %vm844_vm11, %v1405_v37, %v841_v55 }
 0x445   : > { %v878_v3 = vmul.f32 %v845_v59, %v1622_v51 }
 0x446   : > { %v849_v60 = vmul.f32 0.5, %v848_v58  ;;  %v803_v62 = vpop.xlane.xlu2 %802 }
 0x447   : > { %v809_v63 = vmul.f32 %v803_v62, %v1607_v40  ;;  %v885_v16 = vmul.f32 %v1653_v9, %v878_v3 }
 0x448   : > { %v850_v0 = vsub.f32 1.5, %v849_v60  ;;  %v953_v60 = vperm.slane %v1545_v18, 4 }
 0x449   : > { %v1409_v1 = vpop.eup %1408  ;;  %v815_v4 = vadd.f32 1e-05, %v809_v63  ;;  %v1679_v22 = vadd.f32 %v1658_v12, %v885_v16 }
 0x44a   : > { %v851_v5 = vmul.f32 %v1407_v46, %v850_v0  ;;  %v857_v8 = vmul.f32 %v1409_v1, %v814_v54  ;;  %vm863_vm15 = vweird.f32 %v1409_v1 }
 0x44b   : > { %1410 = vrsqrt.f32 %v815_v4  ;;  %vm864_vm2 = vmor %vm862_vm0, %vm863_vm15  ;;  %vm872_vm4 = vweird.f32 %v815_v4 }
 0x44c   : > { %v855_v11 = vsel %vm854_vm14, %v1407_v46, %v851_v5  ;;  %v858_v14 = vmul.f32 %v1409_v1, %v857_v8 }
 0x44d   : > { %v879_v15 = vmul.f32 %v855_v11, %v1628_v56 }
 0x44e   : > { %v859_v17 = vmul.f32 0.5, %v858_v14 }
 0x44f   : > { %v886_v19 = vmul.f32 %v1653_v9, %v879_v15 }
 0x450   : > { %v860_v20 = vsub.f32 1.5, %v859_v17 }
 0x451   : > { %v1411_v21 = vpop.eup %1410  ;;  %v1682_v51 = vadd.f32 %v1658_v12, %v886_v19 }
 0x452   : > { %v861_v23 = vmul.f32 %v1409_v1, %v860_v20  ;;  %v867_v24 = vmul.f32 %v1411_v21, %v815_v4  ;;  %vm873_vm3 = vweird.f32 %v1411_v21 }
 0x453   : > { %v897_v25 = vpack.c.bf16 %v1682_v51, %v1679_v22  ;;  %vm874_vm5 = vmor %vm872_vm4, %vm873_vm3 }
 0x454   : > { %v868_v56 = vmul.f32 %v1411_v21, %v867_v24  ;;  %v865_v26 = vsel %vm864_vm2, %v1409_v1, %v861_v23 }
 0x455   : > { %1348 = vmatmul.msk.bf16.gmra.mxu2 %vm279_vm1, %v897_v25  ;;  %v880_v28 = vmul.f32 %v865_v26, %v1634_v61  ;;  %v950_v61 = vld [vmem:[%s1822_s4] sm:$0xff] }
 0x456   : > { %v869_v27 = vmul.f32 0.5, %v868_v56 }
 0x457   : > { %v887_v31 = vmul.f32 %v1653_v9, %v880_v28 }
 0x458   : > { %v870_v6 = vsub.f32 1.5, %v869_v27 }
 0x459   : > { %v894_v33 = vadd.f32 %v1658_v12, %v887_v31 }
 0x45a   : > { %v871_v29 = vmul.f32 %v1411_v21, %v870_v6 }
 0x45c   : > { %v875_v30 = vsel %vm874_vm5, %v1411_v21, %v871_v29 }
 0x45d   : > { %v881_v7 = vmul.f32 %v875_v30, %v1640_v2  ;;  %v952_v2 = vpack.c.bf16 %v951_v10, %v950_v61 }
 0x45f   : > { %v888_v32 = vmul.f32 %v1653_v9, %v881_v7  ;;  %971 = vmatpush.bf16.msra.mxu3 %v952_v2  ;;  %v1373_v9 = vld [vmem:[%s1821_s3] ss:$0 sm:$0xff] }
 0x461   : > { %v895_v34 = vadd.f32 %v1658_v12, %v888_v32 }
 0x463   : > { %v898_v35 = vpack.c.bf16 %v895_v34, %v894_v33 }
 0x465   : > { %1349 = vmatmul.msk.bf16.gmra.mxu2 %vm279_vm1, %v898_v35 }
 0x4c5   : > { %v926_v36 = vpop.f32.mrf.mxu2 }
 0x4c6   : > { %v927_v37 = vadd.f32 %v1373_v9, %v926_v36 }
 0x4c8   : > { %v941_v12 = vmax.f32 %v927_v37, 0.0 }
 0x4cd   : > { %v928_v38 = vpop.f32.mrf.mxu2 }
 0x4ce   : > { %v929_v39 = vadd.f32 %v1373_v9, %v928_v38 }
 0x4d0   : > { %v942_v41 = vmax.f32 %v929_v39, 0.0 }
 0x4d2   : > { %v947_v13 = vpack.c.bf16 %v942_v41, %v941_v12 }
 0x4d4   : > { %1350 = vmatmul.msk.bf16.vlgmr.msra.gmra.mxu3 %vm954_vm6, %v947_v13 }
 0x4d8   : > { %v931_v43 = vpop.f32.mrf.mxu2 }
 0x4d9   : > { %v932_v42 = vadd.f32 %v1373_v9, %v931_v43 }
 0x4db   : > { %v943_v49 = vmax.f32 %v932_v42, 0.0 }
 0x4e0   : > { %v933_v44 = vpop.f32.mrf.mxu2 }
 0x4e1   : > { %v934_v48 = vadd.f32 %v1373_v9, %v933_v44 }
 0x4e3   : > { %v944_v50 = vmax.f32 %v934_v48, 0.0 }
 0x4e5   : > { %v948_v52 = vpack.c.bf16 %v944_v50, %v943_v49 }
 0x4e7   : > { %1351 = vmatmul.msk.bf16.gmra.mxu3 %vm954_vm6, %v948_v52 }
 0x4e8   : > { %v936_v53 = vpop.f32.mrf.mxu2 }
 0x4e9   : > { %v937_v46 = vadd.f32 %v1373_v9, %v936_v53 }
 0x4eb   : > { %v945_v57 = vmax.f32 %v937_v46, 0.0 }
 0x4f0   : > { %v938_v54 = vpop.f32.mrf.mxu2 }
 0x4f1   : > { %v939_v55 = vadd.f32 %v1373_v9, %v938_v54 }
 0x4f3   : > { %v946_v58 = vmax.f32 %v939_v55, 0.0 }
 0x4f5   : > { %v949_v59 = vpack.c.bf16 %v946_v58, %v945_v57 }
 0x4f7   : > { %1352 = vmatmul.msk.bf16.gmra.mxu3 %vm954_vm6, %v949_v59 }
 0x557   : > { %v973_v62 = vpop.f32.mrf.mxu3 }
 0x558   : > { %v974_v63 = vadd.f32 %v973_v62, %v953_v60 }
 0x55a   : > { %v988_v0 = vadd.f32 %v974_v63, %v1664_v45 }
 0x55c   : > { %v994_v1 = vsel %vm279_vm1, %v988_v0, 0.0 }
 0x55d   : > { %995 = vadd.xlane.f32.xlu0 %v994_v1 }
 0x55f   : > { %v975_v3 = vpop.f32.mrf.mxu3 }
 0x560   : > { %v976_v4 = vadd.f32 %v975_v3, %v953_v60 }
 0x562   : > { %v989_v5 = vadd.f32 %v976_v4, %v1667_v47 }
 0x564   : > { %v997_v8 = vsel %vm279_vm1, %v989_v5, 0.0 }
 0x565   : > { %998 = vadd.xlane.f32.xlu1 %v997_v8 }
 0x56a   : > { %v978_v11 = vpop.f32.mrf.mxu3 }
 0x56b   : > { %v979_v14 = vadd.f32 %v978_v11, %v953_v60 }
 0x56d   : > { %v990_v15 = vadd.f32 %v979_v14, %v1679_v22 }
 0x56f   : > { %v1000_v18 = vsel %vm279_vm1, %v990_v15, 0.0 }
 0x570   : > { %1001 = vadd.xlane.f32.xlu2 %v1000_v18 }
 0x572   : > { %v980_v16 = vpop.f32.mrf.mxu3 }
 0x573   : > { %v981_v17 = vadd.f32 %v980_v16, %v953_v60 }
 0x575   : > { %v991_v45 = vadd.f32 %v981_v17, %v1682_v51 }
 0x577   : > { %v1003_v19 = vsel %vm279_vm1, %v991_v45, 0.0 }
 0x578   : > { %1004 = vadd.xlane.f32.xlu0 %v1003_v19 }
 0x57a   : > { %v983_v20 = vpop.f32.mrf.mxu3 }
 0x57b   : > { %v984_v21 = vadd.f32 %v983_v20, %v953_v60 }
 0x57d   : > { %v992_v47 = vadd.f32 %v984_v21, %v894_v33 }
 0x57f   : > { %v1006_v23 = vsel %vm279_vm1, %v992_v47, 0.0 }
 0x580   : > { %1007 = vadd.xlane.f32.xlu1 %v1006_v23 }
 0x582   : > { %v985_v24 = vpop.f32.mrf.mxu3 }
 0x583   : > { %v986_v25 = vadd.f32 %v985_v24, %v953_v60 }
 0x585   : > { %v993_v56 = vadd.f32 %v986_v25, %v895_v34 }
 0x587   : > { %v1009_v22 = vsel %vm279_vm1, %v993_v56, 0.0 }
 0x588   : > { %1010 = vadd.xlane.f32.xlu2 %v1009_v22 }
 0x5d0   : > { %v996_v26 = vpop.xlane.xlu0 %995 }
 0x5d1   : > { %v1012_v27 = vmul.f32 %v996_v26, %v1607_v40 }
 0x5d3   : > { %v1718_v6 = vsub.f32 %v988_v0, %v1012_v27 }
 0x5d5   : > { %v1024_v51 = vmul.f32 %v1718_v6, %v1718_v6 }
 0x5d7   : > { %v1030_v28 = vsel %vm279_vm1, %v1024_v51, 0.0 }
 0x5d8   : > { %1031 = vadd.xlane.f32.xlu0 %v1030_v28  ;;  %v999_v29 = vpop.xlane.xlu1 %998 }
 0x5d9   : > { %v1013_v30 = vmul.f32 %v999_v29, %v1607_v40 }
 0x5db   : > { %v1724_v7 = vsub.f32 %v989_v5, %v1013_v30 }
 0x5dd   : > { %v1025_v31 = vmul.f32 %v1724_v7, %v1724_v7 }
 0x5df   : > { %v1033_v32 = vsel %vm279_vm1, %v1025_v31, 0.0 }
 0x5e0   : > { %1034 = vadd.xlane.f32.xlu1 %v1033_v32 }
 0x5e3   : > { %v1002_v33 = vpop.xlane.xlu2 %1001 }
 0x5e4   : > { %v1014_v34 = vmul.f32 %v1002_v33, %v1607_v40 }
 0x5e6   : > { %v1730_v35 = vsub.f32 %v990_v15, %v1014_v34 }
 0x5e8   : > { %v1026_v61 = vmul.f32 %v1730_v35, %v1730_v35 }
 0x5ea   : > { %v1036_v10 = vsel %vm279_vm1, %v1026_v61, 0.0 }
 0x5eb   : > { %v1005_v2 = vpop.xlane.xlu0 %1004  ;;  %1037 = vadd.xlane.f32.xlu2 %v1036_v10 }
 0x5ec   : > { %v1015_v36 = vmul.f32 %v1005_v2, %v1607_v40 }
 0x5ee   : > { %v1736_v9 = vsub.f32 %v991_v45, %v1015_v36 }
 0x5f0   : > { %v1027_v37 = vmul.f32 %v1736_v9, %v1736_v9 }
 0x5f2   : > { %v1039_v38 = vsel %vm279_vm1, %v1027_v37, 0.0 }
 0x5f3   : > { %1040 = vadd.xlane.f32.xlu0 %v1039_v38  ;;  %v1008_v39 = vpop.xlane.xlu1 %1007 }
 0x5f4   : > { %v1016_v12 = vmul.f32 %v1008_v39, %v1607_v40 }
 0x5f6   : > { %v1742_v41 = vsub.f32 %v992_v47, %v1016_v12 }
 0x5f8   : > { %v1028_v13 = vmul.f32 %v1742_v41, %v1742_v41 }
 0x5fa   : > { %v1042_v43 = vsel %vm279_vm1, %v1028_v13, 0.0  ;;  %v1428_v13 = vld [vmem:[%s1823_s5] sm:$0xff] }
 0x5fb   : > { %v1011_v42 = vpop.xlane.xlu2 %1010  ;;  %1043 = vadd.xlane.f32.xlu1 %v1042_v43  ;;  %v1126_v43 = vperm.slane %v1428_v13, 7 }
 0x5fc   : > { %v1017_v44 = vmul.f32 %v1011_v42, %v1607_v40 }
 0x5fe   : > { %v1748_v48 = vsub.f32 %v993_v56, %v1017_v44 }
 0x600   : > { %v1029_v49 = vmul.f32 %v1748_v48, %v1748_v48 }
 0x602   : > { %v1045_v50 = vsel %vm279_vm1, %v1029_v49, 0.0 }
 0x603   : > { %1046 = vadd.xlane.f32.xlu2 %v1045_v50  ;;  %v1774_v50 = vld [vmem:[%s1823_s5 + $0x8] sm:$0x7] }
 0x64b   : > { %v1032_v53 = vpop.xlane.xlu0 %1031 }
 0x64c   : > { %v1048_v54 = vmul.f32 %v1032_v53, %v1607_v40 }
 0x64e   : > { %v1054_v57 = vadd.f32 1e-05, %v1048_v54 }
 0x650   : > { %vm1066_vm11 = vweird.f32 %v1054_v57 }
 0x653   : > { %v1035_v52 = vpop.xlane.xlu1 %1034 }
 0x654   : > { %v1049_v46 = vmul.f32 %v1035_v52, %v1607_v40 }
 0x656   : > { %v1055_v55 = vadd.f32 1e-05, %v1049_v46 }
 0x658   : > { %1412 = vrsqrt.f32 %v1055_v55  ;;  %vm1076_vm9 = vweird.f32 %v1055_v55 }
 0x659   : > { %1414 = vrsqrt.f32 %v1054_v57 }
 0x65e   : > { %v1038_v58 = vpop.xlane.xlu2 %1037  ;;  %v1413_v62 = vpop.eup %1412 }
 0x65f   : > { %v1050_v59 = vmul.f32 %v1038_v58, %v1607_v40  ;;  %v1415_v63 = vpop.eup %1414  ;;  %v1071_v0 = vmul.f32 %v1413_v62, %v1055_v55  ;;  %vm1077_vm7 = vweird.f32 %v1413_v62 }
 0x660   : > { %v1061_v4 = vmul.f32 %v1415_v63, %v1054_v57  ;;  %vm1067_vm8 = vweird.f32 %v1415_v63  ;;  %vm1078_vm12 = vmor %vm1076_vm9, %vm1077_vm7 }
 0x661   : > { %v1056_v60 = vadd.f32 1e-05, %v1050_v59  ;;  %v1072_v11 = vmul.f32 %v1413_v62, %v1071_v0  ;;  %vm1759_vm14 = vmor %vm1066_vm11, %vm1067_vm8 }
 0x662   : > { %v1062_v15 = vmul.f32 %v1415_v63, %v1061_v4 }
 0x663   : > { %1416 = vrsqrt.f32 %v1056_v60  ;;  %v1073_v16 = vmul.f32 0.5, %v1072_v11  ;;  %vm1086_vm13 = vweird.f32 %v1056_v60 }
 0x664   : > { %v1063_v19 = vmul.f32 0.5, %v1062_v15 }
 0x665   : > { %v1074_v23 = vsub.f32 1.5, %v1073_v16 }
 0x666   : > { %v1041_v1 = vpop.xlane.xlu0 %1040  ;;  %v1064_v25 = vsub.f32 1.5, %v1063_v19 }
 0x667   : > { %v1051_v3 = vmul.f32 %v1041_v1, %v1607_v40  ;;  %v1075_v26 = vmul.f32 %v1413_v62, %v1074_v23 }
 0x668   : > { %v1065_v29 = vmul.f32 %v1415_v63, %v1064_v25 }
 0x669   : > { %v1417_v5 = vpop.eup %1416  ;;  %v1057_v8 = vadd.f32 1e-05, %v1051_v3  ;;  %v1079_v61 = vsel %vm1078_vm12, %v1413_v62, %v1075_v26 }
 0x66a   : > { %v1081_v14 = vmul.f32 %v1417_v5, %v1056_v60  ;;  %vm1087_vm10 = vweird.f32 %v1417_v5  ;;  %v1121_v38 = vmul.f32 %v1079_v61, %v1724_v7 }
 0x66b   : > { %1418 = vrsqrt.f32 %v1057_v8  ;;  %vm1088_vm0 = vmor %vm1086_vm13, %vm1087_vm10  ;;  %vm1096_vm2 = vweird.f32 %v1057_v8 }
 0x66c   : > { %v1082_v18 = vmul.f32 %v1417_v5, %v1081_v14  ;;  %v1128_v52 = vmul.f32 %v1126_v43, %v1121_v38 }
 0x66e   : > { %v1044_v17 = vpop.xlane.xlu1 %1043  ;;  %v1083_v20 = vmul.f32 0.5, %v1082_v18 }
 0x66f   : > { %v1052_v45 = vmul.f32 %v1044_v17, %v1607_v40 }
 0x670   : > { %v1084_v56 = vsub.f32 1.5, %v1083_v20 }
 0x671   : > { %v1419_v21 = vpop.eup %1418  ;;  %v1058_v47 = vadd.f32 1e-05, %v1052_v45 }
 0x672   : > { %v1091_v24 = vmul.f32 %v1419_v21, %v1057_v8  ;;  %v1085_v30 = vmul.f32 %v1417_v5, %v1084_v56  ;;  %vm1097_vm15 = vweird.f32 %v1419_v21  ;;  %v1444_v56 = vmov 384.0  }
 0x673   : > { %1420 = vrsqrt.f32 %v1058_v47  ;;  %vm1098_vm3 = vmor %vm1096_vm2, %vm1097_vm15  ;;  %vm1106_vm5 = vweird.f32 %v1058_v47 }
 0x674   : > { %v1092_v22 = vmul.f32 %v1419_v21, %v1091_v24  ;;  %v1089_v36 = vsel %vm1088_vm0, %v1417_v5, %v1085_v30 }
 0x675   : > { %v1122_v44 = vmul.f32 %v1089_v36, %v1730_v35 }
 0x676   : > { %v1093_v27 = vmul.f32 0.5, %v1092_v22  ;;  %v1047_v51 = vpop.xlane.xlu2 %1046 }
 0x677   : > { %v1053_v28 = vmul.f32 %v1047_v51, %v1607_v40  ;;  %v1069_v40 = vsel %vm1759_vm14, %v1415_v63, %v1065_v29  ;;  %v1129_v57 = vmul.f32 %v1126_v43, %v1122_v44 }
 0x678   : > { %v1094_v31 = vsub.f32 1.5, %v1093_v27  ;;  %v1120_v42 = vmul.f32 %v1069_v40, %v1718_v6  ;;  %v1133_v6 = vperm.slane %v1774_v50, 0 }
 0x679   : > { %v1421_v32 = vpop.eup %1420  ;;  %v1059_v33 = vadd.f32 1e-05, %v1053_v28 }
 0x67a   : > { %v1095_v10 = vmul.f32 %v1419_v21, %v1094_v31  ;;  %v1101_v2 = vmul.f32 %v1421_v32, %v1058_v47  ;;  %vm1107_vm4 = vweird.f32 %v1421_v32  ;;  %v1127_v55 = vmul.f32 %v1126_v43, %v1120_v42 }
 0x67b   : > { %1422 = vrsqrt.f32 %v1059_v33  ;;  %vm1108_vm6 = vmor %vm1106_vm5, %vm1107_vm4  ;;  %v1135_v62 = vadd.f32 %v1133_v6, %v1128_v52  ;;  %v1136_v3 = vadd.f32 %v1133_v6, %v1129_v57  ;;  %vm1116_vm8 = vweird.f32 %v1059_v33 }
 0x67c   : > { %v1102_v37 = vmul.f32 %v1421_v32, %v1101_v2  ;;  %v1099_v39 = vsel %vm1098_vm3, %v1419_v21, %v1095_v10  ;;  %v1134_v1 = vadd.f32 %v1133_v6, %v1127_v55  ;;  %1424 = vrcp.f32 %v1444_v56 }
 0x67d   : > { %v1123_v53 = vmul.f32 %v1099_v39, %v1736_v9  ;;  %v1141_v5 = vsel %vm279_vm1, %v1135_v62, 0.0  ;;  %v1143_v15 = vsel %vm279_vm1, %v1136_v3, 0.0 }
 0x67e   : > { %v1103_v12 = vmul.f32 0.5, %v1102_v37  ;;  %v1140_v14 = vsel %vm279_vm1, %v1134_v1, 0.0 }
 0x67f   : > { %v1130_v60 = vmul.f32 %v1126_v43, %v1123_v53  ;;  %v1142_v18 = vadd.f32 %v1141_v5, %v1140_v14 }
 0x680   : > { %v1104_v49 = vsub.f32 1.5, %v1103_v12 }
 0x681   : > { %v1423_v7 = vpop.eup %1422  ;;  %v1137_v9 = vadd.f32 %v1133_v6, %v1130_v60  ;;  %v1144_v45 = vadd.f32 %v1143_v15, %v1142_v18 }
 0x682   : > { %v1105_v46 = vmul.f32 %v1421_v32, %v1104_v49  ;;  %v1111_v54 = vmul.f32 %v1423_v7, %v1059_v33  ;;  %vm1117_vm7 = vweird.f32 %v1423_v7  ;;  %v1425_v22 = vpop.eup %1424 }
 0x683   : > { %vm1118_vm9 = vmor %vm1116_vm8, %vm1117_vm7  ;;  %v1145_v17 = vsel %vm279_vm1, %v1137_v9, 0.0  ;;  %v1161_v26 = vmul.f32 384.0, %v1425_v22  ;;  %vm1165_vm10 = vweird.f32 %v1425_v22 }
 0x684   : > { %v1109_v35 = vsel %vm1108_vm6, %v1421_v32, %v1105_v46  ;;  %v1112_v58 = vmul.f32 %v1423_v7, %v1111_v54  ;;  %v1146_v21 = vadd.f32 %v1145_v17, %v1144_v45  ;;  %v1238_v17 = vperm.slane %v1774_v50, 2 }
 0x685   : > { %v1124_v59 = vmul.f32 %v1109_v35, %v1742_v41  ;;  %v1162_v27 = vsub.f32 1.0, %v1161_v26 }
 0x686   : > { %v1113_v63 = vmul.f32 0.5, %v1112_v58 }
 0x687   : > { %v1131_v0 = vmul.f32 %v1126_v43, %v1124_v59  ;;  %v1163_v29 = vmul.f32 %v1425_v22, %v1162_v27 }
 0x688   : > { %v1114_v4 = vsub.f32 1.5, %v1113_v63 }
 0x689   : > { %v1138_v11 = vadd.f32 %v1133_v6, %v1131_v0  ;;  %v1164_v32 = vadd.f32 %v1425_v22, %v1163_v29 }
 0x68a   : > { %v1115_v8 = vmul.f32 %v1423_v7, %v1114_v4 }
 0x68b   : > { %v1147_v20 = vsel %vm279_vm1, %v1138_v11, 0.0  ;;  %v1166_v61 = vsel %vm1165_vm10, %v1425_v22, %v1164_v32  ;;  %v1429_v32 = vld [vmem:[%s1504_s7] sm:$0xff] }
 0x68c   : > { %v1119_v41 = vsel %vm1118_vm9, %v1423_v7, %v1115_v8  ;;  %v1148_v23 = vadd.f32 %v1147_v20, %v1146_v21 }
 0x68d   : > { %v1125_v16 = vmul.f32 %v1119_v41, %v1748_v48 }
 0x68f   : > { %v1132_v19 = vmul.f32 %v1126_v43, %v1125_v16  ;;  %v1231_v16 = vperm.slane %v1774_v50, 1 }
 0x691   : > { %v1139_v47 = vadd.f32 %v1133_v6, %v1132_v19 }
 0x693   : > { %v1149_v24 = vsel %vm279_vm1, %v1139_v47, 0.0 }
 0x694   : > { %v1150_v25 = vadd.f32 %v1149_v24, %v1148_v23 }
 0x696   : > { %1151 = vadd.xlane.f32.xlu0 %v1150_v25 }
 0x709   : > { %v1152_v51 = vpop.xlane.xlu0 %1151 }
 0x70a   : > { %v1153_v48 = vrot.slane %v1152_v51, 4 }
 0x70c   : > { %v1154_v28 = vadd.f32 %v1153_v48, %v1152_v51 }
 0x70e   : > { %v1155_v30 = vrot.slane %v1154_v28, 2 }
 0x710   : > { %v1156_v31 = vadd.f32 %v1155_v30, %v1154_v28 }
 0x712   : > { %v1157_v33 = vrot.slane %v1156_v31, 1 }
 0x714   : > { %v1158_v34 = vadd.f32 %v1157_v33, %v1156_v31 }
 0x716   : > { %1355 = vpush %v1158_v34  ;;  %v1430_v34 = vld [vmem:[%s1504_s7 + $0x8] sm:$0xff] }
 0x717   : > { %1357 = vpush %v1166_v61 }
 0x747   : > { %s1356_s29 = spop %1355 }
 0x748   : > { %s1786_s30 = spop %1357 }
 0x749   : > { %s1168_s8 = smul.f32 %s1786_s30, %s1356_s29 }
 0x74b   : > { %v1169_v10 = vstv %s1168_s8 }
 0x74c   : > { %v1170_v2 = vsub.f32 %v1134_v1, %v1169_v10  ;;  %v1171_v40 = vsub.f32 %v1135_v62, %v1169_v10  ;;  %v1172_v36 = vsub.f32 %v1136_v3, %v1169_v10  ;;  %v1173_v37 = vsub.f32 %v1137_v9, %v1169_v10 }
 0x74d   : > { %v1174_v38 = vsub.f32 %v1138_v11, %v1169_v10  ;;  %v1175_v43 = vsub.f32 %v1139_v47, %v1169_v10  ;;  %v1431_v10 = vld [vmem:[%s1504_s7 + $0x10] sm:$0xff] }
 0x74e   : > { %v1176_v39 = vmul.f32 %v1170_v2, %v1170_v2  ;;  %v1177_v12 = vmul.f32 %v1171_v40, %v1171_v40  ;;  %v1178_v13 = vmul.f32 %v1172_v36, %v1172_v36  ;;  %v1179_v42 = vmul.f32 %v1173_v37, %v1173_v37 }
 0x74f   : > { %v1180_v52 = vmul.f32 %v1174_v38, %v1174_v38  ;;  %v1181_v54 = vmul.f32 %v1175_v43, %v1175_v43 }
 0x750   : > { %v1182_v44 = vsel %vm279_vm1, %v1176_v39, 0.0  ;;  %v1183_v49 = vsel %vm279_vm1, %v1177_v12, 0.0  ;;  %v1185_v53 = vsel %vm279_vm1, %v1178_v13, 0.0  ;;  %v1187_v55 = vsel %vm279_vm1, %v1179_v42, 0.0  ;;  %v1434_v39 = vld [vmem:[%s1504_s7 + $0x28] sm:$0xff] }
 0x751   : > { %v1184_v7 = vadd.f32 %v1183_v49, %v1182_v44  ;;  %v1189_v6 = vsel %vm279_vm1, %v1180_v52, 0.0  ;;  %v1191_v58 = vsel %vm279_vm1, %v1181_v54, 0.0 }
 0x753   : > { %v1186_v46 = vadd.f32 %v1185_v53, %v1184_v7 }
 0x755   : > { %v1188_v57 = vadd.f32 %v1187_v55, %v1186_v46 }
 0x757   : > { %v1190_v35 = vadd.f32 %v1189_v6, %v1188_v57 }
 0x759   : > { %v1192_v59 = vadd.f32 %v1191_v58, %v1190_v35 }
 0x75b   : > { %1193 = vadd.xlane.f32.xlu1 %v1192_v59 }
 0x7ce   : > { %v1194_v60 = vpop.xlane.xlu1 %1193 }
 0x7cf   : > { %v1195_v62 = vrot.slane %v1194_v60, 4 }
 0x7d1   : > { %v1196_v63 = vadd.f32 %v1195_v62, %v1194_v60 }
 0x7d3   : > { %v1197_v0 = vrot.slane %v1196_v63, 2 }
 0x7d5   : > { %v1198_v1 = vadd.f32 %v1197_v0, %v1196_v63 }
 0x7d7   : > { %v1199_v3 = vrot.slane %v1198_v1, 1 }
 0x7d9   : > { %v1200_v4 = vadd.f32 %v1199_v3, %v1198_v1 }
 0x7db   : > { %1359 = vpush %v1200_v4 }
 0x80c   : > { %s1360_s9 = spop %1359 }
 0x80d   : > { %s1210_s10 = smul.f32 %s1360_s9, %s1786_s30 }
 0x80f   : > { %s1211_s11 = sadd.f32 1e-08, %s1210_s10 }
 0x811   : > { %v1212_v9 = vstv %s1211_s11 }
 0x812   : > { %1426 = vrsqrt.f32 %v1212_v9  ;;  %vm1219_vm12 = vweird.f32 %v1212_v9 }
 0x818   : > { %v1427_v5 = vpop.eup %1426 }
 0x819   : > { %v1214_v8 = vmul.f32 %v1427_v5, %v1212_v9  ;;  %vm1220_vm11 = vweird.f32 %v1427_v5 }
 0x81a   : > { %vm1221_vm13 = vmor %vm1219_vm12, %vm1220_vm11 }
 0x81b   : > { %v1215_v11 = vmul.f32 %v1427_v5, %v1214_v8 }
 0x81d   : > { %v1216_v14 = vmul.f32 0.5, %v1215_v11 }
 0x81f   : > { %v1217_v15 = vsub.f32 1.5, %v1216_v14 }
 0x821   : > { %v1218_v41 = vmul.f32 %v1427_v5, %v1217_v15 }
 0x823   : > { %v1222_v18 = vsel %vm1221_vm13, %v1427_v5, %v1218_v41 }
 0x824   : > { %1361 = vpush %v1222_v18 }
 0x855   : > { %s1362_s12 = spop %1361 }
 0x856   : > { %v1224_v45 = vstv %s1362_s12 }
 0x857   : > { %v1225_v19 = vmul.f32 %v1224_v45, %v1170_v2  ;;  %v1226_v20 = vmul.f32 %v1224_v45, %v1171_v40  ;;  %v1227_v21 = vmul.f32 %v1224_v45, %v1172_v36  ;;  %v1228_v47 = vmul.f32 %v1224_v45, %v1173_v37  ;;  %v1432_v40 = vld [vmem:[%s1504_s7 + $0x18] sm:$0xff]  ;;  %v1433_v37 = vld [vmem:[%s1504_s7 + $0x20] sm:$0xff] }
 0x858   : > { %v1229_v23 = vmul.f32 %v1224_v45, %v1174_v38  ;;  %v1230_v24 = vmul.f32 %v1224_v45, %v1175_v43 }
 0x859   : > { %v1232_v25 = vmul.f32 %v1231_v16, %v1225_v19  ;;  %v1233_v56 = vmul.f32 %v1231_v16, %v1226_v20  ;;  %v1234_v22 = vmul.f32 %v1231_v16, %v1227_v21  ;;  %v1235_v26 = vmul.f32 %v1231_v16, %v1228_v47 }
 0x85a   : > { %v1236_v27 = vmul.f32 %v1231_v16, %v1229_v23  ;;  %v1237_v51 = vmul.f32 %v1231_v16, %v1230_v24 }
 0x85b   : > { %v1239_v50 = vadd.f32 %v1238_v17, %v1232_v25  ;;  %v1240_v48 = vadd.f32 %v1238_v17, %v1233_v56  ;;  %v1241_v28 = vadd.f32 %v1238_v17, %v1234_v22  ;;  %v1242_v29 = vadd.f32 %v1238_v17, %v1235_v26 }
 0x85c   : > { %v1243_v30 = vadd.f32 %v1238_v17, %v1236_v27  ;;  %v1244_v31 = vadd.f32 %v1238_v17, %v1237_v51 }
 0x85d   : > { %v1245_v33 = vadd.f32 %v1429_v32, %v1239_v50  ;;  %v1246_v61 = vadd.f32 %v1430_v34, %v1240_v48  ;;  %v1247_v2 = vadd.f32 %v1431_v10, %v1241_v28  ;;  %v1248_v36 = vadd.f32 %v1432_v40, %v1242_v29 }
 0x85e   : > { %v1249_v38 = vadd.f32 %v1433_v37, %v1243_v30  ;;  %v1250_v12 = vadd.f32 %v1434_v39, %v1244_v31 }
 0x85f   : > { %1251 = vst.msk [vmem:[%s253_s15] sm:$0xff] %vm279_vm1, %v1245_v33 }
 0x860   : > { %1252 = vst.msk [vmem:[%s253_s15 + $0x8] sm:$0xff] %vm279_vm1, %v1246_v61 }
 0x861   : > { %1253 = vst.msk [vmem:[%s253_s15 + $0x10] sm:$0xff] %vm279_vm1, %v1247_v2 }
 0x862   : > { %1254 = vst.msk [vmem:[%s253_s15 + $0x18] sm:$0xff] %vm279_vm1, %v1248_v36 }
 0x863   : > { %1255 = vst.msk [vmem:[%s253_s15 + $0x20] sm:$0xff] %vm279_vm1, %v1249_v38 }
 0x864   : > { %1256 = vst.msk [vmem:[%s253_s15 + $0x28] sm:$0xff] %vm279_vm1, %v1250_v12 }
 0x865 PF: > { %s16_s21 = sadd.s32 1, %s1441_s21  }
 0x866   : > { %p13_p4 = scmp.ge.s32.totalorder %s16_s21, 4  }
 0x868   :  { %15 = sbr.rel (!%p13_p4) target bundleno = 1 (0x1), region = 77 }

// kernel: dpa_forward.8
= control target key start
LH: loop header
LB: loop body
LE: loop exit
PB: predicated region body
PF: predicated region fallthrough
CT: control target
= control target key end

     0   :  { %s3461_s21 = smov 0   ;;  %s5050_s0 = inlined_call_operand.vmem [shape: f32[16,6,8], index: 0, kind: input, shape index: {}]   ;;  %s5051_s1 = inlined_call_operand.vmem [shape: f32[4,8,8], index: 1, kind: input, shape index: {}]   ;;  %s5052_s2 = inlined_call_operand.vmem [shape: f32[8,16], index: 2, kind: input, shape index: {}]   ;;  %s5053_s3 = inlined_call_operand.vmem [shape: f32[1,16], index: 3, kind: input, shape index: {}]   ;;  %s5054_s4 = inlined_call_operand.vmem [shape: f32[16,8], index: 4, kind: input, shape index: {}]   ;;  %s5055_s5 = inlined_call_operand.vmem [shape: f32[11,8], index: 5, kind: input, shape index: {}]   ;;  %s5056_s6 = inlined_call_operand.vmem [shape: f32[16,6,8], index: 6, kind: output, shape index: {}]  }
   0x1 LB: > { %s3278_s22 = sadd.s32 4294967295, %s3418_s21   ;;  %p3282_p0 = scmp.ge.s32.totalorder %s3418_s21, 1  ;;  %s3418_s21 = sphi %s3461_s21, %s16_s21  }
   0x2   : > { %p213_p1 = scmp.lt.s32.totalorder %s3418_s21, 3 }
   0x4   : > { %p214_p2 = pnand %p3282_p0, %p213_p1 }
   0x6   : > { %217 = sbr.rel (%p214_p2) target bundleno = 2400 (0x960), region = 44 }
   0xb   : > { %v352_v0 = vld [vmem:[%s5051_s1] sm:$0xff]  ;;  %vm374_vm0 = vcmask 1043456   ;;  %s3283_s25 = sshll.u32 %s3278_s22, 3  ;;  %v3287_v11 = vld [vmem:[%s5051_s1 + $0x8] sm:$0xff]  ;;  %vm364_vm1 = vcmask 64512   ;;  %v3288_v43 = vld [vmem:[%s5051_s1 + $0x10] sm:$0xff] }
   0xc   : > { %v353_v1 = vpack.c.bf16 %v352_v0, %v352_v0  ;;  %p244_p3 = scmp.lt.s32.totalorder %s3283_s25, 15  ;;  %v356_v12 = vpack.c.bf16 %v3287_v11, %v3287_v11  ;;  %v3596_v39 = vld [vmem:[%s5055_s5] sm:$0xff]  ;;  %v359_v47 = vpack.c.bf16 %v3288_v43, %v3288_v43  ;;  %vm950_vm2 = vcmask 1042432  }
   0xd   : > { %v363_v40 = vperm.slane %v3596_v39, 0  ;;  %vm849_vm3 = vcmask 46080   ;;  %vm946_vm4 = vcmask 48128  }
   0xe   : > { %v376_v2 = vsel %vm374_vm0, %v353_v1, 0  ;;  %s5115_s25 = smov (!%p244_p3, %s3283_s25), 15  ;;  %v404_v15 = vsel %vm374_vm0, %v356_v12, 0  ;;  %v432_v48 = vsel %vm374_vm0, %v359_v47, 0 }
   0xf   : > { %385 = vmatpush.bf16.msra.mxu0 %v376_v2  ;;  %s3284_s26 = sshll.u32 %s5115_s25, 3  ;;  %413 = vmatpush.bf16.msra.mxu1 %v404_v15 }
  0x10   : > { %s3481_s29 = scalar_lea.vmem %s5050_s0, %s3284_s26  ;;  %441 = vmatpush.bf16.msra.mxu2 %v432_v48  ;;  %s4983_s14 = scalar_lea.vmem %s5056_s6, %s3284_s26 }
  0x11   : > { %v3484_v3 = vld [vmem:[%s3481_s29] sm:$0x3f]  ;;  %v3487_v4 = vld [vmem:[%s3481_s29 + $0x8] sm:$0x3f]  ;;  %v3490_v5 = vld [vmem:[%s3481_s29 + $0x10] sm:$0x3f] }
  0x12   : > { %5076 = vst [vmem:[#allocation2_spill] sm:$0xff] %v3490_v5  ;;  %v3493_v6 = vrot.slane %v3484_v3, 2  ;;  %v3496_v7 = vrot.slane %v3484_v3, 4  ;;  %v3499_v8 = vrot.slane %v3487_v4, 2  ;;  %v3503_v9 = vrot.slane %v3487_v4, 4 }
  0x13   : > { %304 = vst [vmem:[#allocation1] ss:$4 sm:$0xff] %v3484_v3  ;;  %v3508_v10 = vrot.slane %v3490_v5, 2  ;;  %v3518_v13 = vld [vmem:[%s3481_s29 + $0x18] sm:$0x3f]  ;;  %v3522_v14 = vrot.slane %v3490_v5, 4 }
  0x14   : > { %5077 = vst [vmem:[#allocation3_spill] sm:$0xff] %v3503_v9  ;;  %v3526_v16 = vld [vmem:[%s3481_s29 + $0x20] sm:$0x3f]  ;;  %v3529_v17 = vrot.slane %v3518_v13, 2  ;;  %v3532_v19 = vrot.slane %v3518_v13, 4 }
  0x15   : > { %310 = vst [vmem:[#allocation1 + $0x3] ss:$4 sm:$0xff] %v3487_v4  ;;  %v3536_v20 = vrot.slane %v3526_v16, 2  ;;  %v3540_v21 = vrot.slane %v3526_v16, 4  ;;  %v3545_v24 = vld [vmem:[%s3481_s29 + $0x28] sm:$0x3f] }
  0x16   : > { %306 = vst [vmem:[#allocation1 + $0x1] ss:$4 sm:$0xff] %v3493_v6  ;;  %v3554_v25 = vld [vmem:[%s3481_s29 + $0x30] sm:$0x3f]  ;;  %v3557_v26 = vrot.slane %v3545_v24, 2  ;;  %v3560_v27 = vrot.slane %v3545_v24, 4 }
  0x17   : > { %5078 = vst [vmem:[#allocation4_spill] sm:$0xff] %v3508_v10  ;;  %v3563_v29 = vld [vmem:[%s3481_s29 + $0x38] sm:$0x3f]  ;;  %v3566_v30 = vrot.slane %v3554_v25, 2  ;;  %v3569_v31 = vrot.slane %v3554_v25, 4 }
  0x18   : > { %308 = vst [vmem:[#allocation1 + $0x2] ss:$4 sm:$0xff] %v3496_v7  ;;  %v3574_v32 = vrot.slane %v3563_v29, 2  ;;  %v3578_v34 = vrot.slane %v3563_v29, 4 }
  0x19   : > { %312 = vst [vmem:[#allocation1 + $0x20] ss:$4 sm:$0xff] %v3499_v8 }
  0x1a   : > { %314 = vst [vmem:[#allocation1 + $0x21] ss:$4 sm:$0xff] %v3503_v9 }
  0x1b   : > { %316 = vst [vmem:[#allocation1 + $0x22] ss:$4 sm:$0xff] %v3490_v5 }
  0x1c   : > { %5079 = vst [vmem:[#allocation5_spill] sm:$0xff] %v3518_v13 }
  0x1d   : > { %318 = vst [vmem:[#allocation1 + $0x23] ss:$4 sm:$0xff] %v3508_v10 }
  0x1e   : > { %5080 = vst [vmem:[#allocation6_spill] sm:$0xff] %v3522_v14 }
  0x1f   : > { %5081 = vst [vmem:[#allocation7_spill] sm:$0xff] %v3526_v16  ;;  %v319_v18 = vld.sshfl [vmem:[#allocation1] sm:$0xff pattern:$0x73625140] }
  0x20   : > { %5082 = vst [vmem:[#allocation8_spill] sm:$0xff] %v3529_v17 }
  0x21   : > { %5083 = vst [vmem:[#allocation9_spill] sm:$0xff] %v3532_v19 }
  0x22   : > { %321 = vst [vmem:[#allocation1] ss:$4 sm:$0xff] %v3522_v14 }
  0x23   : > { %5084 = vst [vmem:[#allocation10_spill] sm:$0xff] %v3536_v20 }
  0x24   : > { %322 = vst [vmem:[#allocation1 + $0x1] ss:$4 sm:$0xff] %v3518_v13  ;;  %v320_v22 = vld.sshfl [vmem:[#allocation1 + $0x20] sm:$0xff pattern:$0x73625140] }
  0x25   : > { %5085 = vst [vmem:[#allocation11_spill] sm:$0xff] %v3540_v21  ;;  %v347_v23 = vpack.c.bf16 %v320_v22, %v319_v18 }
  0x26   : > { %323 = vst [vmem:[#allocation1 + $0x2] ss:$4 sm:$0xff] %v3529_v17 }
  0x27   : > { %324 = vst [vmem:[#allocation1 + $0x3] ss:$4 sm:$0xff] %v3532_v19  ;;  %3290 = vmatmul.msk.bf16.vlgmr.msra.gmra.mxu0 %vm364_vm1, %v347_v23  ;;  %3293 = vmatmul.msk.bf16.vlgmr.msra.gmra.mxu1 %vm364_vm1, %v347_v23 }
  0x28   : > { %5086 = vst [vmem:[#allocation12_spill] sm:$0xff] %v3545_v24  ;;  %3296 = vmatmul.msk.bf16.vlgmr.msra.gmra.mxu2 %vm364_vm1, %v347_v23 }
  0x29   : > { %325 = vst [vmem:[#allocation1 + $0x20] ss:$4 sm:$0xff] %v3526_v16 }
  0x2a   : > { %326 = vst [vmem:[#allocation1 + $0x21] ss:$4 sm:$0xff] %v3536_v20 }
  0x2b   : > { %327 = vst [vmem:[#allocation1 + $0x22] ss:$4 sm:$0xff] %v3540_v21 }
  0x2c   : > { %328 = vst [vmem:[#allocation1 + $0x23] ss:$4 sm:$0xff] %v3545_v24 }
  0x2d   : > { %5087 = vst [vmem:[#allocation13_spill] sm:$0xff] %v3554_v25 }
  0x2e   : > { %5088 = vst [vmem:[#allocation14_spill] sm:$0xff] %v3557_v26  ;;  %v329_v28 = vld.sshfl [vmem:[#allocation1] sm:$0xff pattern:$0x73625140] }
  0x2f   : > { %5089 = vst [vmem:[#allocation15_spill] sm:$0xff] %v3560_v27 }
  0x30   : > { %5090 = vst [vmem:[#allocation16_spill] sm:$0xff] %v3563_v29 }
  0x31   : > { %5091 = vst [vmem:[#allocation17_spill] sm:$0xff] %v3566_v30 }
  0x32   : > { %5092 = vst [vmem:[#allocation18_spill] sm:$0xff] %v3569_v31 }
  0x33   : > { %331 = vst [vmem:[#allocation1] ss:$4 sm:$0xff] %v3557_v26  ;;  %v330_v33 = vld.sshfl [vmem:[#allocation1 + $0x20] sm:$0xff pattern:$0x73625140] }
  0x34   : > { %332 = vst [vmem:[#allocation1 + $0x1] ss:$4 sm:$0xff] %v3560_v27  ;;  %v348_v35 = vpack.c.bf16 %v330_v33, %v329_v28 }
  0x35   : > { %5093 = vst [vmem:[#allocation19_spill] sm:$0xff] %v3574_v32 }
  0x36   : > { %333 = vst [vmem:[#allocation1 + $0x2] ss:$4 sm:$0xff] %v3554_v25 }
  0x37   : > { %5094 = vst [vmem:[#allocation20_spill] sm:$0xff] %v3578_v34  ;;  %3291 = vmatmul.msk.bf16.gmra.mxu0 %vm364_vm1, %v348_v35  ;;  %3294 = vmatmul.msk.bf16.gmra.mxu1 %vm364_vm1, %v348_v35 }
  0x38   : > { %334 = vst [vmem:[#allocation1 + $0x3] ss:$4 sm:$0xff] %v3566_v30  ;;  %3297 = vmatmul.msk.bf16.gmra.mxu2 %vm364_vm1, %v348_v35 }
  0x39   : > { %335 = vst [vmem:[#allocation1 + $0x20] ss:$4 sm:$0xff] %v3569_v31 }
  0x3a   : > { %336 = vst [vmem:[#allocation1 + $0x21] ss:$4 sm:$0xff] %v3563_v29 }
  0x3b   : > { %337 = vst [vmem:[#allocation1 + $0x22] ss:$4 sm:$0xff] %v3574_v32 }
  0x3c   : > { %338 = vst [vmem:[#allocation1 + $0x23] ss:$4 sm:$0xff] %v3578_v34 }
  0x3f   : > { %v339_v36 = vld.sshfl [vmem:[#allocation1] sm:$0xff pattern:$0x73625140] }
  0x43   : > { %v340_v37 = vld.sshfl [vmem:[#allocation1 + $0x20] sm:$0xff pattern:$0x73625140] }
  0x44   : > { %v3587_v38 = vpack.c.bf16 %v340_v37, %v339_v36 }
  0x47   : > { %3292 = vmatmul.msk.bf16.gmra.mxu0 %vm364_vm1, %v3587_v38  ;;  %3295 = vmatmul.msk.bf16.gmra.mxu1 %vm364_vm1, %v3587_v38 }
  0x48   : > { %3298 = vmatmul.msk.bf16.gmra.mxu2 %vm364_vm1, %v3587_v38 }
  0xa4   : > { %v387_v41 = vpop.f32.mrf.mxu0  ;;  %v415_v0 = vpop.f32.mrf.mxu1 }
  0xa5   : > { %v388_v42 = vadd.f32 %v387_v41, %v363_v40  ;;  %v3618_v41 = vperm.slane %v3596_v39, 1 }
  0xa7   : > { %v464_v44 = vrot.slane %v388_v42, 2  ;;  %v465_v45 = vrot.slane %v388_v42, 4  ;;  %v466_v46 = vrot.slane %v388_v42, 6  ;;  %482 = vst [vmem:[#allocation1] ss:$4 sm:$0xff] %v388_v42 }
  0xa9   : > { %484 = vst [vmem:[#allocation1 + $0x1] ss:$4 sm:$0xff] %v464_v44 }
  0xaa   : > { %486 = vst [vmem:[#allocation1 + $0x2] ss:$4 sm:$0xff] %v465_v45 }
  0xab   : > { %489 = vst [vmem:[#allocation1 + $0x20] ss:$4 sm:$0xff] %v466_v46  ;;  %v416_v46 = vadd.f32 %v415_v0, %v3618_v41 }
  0xac   : > { %v389_v49 = vpop.f32.mrf.mxu0  ;;  %v417_v33 = vpop.f32.mrf.mxu1 }
  0xad   : > { %v390_v50 = vadd.f32 %v389_v49, %v363_v40  ;;  %v541_v48 = vrot.slane %v416_v46, 2  ;;  %v542_v49 = vrot.slane %v416_v46, 4  ;;  %v418_v38 = vadd.f32 %v417_v33, %v3618_v41 }
  0xaf   : > { %v467_v51 = vrot.slane %v390_v50, 2  ;;  %v468_v52 = vrot.slane %v390_v50, 4  ;;  %v469_v53 = vrot.slane %v390_v50, 6  ;;  %491 = vst [vmem:[#allocation1 + $0x21] ss:$4 sm:$0xff] %v390_v50  ;;  %v543_v50 = vrot.slane %v416_v46, 6 }
  0xb1   : > { %v3604_v54 = vld.sshfl [vmem:[#allocation1] sm:$0xff pattern:$0x73625140]  ;;  %493 = vst [vmem:[#allocation1 + $0x22] ss:$4 sm:$0xff] %v467_v51 }
  0xb2   : > { %495 = vst [vmem:[#allocation1] ss:$4 sm:$0xff] %v468_v52  ;;  %v544_v52 = vrot.slane %v418_v38, 2 }
  0xb3   : > { %496 = vst [vmem:[#allocation1 + $0x1] ss:$4 sm:$0xff] %v469_v53 }
  0xb4   : > { %v392_v55 = vpop.f32.mrf.mxu0  ;;  %v420_v47 = vpop.f32.mrf.mxu1 }
  0xb5   : > { %v393_v56 = vadd.f32 %v392_v55, %v363_v40  ;;  %v421_v55 = vadd.f32 %v420_v47, %v3618_v41 }
  0xb7   : > { %v470_v57 = vrot.slane %v393_v56, 2  ;;  %v471_v58 = vrot.slane %v393_v56, 4  ;;  %v472_v59 = vrot.slane %v393_v56, 6  ;;  %497 = vst [vmem:[#allocation1 + $0x2] ss:$4 sm:$0xff] %v393_v56  ;;  %v545_v56 = vrot.slane %v418_v38, 4 }
  0xb8   : > { %v3606_v60 = vld.sshfl [vmem:[#allocation1 + $0x20] sm:$0xff pattern:$0x73625140]  ;;  %v549_v0 = vrot.slane %v421_v55, 6 }
  0xb9   : > { %499 = vst [vmem:[#allocation1 + $0x20] ss:$4 sm:$0xff] %v470_v57  ;;  %v546_v57 = vrot.slane %v418_v38, 6  ;;  %v528_v47 = vpack.c.bf16 %v3606_v60, %v3606_v60 }
  0xba   : > { %500 = vst [vmem:[#allocation1 + $0x21] ss:$4 sm:$0xff] %v471_v58 }
  0xbb   : > { %501 = vst [vmem:[#allocation1 + $0x22] ss:$4 sm:$0xff] %v472_v59  ;;  %v547_v59 = vrot.slane %v421_v55, 2 }
  0xbc   : > { %v394_v61 = vpop.f32.mrf.mxu0  ;;  %v422_v53 = vpop.f32.mrf.mxu1 }
  0xbd   : > { %v395_v62 = vadd.f32 %v394_v61, %v363_v40 }
  0xbe   : > { %v3609_v63 = vld.sshfl [vmem:[#allocation1] sm:$0xff pattern:$0x73625140] }
  0xbf   : > { %v473_v1 = vrot.slane %v395_v62, 2  ;;  %v474_v2 = vrot.slane %v395_v62, 4  ;;  %v475_v11 = vrot.slane %v395_v62, 6  ;;  %503 = vst [vmem:[#allocation1] ss:$4 sm:$0xff] %v395_v62  ;;  %v548_v62 = vrot.slane %v421_v55, 4 }
  0xc1   : > { %504 = vst [vmem:[#allocation1 + $0x1] ss:$4 sm:$0xff] %v473_v1 }
  0xc2   : > { %v3611_v12 = vld.sshfl [vmem:[#allocation1 + $0x20] sm:$0xff pattern:$0x73625140]  ;;  %505 = vst [vmem:[#allocation1 + $0x2] ss:$4 sm:$0xff] %v474_v2 }
  0xc3   : > { %507 = vst [vmem:[#allocation1 + $0x20] ss:$4 sm:$0xff] %v475_v11  ;;  %v423_v11 = vadd.f32 %v422_v53, %v3618_v41 }
  0xc4   : > { %v397_v15 = vpop.f32.mrf.mxu0 }
  0xc5   : > { %v398_v18 = vadd.f32 %v397_v15, %v363_v40 }
  0xc7   : > { %v476_v22 = vrot.slane %v398_v18, 2  ;;  %v477_v23 = vrot.slane %v398_v18, 4  ;;  %v478_v28 = vrot.slane %v398_v18, 6  ;;  %508 = vst [vmem:[#allocation1 + $0x21] ss:$4 sm:$0xff] %v398_v18  ;;  %v425_v18 = vpop.f32.mrf.mxu1 }
  0xc8   : > { %v426_v33 = vadd.f32 %v425_v18, %v3618_v41 }
  0xc9   : > { %v3613_v35 = vld.sshfl [vmem:[#allocation1] sm:$0xff pattern:$0x73625140]  ;;  %509 = vst [vmem:[#allocation1 + $0x22] ss:$4 sm:$0xff] %v476_v22 }
  0xca   : > { %511 = vst [vmem:[#allocation1] ss:$4 sm:$0xff] %v477_v23  ;;  %v550_v23 = vrot.slane %v423_v11, 2  ;;  %v555_v53 = vrot.slane %v426_v33, 6 }
  0xcb   : > { %512 = vst [vmem:[#allocation1 + $0x1] ss:$4 sm:$0xff] %v478_v28  ;;  %v551_v28 = vrot.slane %v423_v11, 4 }
  0xcc   : > { %v399_v36 = vpop.f32.mrf.mxu0 }
  0xcd   : > { %v400_v37 = vadd.f32 %v399_v36, %v363_v40  ;;  %v527_v36 = vpack.c.bf16 %v3604_v54, %v3604_v54 }
  0xcf   : > { %v479_v42 = vrot.slane %v400_v37, 2  ;;  %v480_v43 = vrot.slane %v400_v37, 4  ;;  %v481_v44 = vrot.slane %v400_v37, 6  ;;  %513 = vst [vmem:[#allocation1 + $0x2] ss:$4 sm:$0xff] %v400_v37 }
  0xd0   : > { %v3620_v45 = vld.sshfl [vmem:[#allocation1 + $0x20] sm:$0xff pattern:$0x73625140] }
  0xd1   : > { %515 = vst [vmem:[#allocation1 + $0x20] ss:$4 sm:$0xff] %v479_v42  ;;  %v552_v42 = vrot.slane %v423_v11, 6  ;;  %v532_v18 = vpack.c.bf16 %v3620_v45, %v3620_v45  ;;  %v430_v45 = vperm.slane %v3596_v39, 2 }
  0xd2   : > { %516 = vst [vmem:[#allocation1 + $0x21] ss:$4 sm:$0xff] %v480_v43 }
  0xd3   : > { %517 = vst [vmem:[#allocation1 + $0x22] ss:$4 sm:$0xff] %v481_v44  ;;  %v553_v44 = vrot.slane %v426_v33, 2 }
  0xd6   : > { %v3623_v40 = vld.sshfl [vmem:[#allocation1] sm:$0xff pattern:$0x73625140] }
  0xd7   : > { %559 = vst [vmem:[#allocation1] ss:$4 sm:$0xff] %v416_v46 }
  0xd8   : > { %561 = vst [vmem:[#allocation1 + $0x1] ss:$4 sm:$0xff] %v541_v48 }
  0xd9   : > { %563 = vst [vmem:[#allocation1 + $0x2] ss:$4 sm:$0xff] %v542_v49  ;;  %v427_v49 = vpop.f32.mrf.mxu1 }
  0xda   : > { %v3626_v51 = vld.sshfl [vmem:[#allocation1 + $0x20] sm:$0xff pattern:$0x73625140] }
  0xdb   : > { %566 = vst [vmem:[#allocation1 + $0x20] ss:$4 sm:$0xff] %v543_v50  ;;  %v428_v50 = vadd.f32 %v427_v49, %v3618_v41  ;;  %v530_v41 = vpack.c.bf16 %v3611_v12, %v3611_v12 }
  0xdc   : > { %568 = vst [vmem:[#allocation1 + $0x21] ss:$4 sm:$0xff] %v418_v38  ;;  %v554_v38 = vrot.slane %v426_v33, 4 }
  0xdd   : > { %570 = vst [vmem:[#allocation1 + $0x22] ss:$4 sm:$0xff] %v544_v52 }
  0xe0   : > { %v564_v58 = vld.sshfl [vmem:[#allocation1] sm:$0xff pattern:$0x73625140] }
  0xe1   : > { %572 = vst [vmem:[#allocation1] ss:$4 sm:$0xff] %v545_v56  ;;  %v604_v61 = vpack.c.bf16 %v564_v58, %v564_v58  ;;  %v556_v56 = vrot.slane %v428_v50, 2  ;;  %v558_v58 = vrot.slane %v428_v50, 6 }
  0xe2   : > { %573 = vst [vmem:[#allocation1 + $0x1] ss:$4 sm:$0xff] %v546_v57  ;;  %v557_v57 = vrot.slane %v428_v50, 4 }
  0xe3   : > { %574 = vst [vmem:[#allocation1 + $0x2] ss:$4 sm:$0xff] %v421_v55  ;;  %v693_v1 = vsel %vm364_vm1, %v604_v61, 0 }
  0xe4   : > { %v571_v2 = vld.sshfl [vmem:[#allocation1 + $0x20] sm:$0xff pattern:$0x73625140]  ;;  %702 = vmatpush.bf16.xpose.msrb.mxu0 %v693_v1  ;;  %v531_v1 = vpack.c.bf16 %v3613_v35, %v3613_v35 }
  0xe5   : > { %576 = vst [vmem:[#allocation1 + $0x20] ss:$4 sm:$0xff] %v547_v59  ;;  %v605_v15 = vpack.c.bf16 %v571_v2, %v571_v2  ;;  %v529_v2 = vpack.c.bf16 %v3609_v63, %v3609_v63  ;;  %v534_v63 = vpack.c.bf16 %v3626_v51, %v3626_v51 }
  0xe6   : > { %577 = vst [vmem:[#allocation1 + $0x21] ss:$4 sm:$0xff] %v548_v62 }
  0xe7   : > { %578 = vst [vmem:[#allocation1 + $0x22] ss:$4 sm:$0xff] %v549_v0  ;;  %v712_v22 = vsel %vm364_vm1, %v605_v15, 0 }
  0xe8   : > { %721 = vmatpush.bf16.xpose.msra.mxu3 %v712_v22 }
  0xea   : > { %v575_v37 = vld.sshfl [vmem:[#allocation1] sm:$0xff pattern:$0x73625140] }
  0xeb   : > { %580 = vst [vmem:[#allocation1] ss:$4 sm:$0xff] %v423_v11  ;;  %3299 = vmatmul.msk.bf16.vlgmr.msrb.gmra.mxu0 %vm364_vm1, %v527_v36  ;;  %v606_v43 = vpack.c.bf16 %v575_v37, %v575_v37 }
  0xec   : > { %581 = vst [vmem:[#allocation1 + $0x1] ss:$4 sm:$0xff] %v550_v23 }
  0xed   : > { %582 = vst [vmem:[#allocation1 + $0x2] ss:$4 sm:$0xff] %v551_v28  ;;  %v731_v46 = vsel %vm364_vm1, %v606_v43, 0  ;;  %v533_v28 = vpack.c.bf16 %v3623_v40, %v3623_v40 }
  0xee   : > { %v579_v48 = vld.sshfl [vmem:[#allocation1 + $0x20] sm:$0xff pattern:$0x73625140] }
  0xef   : > { %584 = vst [vmem:[#allocation1 + $0x20] ss:$4 sm:$0xff] %v552_v42  ;;  %3300 = vmatmul.msk.bf16.vlgmr.msra.gmra.mxu3 %vm364_vm1, %v528_v47  ;;  %v607_v54 = vpack.c.bf16 %v579_v48, %v579_v48 }
  0xf0   : > { %740 = vmatpush.bf16.xpose.msrb.mxu3 %v731_v46  ;;  %585 = vst [vmem:[#allocation1 + $0x21] ss:$4 sm:$0xff] %v426_v33  ;;  %v443_v33 = vpop.f32.mrf.mxu2 }
  0xf1   : > { %586 = vst [vmem:[#allocation1 + $0x22] ss:$4 sm:$0xff] %v553_v44  ;;  %v750_v52 = vsel %vm364_vm1, %v607_v54, 0  ;;  %v444_v36 = vadd.f32 %v443_v33, %v430_v45 }
  0xf2   : > { %759 = vmatpush.bf16.xpose.msra.mxu0 %v750_v52 }
  0xf3   : > { %v618_v37 = vrot.slane %v444_v36, 2  ;;  %v619_v42 = vrot.slane %v444_v36, 4  ;;  %v620_v43 = vrot.slane %v444_v36, 6 }
  0xf4   : > { %v583_v55 = vld.sshfl [vmem:[#allocation1] sm:$0xff pattern:$0x73625140] }
  0xf5   : > { %588 = vst [vmem:[#allocation1] ss:$4 sm:$0xff] %v554_v38  ;;  %v608_v60 = vpack.c.bf16 %v583_v55, %v583_v55 }
  0xf6   : > { %589 = vst [vmem:[#allocation1 + $0x1] ss:$4 sm:$0xff] %v555_v53 }
  0xf7   : > { %590 = vst [vmem:[#allocation1 + $0x2] ss:$4 sm:$0xff] %v428_v50  ;;  %v769_v59 = vsel %vm364_vm1, %v608_v60, 0 }
  0xf8   : > { %v587_v61 = vld.sshfl [vmem:[#allocation1 + $0x20] sm:$0xff pattern:$0x73625140]  ;;  %778 = vmatpush.bf16.xpose.msrb.mxu1 %v769_v59  ;;  %v445_v44 = vpop.f32.mrf.mxu2 }
  0xf9   : > { %592 = vst [vmem:[#allocation1 + $0x20] ss:$4 sm:$0xff] %v556_v56  ;;  %v609_v62 = vpack.c.bf16 %v587_v61, %v587_v61  ;;  %v446_v51 = vadd.f32 %v445_v44, %v430_v45 }
  0xfa   : > { %593 = vst [vmem:[#allocation1 + $0x21] ss:$4 sm:$0xff] %v557_v57 }
  0xfb   : > { %594 = vst [vmem:[#allocation1 + $0x22] ss:$4 sm:$0xff] %v558_v58  ;;  %v788_v0 = vsel %vm364_vm1, %v609_v62, 0  ;;  %3302 = vmatmul.msk.bf16.vlgmr.msra.gmra.mxu0 %vm364_vm1, %v530_v41  ;;  %v621_v46 = vrot.slane %v446_v51, 2  ;;  %v622_v47 = vrot.slane %v446_v51, 4  ;;  %v623_v48 = vrot.slane %v446_v51, 6 }
  0xfc   : > { %797 = vmatpush.bf16.xpose.msrb.mxu2 %v788_v0 }
  0xfe   : > { %v591_v11 = vld.sshfl [vmem:[#allocation1] sm:$0xff pattern:$0x73625140] }
  0xff   : > { %3303 = vmatmul.msk.bf16.vlgmr.msrb.gmra.mxu1 %vm364_vm1, %v531_v1  ;;  %v610_v15 = vpack.c.bf16 %v591_v11, %v591_v11  ;;  %3301 = vmatmul.msk.bf16.vlgmr.msrb.gmra.mxu3 %vm364_vm1, %v529_v2  ;;  %636 = vst [vmem:[#allocation1] ss:$4 sm:$0xff] %v444_v36 }
 0x100   : > { %638 = vst [vmem:[#allocation1 + $0x1] ss:$4 sm:$0xff] %v618_v37  ;;  %v448_v49 = vpop.f32.mrf.mxu2 }
 0x101   : > { %v807_v12 = vsel %vm364_vm1, %v610_v15, 0  ;;  %640 = vst [vmem:[#allocation1 + $0x2] ss:$4 sm:$0xff] %v619_v42  ;;  %v449_v54 = vadd.f32 %v448_v49, %v430_v45 }
 0x102   : > { %v595_v22 = vld.sshfl [vmem:[#allocation1 + $0x20] sm:$0xff pattern:$0x73625140]  ;;  %816 = vmatpush.bf16.xpose.msra.mxu3 %v807_v12 }
 0x103   : > { %3304 = vmatmul.msk.bf16.vlgmr.msrb.gmra.mxu2 %vm364_vm1, %v532_v18  ;;  %v611_v23 = vpack.c.bf16 %v595_v22, %v595_v22  ;;  %643 = vst [vmem:[#allocation1 + $0x20] ss:$4 sm:$0xff] %v620_v43  ;;  %v624_v38 = vrot.slane %v449_v54, 2  ;;  %v625_v50 = vrot.slane %v449_v54, 4  ;;  %v626_v52 = vrot.slane %v449_v54, 6 }
 0x104   : > { %645 = vst [vmem:[#allocation1 + $0x21] ss:$4 sm:$0xff] %v446_v51 }
 0x105   : > { %v826_v35 = vsel %vm364_vm1, %v611_v23, 0  ;;  %647 = vst [vmem:[#allocation1 + $0x22] ss:$4 sm:$0xff] %v621_v46 }
 0x106   : > { %835 = vmatpush.bf16.xpose.msrb.mxu0 %v826_v35 }
 0x108   : > { %v641_v40 = vld.sshfl [vmem:[#allocation1] sm:$0xff pattern:$0x73625140]  ;;  %v450_v55 = vpop.f32.mrf.mxu2 }
 0x109   : > { %649 = vst [vmem:[#allocation1] ss:$4 sm:$0xff] %v622_v47  ;;  %v451_v56 = vadd.f32 %v450_v55, %v430_v45  ;;  %v681_v11 = vpack.c.bf16 %v641_v40, %v641_v40 }
 0x10a   : > { %650 = vst [vmem:[#allocation1 + $0x1] ss:$4 sm:$0xff] %v623_v48 }
 0x10b   : > { %651 = vst [vmem:[#allocation1 + $0x2] ss:$4 sm:$0xff] %v449_v54  ;;  %v627_v57 = vrot.slane %v451_v56, 2  ;;  %v628_v58 = vrot.slane %v451_v56, 4  ;;  %v629_v59 = vrot.slane %v451_v56, 6  ;;  %v952_v18 = vsel %vm950_vm2, %v681_v11, 0 }
 0x10c   : > { %v648_v53 = vld.sshfl [vmem:[#allocation1 + $0x20] sm:$0xff pattern:$0x73625140]  ;;  %961 = vmatpush.bf16.msra.mxu1 %v952_v18 }
 0x10d   : > { %3306 = vmatmul.msk.bf16.vlgmr.msrb.gmra.mxu0 %vm364_vm1, %v534_v63  ;;  %653 = vst [vmem:[#allocation1 + $0x20] ss:$4 sm:$0xff] %v624_v38  ;;  %v682_v15 = vpack.c.bf16 %v648_v53, %v648_v53 }
 0x10e   : > { %654 = vst [vmem:[#allocation1 + $0x21] ss:$4 sm:$0xff] %v625_v50 }
 0x10f   : > { %3305 = vmatmul.msk.bf16.vlgmr.msra.gmra.mxu3 %vm364_vm1, %v533_v28  ;;  %655 = vst [vmem:[#allocation1 + $0x22] ss:$4 sm:$0xff] %v626_v52  ;;  %v971_v23 = vsel %vm950_vm2, %v682_v15, 0 }
 0x110   : > { %v453_v62 = vpop.f32.mrf.mxu2  ;;  %980 = vmatpush.bf16.msra.mxu2 %v971_v23 }
 0x111   : > { %v454_v41 = vadd.f32 %v453_v62, %v430_v45 }
 0x112   : > { %v652_v60 = vld.sshfl [vmem:[#allocation1] sm:$0xff pattern:$0x73625140] }
 0x113   : > { %657 = vst [vmem:[#allocation1] ss:$4 sm:$0xff] %v451_v56  ;;  %v630_v0 = vrot.slane %v454_v41, 2  ;;  %v631_v1 = vrot.slane %v454_v41, 4  ;;  %v632_v2 = vrot.slane %v454_v41, 6  ;;  %v683_v22 = vpack.c.bf16 %v652_v60, %v652_v60 }
 0x114   : > { %658 = vst [vmem:[#allocation1 + $0x1] ss:$4 sm:$0xff] %v627_v57 }
 0x115   : > { %659 = vst [vmem:[#allocation1 + $0x2] ss:$4 sm:$0xff] %v628_v58  ;;  %v990_v35 = vsel %vm950_vm2, %v683_v22, 0 }
 0x116   : > { %v656_v61 = vld.sshfl [vmem:[#allocation1 + $0x20] sm:$0xff pattern:$0x73625140]  ;;  %999 = vmatpush.bf16.msrb.mxu3 %v990_v35 }
 0x117   : > { %661 = vst [vmem:[#allocation1 + $0x20] ss:$4 sm:$0xff] %v629_v59  ;;  %v684_v51 = vpack.c.bf16 %v656_v61, %v656_v61 }
 0x118   : > { %662 = vst [vmem:[#allocation1 + $0x21] ss:$4 sm:$0xff] %v454_v41  ;;  %v455_v63 = vpop.f32.mrf.mxu2 }
 0x119   : > { %663 = vst [vmem:[#allocation1 + $0x22] ss:$4 sm:$0xff] %v630_v0  ;;  %v456_v28 = vadd.f32 %v455_v63, %v430_v45  ;;  %v1009_v47 = vsel %vm950_vm2, %v684_v51, 0 }
 0x11a   : > { %1018 = vmatpush.bf16.msra.mxu0 %v1009_v47 }
 0x11b   : > { %v633_v33 = vrot.slane %v456_v28, 2  ;;  %v634_v36 = vrot.slane %v456_v28, 4  ;;  %v635_v37 = vrot.slane %v456_v28, 6 }
 0x11c   : > { %v660_v12 = vld.sshfl [vmem:[#allocation1] sm:$0xff pattern:$0x73625140] }
 0x11d   : > { %665 = vst [vmem:[#allocation1] ss:$4 sm:$0xff] %v631_v1  ;;  %v685_v43 = vpack.c.bf16 %v660_v12, %v660_v12 }
 0x11e   : > { %666 = vst [vmem:[#allocation1 + $0x1] ss:$4 sm:$0xff] %v632_v2 }
 0x11f   : > { %667 = vst [vmem:[#allocation1 + $0x2] ss:$4 sm:$0xff] %v456_v28  ;;  %v1028_v44 = vsel %vm950_vm2, %v685_v43, 0 }
 0x120   : > { %v664_v42 = vld.sshfl [vmem:[#allocation1 + $0x20] sm:$0xff pattern:$0x73625140]  ;;  %1037 = vmatpush.bf16.msrb.mxu1 %v1028_v44 }
 0x121   : > { %669 = vst [vmem:[#allocation1 + $0x20] ss:$4 sm:$0xff] %v633_v33  ;;  %v686_v46 = vpack.c.bf16 %v664_v42, %v664_v42 }
 0x122   : > { %670 = vst [vmem:[#allocation1 + $0x21] ss:$4 sm:$0xff] %v634_v36 }
 0x123   : > { %671 = vst [vmem:[#allocation1 + $0x22] ss:$4 sm:$0xff] %v635_v37  ;;  %v1047_v48 = vsel %vm950_vm2, %v686_v46, 0 }
 0x124   : > { %1056 = vmatpush.bf16.msrb.mxu2 %v1047_v48 }
 0x126   : > { %v668_v38 = vld.sshfl [vmem:[#allocation1] sm:$0xff pattern:$0x73625140] }
 0x127   : > { %v687_v55 = vpack.c.bf16 %v668_v38, %v668_v38 }
 0x129   : > { %v1066_v60 = vsel %vm950_vm2, %v687_v55, 0 }
 0x12a   : > { %v672_v52 = vld.sshfl [vmem:[#allocation1 + $0x20] sm:$0xff pattern:$0x73625140]  ;;  %1075 = vmatpush.bf16.msra.mxu3 %v1066_v60 }
 0x12b   : > { %v688_v57 = vpack.c.bf16 %v672_v52, %v672_v52 }
 0x12d   : > { %v1085_v58 = vsel %vm950_vm2, %v688_v57, 0 }
 0x12e   : > { %1094 = vmatpush.bf16.msrb.mxu0 %v1085_v58 }
 0x168   : > { %v704_v40 = vpop.f32.mrf.mxu0 }
 0x169   : > { %v841_v45 = vmul.f32 0.35355338, %v704_v40 }
 0x16b   : > { %v850_v49 = vsel %vm849_vm3, %v841_v45, -inf }
 0x16c   : > { %851 = vmax.xlane.f32.xlu1 %v850_v49 }
 0x170   : > { %v706_v54 = vpop.f32.mrf.mxu0 }
 0x172   : > { %v723_v50 = vpop.f32.mrf.mxu3 }
 0x173   : > { %v842_v53 = vmul.f32 0.35355338, %v723_v50 }
 0x175   : > { %v853_v56 = vsel %vm849_vm3, %v842_v53, -inf }
 0x176   : > { %854 = vmax.xlane.f32.xlu0 %v853_v56 }
 0x178   : > { %v761_v59 = vpop.f32.mrf.mxu0 }
 0x179   : > { %v844_v61 = vmul.f32 0.35355338, %v761_v59 }
 0x17a   : > { %v725_v62 = vpop.f32.mrf.mxu3 }
 0x17b   : > { %v859_v41 = vsel %vm849_vm3, %v844_v61, -inf }
 0x17c   : > { %v780_v0 = vpop.f32.mrf.mxu1  ;;  %860 = vmax.xlane.f32.xlu2 %v859_v41 }
 0x17d   : > { %v845_v1 = vmul.f32 0.35355338, %v780_v0 }
 0x17f   : > { %v862_v12 = vsel %vm849_vm3, %v845_v1, -inf }
 0x180   : > { %v763_v2 = vpop.f32.mrf.mxu0 }
 0x182   : > { %v742_v11 = vpop.f32.mrf.mxu3 }
 0x183   : > { %v843_v15 = vmul.f32 0.35355338, %v742_v11 }
 0x184   : > { %v782_v18 = vpop.f32.mrf.mxu1  ;;  %863 = vmax.xlane.f32.xlu2 %v862_v12 }
 0x185   : > { %v856_v22 = vsel %vm849_vm3, %v843_v15, -inf }
 0x186   : > { %v799_v23 = vpop.f32.mrf.mxu2  ;;  %857 = vmax.xlane.f32.xlu0 %v856_v22 }
 0x187   : > { %v846_v35 = vmul.f32 0.35355338, %v799_v23 }
 0x189   : > { %v865_v63 = vsel %vm849_vm3, %v846_v35, -inf }
 0x18a   : > { %866 = vmax.xlane.f32.xlu1 %v865_v63  ;;  %v744_v28 = vpop.f32.mrf.mxu3  ;;  %v837_v33 = vpop.f32.mrf.mxu0 }
 0x18b   : > { %v848_v36 = vmul.f32 0.35355338, %v837_v33 }
 0x18d   : > { %v871_v42 = vsel %vm849_vm3, %v848_v36, -inf }
 0x18e   : > { %v801_v37 = vpop.f32.mrf.mxu2 }
 0x192   : > { %872 = vmax.xlane.f32.xlu1 %v871_v42  ;;  %v818_v43 = vpop.f32.mrf.mxu3  ;;  %v839_v44 = vpop.f32.mrf.mxu0 }
 0x193   : > { %v847_v51 = vmul.f32 0.35355338, %v818_v43 }
 0x195   : > { %v868_v46 = vsel %vm849_vm3, %v847_v51, -inf }
 0x196   : > { %869 = vmax.xlane.f32.xlu0 %v868_v46 }
 0x19a   : > { %v820_v47 = vpop.f32.mrf.mxu3 }
 0x1df   : > { %v852_v48 = vpop.xlane.xlu1 %851 }
 0x1e0   : > { %v874_v40 = vsub.f32 %v841_v45, %v852_v48 }
 0x1e2   : > { %v882_v49 = vmul.f32 1.442695, %v874_v40 }
 0x1e4   : > { %3349 = vpow2.f32 %v882_v49 }
 0x1e9   : > { %v855_v54 = vpop.xlane.xlu0 %854 }
 0x1ea   : > { %v3350_v38 = vpop.eup %3349  ;;  %v875_v50 = vsub.f32 %v842_v53, %v855_v54 }
 0x1eb   : > { %v898_v52 = vsel %vm849_vm3, %v3350_v38, 0.0 }
 0x1ec   : > { %v884_v55 = vmul.f32 1.442695, %v875_v50  ;;  %899 = vadd.xlane.f32.xlu1 %v898_v52 }
 0x1ee   : > { %3351 = vpow2.f32 %v884_v55 }
 0x1ef   : > { %v861_v56 = vpop.xlane.xlu2 %860 }
 0x1f0   : > { %v877_v0 = vsub.f32 %v844_v61, %v861_v56 }
 0x1f2   : > { %v888_v12 = vmul.f32 1.442695, %v877_v0 }
 0x1f4   : > { %v3352_v60 = vpop.eup %3351 }
 0x1f5   : > { %v901_v57 = vsel %vm849_vm3, %v3352_v60, 0.0 }
 0x1f6   : > { %902 = vadd.xlane.f32.xlu2 %v901_v57 }
 0x1f7   : > { %v864_v58 = vpop.xlane.xlu2 %863 }
 0x1f8   : > { %v878_v59 = vsub.f32 %v845_v1, %v864_v58 }
 0x1f9   : > { %v858_v62 = vpop.xlane.xlu0 %857 }
 0x1fa   : > { %v876_v41 = vsub.f32 %v843_v15, %v858_v62  ;;  %v890_v45 = vmul.f32 1.442695, %v878_v59 }
 0x1fc   : > { %v886_v2 = vmul.f32 1.442695, %v876_v41  ;;  %3353 = vpow2.f32 %v890_v45 }
 0x1fd   : > { %v867_v11 = vpop.xlane.xlu1 %866 }
 0x1fe   : > { %3355 = vpow2.f32 %v886_v2  ;;  %v879_v53 = vsub.f32 %v846_v35, %v867_v11 }
 0x200   : > { %v892_v18 = vmul.f32 1.442695, %v879_v53 }
 0x202   : > { %v3354_v22 = vpop.eup %3353  ;;  %3357 = vpow2.f32 %v892_v18 }
 0x203   : > { %v910_v23 = vsel %vm849_vm3, %v3354_v22, 0.0  ;;  %3359 = vpow2.f32 %v888_v12 }
 0x204   : > { %v3356_v63 = vpop.eup %3355  ;;  %911 = vadd.xlane.f32.xlu1 %v910_v23 }
 0x205   : > { %v873_v28 = vpop.xlane.xlu1 %872  ;;  %v904_v1 = vsel %vm849_vm3, %v3356_v63, 0.0 }
 0x206   : > { %v881_v15 = vsub.f32 %v848_v36, %v873_v28  ;;  %905 = vadd.xlane.f32.xlu0 %v904_v1 }
 0x208   : > { %v3358_v61 = vpop.eup %3357  ;;  %v896_v33 = vmul.f32 1.442695, %v881_v15 }
 0x209   : > { %v913_v37 = vsel %vm849_vm3, %v3358_v61, 0.0  ;;  %v870_v42 = vpop.xlane.xlu0 %869  ;;  %v3360_v35 = vpop.eup %3359 }
 0x20a   : > { %914 = vadd.xlane.f32.xlu2 %v913_v37  ;;  %v880_v43 = vsub.f32 %v847_v51, %v870_v42  ;;  %3361 = vpow2.f32 %v896_v33  ;;  %v907_v46 = vsel %vm849_vm3, %v3360_v35, 0.0 }
 0x20c   : > { %v894_v44 = vmul.f32 1.442695, %v880_v43 }
 0x20e   : > { %3363 = vpow2.f32 %v894_v44  ;;  %908 = vadd.xlane.f32.xlu0 %v907_v46 }
 0x210   : > { %v3362_v47 = vpop.eup %3361 }
 0x211   : > { %v919_v36 = vsel %vm849_vm3, %v3362_v47, 0.0 }
 0x214   : > { %v3364_v48 = vpop.eup %3363 }
 0x215   : > { %v916_v40 = vsel %vm849_vm3, %v3364_v48, 0.0 }
 0x216   : > { %917 = vadd.xlane.f32.xlu2 %v916_v40  ;;  %920 = vadd.xlane.f32.xlu0 %v919_v36  ;;  %v3289_v36 = vld [vmem:[%s5051_s1 + $0x18] sm:$0xff] }
 0x25f   : > { %v900_v49 = vpop.xlane.xlu1 %899 }
 0x260   : > { %3365 = vrcp.f32 %v900_v49 }
 0x266   : > { %v3366_v54 = vpop.eup %3365 }
 0x267   : > { %v930_v50 = vmul.f32 %v3366_v54, %v3350_v38 }
 0x269   : > { %v938_v51 = vpack.c.bf16 %v930_v50, %v930_v50  ;;  %v903_v52 = vpop.xlane.xlu2 %902 }
 0x26a   : > { %3367 = vrcp.f32 %v903_v52 }
 0x26b   : > { %3307 = vmatmul.msk.bf16.vlgmr.msra.gmra.mxu1 %vm946_vm4, %v938_v51 }
 0x270   : > { %v3368_v55 = vpop.eup %3367 }
 0x271   : > { %v931_v56 = vmul.f32 %v3368_v55, %v3352_v60 }
 0x273   : > { %v939_v57 = vpack.c.bf16 %v931_v56, %v931_v56 }
 0x275   : > { %3308 = vmatmul.msk.bf16.vlgmr.msra.gmra.mxu2 %vm946_vm4, %v939_v57 }
 0x277   : > { %v912_v58 = vpop.xlane.xlu1 %911 }
 0x278   : > { %3369 = vrcp.f32 %v912_v58 }
 0x279   : > { %v906_v59 = vpop.xlane.xlu0 %905 }
 0x27a   : > { %3371 = vrcp.f32 %v906_v59 }
 0x27d   : > { %v915_v62 = vpop.xlane.xlu2 %914 }
 0x27e   : > { %v3370_v41 = vpop.eup %3369  ;;  %3373 = vrcp.f32 %v915_v62 }
 0x27f   : > { %v934_v45 = vmul.f32 %v3370_v41, %v3354_v22 }
 0x280   : > { %v3372_v38 = vpop.eup %3371 }
 0x281   : > { %v932_v0 = vmul.f32 %v3372_v38, %v3356_v63  ;;  %v942_v2 = vpack.c.bf16 %v934_v45, %v934_v45  ;;  %v909_v11 = vpop.xlane.xlu0 %908 }
 0x282   : > { %3375 = vrcp.f32 %v909_v11 }
 0x283   : > { %v940_v53 = vpack.c.bf16 %v932_v0, %v932_v0  ;;  %3311 = vmatmul.msk.bf16.vlgmr.msrb.gmra.mxu1 %vm946_vm4, %v942_v2 }
 0x284   : > { %v3374_v60 = vpop.eup %3373 }
 0x285   : > { %v935_v12 = vmul.f32 %v3374_v60, %v3358_v61  ;;  %3309 = vmatmul.msk.bf16.vlgmr.msrb.gmra.mxu3 %vm946_vm4, %v940_v53 }
 0x287   : > { %v943_v18 = vpack.c.bf16 %v935_v12, %v935_v12 }
 0x288   : > { %v3376_v23 = vpop.eup %3375 }
 0x289   : > { %v933_v28 = vmul.f32 %v3376_v23, %v3360_v35  ;;  %3312 = vmatmul.msk.bf16.vlgmr.msrb.gmra.mxu2 %vm946_vm4, %v943_v18  ;;  %v918_v1 = vpop.xlane.xlu2 %917  ;;  %v921_v15 = vpop.xlane.xlu0 %920 }
 0x28a   : > { %3377 = vrcp.f32 %v918_v1 }
 0x28b   : > { %v941_v22 = vpack.c.bf16 %v933_v28, %v933_v28  ;;  %3379 = vrcp.f32 %v921_v15 }
 0x28d   : > { %3310 = vmatmul.msk.bf16.vlgmr.msra.gmra.mxu0 %vm946_vm4, %v941_v22 }
 0x290   : > { %v3378_v63 = vpop.eup %3377 }
 0x291   : > { %v936_v33 = vmul.f32 %v3378_v63, %v3364_v48  ;;  %v3380_v42 = vpop.eup %3379  ;;  %v362_v48 = vpack.c.bf16 %v3289_v36, %v3289_v36 }
 0x292   : > { %v937_v61 = vmul.f32 %v3380_v42, %v3362_v47 }
 0x293   : > { %v944_v37 = vpack.c.bf16 %v936_v33, %v936_v33  ;;  %v1181_v49 = vsel %vm374_vm0, %v362_v48, 0  ;;  %v3705_v48 = vperm.slane %v3596_v39, 3 }
 0x294   : > { %v945_v43 = vpack.c.bf16 %v937_v61, %v937_v61  ;;  %1190 = vmatpush.bf16.msra.mxu1 %v1181_v49 }
 0x295   : > { %3313 = vmatmul.msk.bf16.vlgmr.msra.gmra.mxu3 %vm946_vm4, %v944_v37 }
 0x29d   : > { %3314 = vmatmul.msk.bf16.vlgmr.msrb.gmra.mxu0 %vm946_vm4, %v945_v43 }
 0x2e8   : > { %v963_v35 = vpop.f32.mrf.mxu1 }
 0x2e9   : > { %v1108_v44 = vrot.slane %v963_v35, 2  ;;  %v1109_v46 = vrot.slane %v963_v35, 4  ;;  %1124 = vst [vmem:[#allocation1] ss:$4 sm:$0xff] %v963_v35 }
 0x2eb   : > { %1126 = vst [vmem:[#allocation1 + $0x1] ss:$4 sm:$0xff] %v1108_v44 }
 0x2ec   : > { %1128 = vst [vmem:[#allocation1 + $0x2] ss:$4 sm:$0xff] %v1109_v46 }
 0x2f0   : > { %v965_v40 = vpop.f32.mrf.mxu1 }
 0x2f8   : > { %v982_v54 = vpop.f32.mrf.mxu2 }
 0x2f9   : > { %v1110_v47 = vrot.slane %v982_v54, 2  ;;  %v1111_v50 = vrot.slane %v982_v54, 4  ;;  %1130 = vst [vmem:[#allocation1 + $0x3] ss:$4 sm:$0xff] %v982_v54 }
 0x2fb   : > { %1132 = vst [vmem:[#allocation1 + $0x20] ss:$4 sm:$0xff] %v1110_v47 }
 0x2fc   : > { %1134 = vst [vmem:[#allocation1 + $0x21] ss:$4 sm:$0xff] %v1111_v50 }
 0x300   : > { %v984_v51 = vpop.f32.mrf.mxu2  ;;  %v1039_v52 = vpop.f32.mrf.mxu1  ;;  %v1139_v59 = vld.sshfl [vmem:[#allocation1] sm:$0xff pattern:$0x73625140] }
 0x301   : > { %v1117_v2 = vrot.slane %v1039_v52, 4  ;;  %v1116_v60 = vrot.slane %v1039_v52, 2 }
 0x308   : > { %v1001_v55 = vpop.f32.mrf.mxu3  ;;  %v1041_v56 = vpop.f32.mrf.mxu1 }
 0x309   : > { %v1112_v57 = vrot.slane %v1001_v55, 2  ;;  %v1113_v58 = vrot.slane %v1001_v55, 4  ;;  %1136 = vst [vmem:[#allocation1 + $0x22] ss:$4 sm:$0xff] %v1001_v55 }
 0x30a   : > { %v1020_v62 = vpop.f32.mrf.mxu0 }
 0x30b   : > { %1138 = vst [vmem:[#allocation1 + $0x23] ss:$4 sm:$0xff] %v1112_v57  ;;  %v1114_v41 = vrot.slane %v1020_v62, 2  ;;  %v1115_v45 = vrot.slane %v1020_v62, 4 }
 0x30c   : > { %1141 = vst [vmem:[#allocation1] ss:$4 sm:$0xff] %v1113_v58  ;;  %v1058_v38 = vpop.f32.mrf.mxu2 }
 0x30d   : > { %1142 = vst [vmem:[#allocation1 + $0x1] ss:$4 sm:$0xff] %v1020_v62  ;;  %v1119_v23 = vrot.slane %v1058_v38, 4  ;;  %v1118_v28 = vrot.slane %v1058_v38, 2 }
 0x30e   : > { %1143 = vst [vmem:[#allocation1 + $0x2] ss:$4 sm:$0xff] %v1114_v41 }
 0x30f   : > { %1144 = vst [vmem:[#allocation1 + $0x3] ss:$4 sm:$0xff] %v1115_v45 }
 0x310   : > { %v1003_v0 = vpop.f32.mrf.mxu3 }
 0x312   : > { %v1140_v11 = vld.sshfl [vmem:[#allocation1 + $0x20] sm:$0xff pattern:$0x73625140]  ;;  %v1022_v53 = vpop.f32.mrf.mxu0 }
 0x313   : > { %1147 = vst [vmem:[#allocation1 + $0x22] ss:$4 sm:$0xff] %v1117_v2  ;;  %v1167_v12 = vpack.c.bf16 %v1140_v11, %v1139_v59 }
 0x314   : > { %1145 = vst [vmem:[#allocation1 + $0x20] ss:$4 sm:$0xff] %v1039_v52  ;;  %v1060_v18 = vpop.f32.mrf.mxu2 }
 0x315   : > { %1146 = vst [vmem:[#allocation1 + $0x21] ss:$4 sm:$0xff] %v1116_v60  ;;  %3315 = vmatmul.msk.bf16.vlgmr.msra.gmra.mxu1 %vm364_vm1, %v1167_v12 }
 0x316   : > { %1148 = vst [vmem:[#allocation1 + $0x23] ss:$4 sm:$0xff] %v1058_v38  ;;  %v1149_v1 = vld.sshfl [vmem:[#allocation1] sm:$0xff pattern:$0x73625140] }
 0x317   : > { %1152 = vst [vmem:[#allocation1 + $0x1] ss:$4 sm:$0xff] %v1119_v23 }
 0x318   : > { %1151 = vst [vmem:[#allocation1] ss:$4 sm:$0xff] %v1118_v28  ;;  %v1077_v22 = vpop.f32.mrf.mxu3 }
 0x319   : > { %v1120_v15 = vrot.slane %v1077_v22, 2  ;;  %1153 = vst [vmem:[#allocation1 + $0x2] ss:$4 sm:$0xff] %v1077_v22  ;;  %v1121_v63 = vrot.slane %v1077_v22, 4 }
 0x31a   : > { %v1096_v33 = vpop.f32.mrf.mxu0 }
 0x31b   : > { %1154 = vst [vmem:[#allocation1 + $0x3] ss:$4 sm:$0xff] %v1120_v15  ;;  %v1122_v37 = vrot.slane %v1096_v33, 2  ;;  %v1123_v61 = vrot.slane %v1096_v33, 4 }
 0x31d   : > { %v1150_v42 = vld.sshfl [vmem:[#allocation1 + $0x20] sm:$0xff pattern:$0x73625140] }
 0x31e   : > { %1155 = vst [vmem:[#allocation1 + $0x20] ss:$4 sm:$0xff] %v1121_v63  ;;  %v1168_v44 = vpack.c.bf16 %v1150_v42, %v1149_v1 }
 0x31f   : > { %1156 = vst [vmem:[#allocation1 + $0x21] ss:$4 sm:$0xff] %v1096_v33 }
 0x320   : > { %1157 = vst [vmem:[#allocation1 + $0x22] ss:$4 sm:$0xff] %v1122_v37  ;;  %v1079_v43 = vpop.f32.mrf.mxu3 }
 0x321   : > { %1158 = vst [vmem:[#allocation1 + $0x23] ss:$4 sm:$0xff] %v1123_v61 }
 0x322   : > { %v1098_v35 = vpop.f32.mrf.mxu0  ;;  %v1159_v40 = vld.sshfl [vmem:[#allocation1] sm:$0xff pattern:$0x73625140] }
 0x325   : > { %3316 = vmatmul.msk.bf16.gmra.mxu1 %vm364_vm1, %v1168_v44 }
 0x328   : > { %v1160_v46 = vld.sshfl [vmem:[#allocation1 + $0x20] sm:$0xff pattern:$0x73625140] }
 0x329   : > { %v1169_v36 = vpack.c.bf16 %v1160_v46, %v1159_v40 }
 0x335   : > { %3317 = vmatmul.msk.bf16.gmra.mxu1 %vm364_vm1, %v1169_v36 }
 0x392   : > { %v1192_v49 = vpop.f32.mrf.mxu1 }
 0x393   : > { %v1193_v54 = vadd.f32 %v1192_v49, %v3705_v48 }
 0x395   : > { %v1213_v47 = vrot.slane %v1193_v54, 2  ;;  %v1214_v50 = vrot.slane %v1193_v54, 4  ;;  %v1215_v51 = vrot.slane %v1193_v54, 6  ;;  %v3709_v52 = vadd.f32 %v1193_v54, %v3484_v3 }
 0x397   : > { %v3712_v55 = vadd.f32 %v1213_v47, %v3493_v6  ;;  %v3715_v56 = vadd.f32 %v1214_v50, %v3496_v7  ;;  %v3718_v57 = vadd.f32 %v1215_v51, %v3487_v4  ;;  %1297 = vst [vmem:[#allocation1] ss:$4 sm:$0xff] %v3709_v52 }
 0x399   : > { %1299 = vst [vmem:[#allocation1 + $0x1] ss:$4 sm:$0xff] %v3712_v55 }
 0x39a   : > { %1301 = vst [vmem:[#allocation1 + $0x2] ss:$4 sm:$0xff] %v3715_v56  ;;  %v1194_v39 = vpop.f32.mrf.mxu1 }
 0x39b   : > { %1303 = vst [vmem:[#allocation1 + $0x3] ss:$4 sm:$0xff] %v3718_v57  ;;  %v1195_v58 = vadd.f32 %v1194_v39, %v3705_v48 }
 0x39d   : > { %v1216_v59 = vrot.slane %v1195_v58, 2  ;;  %v1217_v62 = vrot.slane %v1195_v58, 4  ;;  %v1218_v41 = vrot.slane %v1195_v58, 6  ;;  %v3726_v45 = vadd.f32 %v1195_v58, %v3499_v8 }
 0x39f   : > { %v3729_v38 = vadd.f32 %v1216_v59, %v3503_v9  ;;  %v3732_v0 = vadd.f32 %v1217_v62, %v3490_v5  ;;  %v3735_v2 = vadd.f32 %v1218_v41, %v3508_v10  ;;  %1305 = vst [vmem:[#allocation1 + $0x20] ss:$4 sm:$0xff] %v3726_v45 }
 0x3a1   : > { %1307 = vst [vmem:[#allocation1 + $0x21] ss:$4 sm:$0xff] %v3729_v38 }
 0x3a2   : > { %v1312_v11 = vld.sshfl [vmem:[#allocation1] sm:$0xff pattern:$0x73625140]  ;;  %1309 = vst [vmem:[#allocation1 + $0x22] ss:$4 sm:$0xff] %v3732_v0  ;;  %v1197_v53 = vpop.f32.mrf.mxu1 }
 0x3a3   : > { %1311 = vst [vmem:[#allocation1 + $0x23] ss:$4 sm:$0xff] %v3735_v2  ;;  %v1198_v60 = vadd.f32 %v1197_v53, %v3705_v48  ;;  %v1340_v12 = vsel %vm364_vm1, %v1312_v11, 0.0 }
 0x3a4   : > { %1341 = vadd.xlane.f32.xlu1 %v1340_v12 }
 0x3a5   : > { %v1219_v18 = vrot.slane %v1198_v60, 2  ;;  %v1220_v23 = vrot.slane %v1198_v60, 4  ;;  %v1221_v28 = vrot.slane %v1198_v60, 6  ;;  %v3744_v1 = vadd.f32 %v1198_v60, %v3522_v14 }
 0x3a7   : > { %v3747_v22 = vadd.f32 %v1219_v18, %v3518_v13  ;;  %v3750_v15 = vadd.f32 %v1220_v23, %v3529_v17  ;;  %v3753_v63 = vadd.f32 %v1221_v28, %v3532_v19  ;;  %1314 = vst [vmem:[#allocation1] ss:$4 sm:$0xff] %v3744_v1 }
 0x3a9   : > { %1315 = vst [vmem:[#allocation1 + $0x1] ss:$4 sm:$0xff] %v3747_v22 }
 0x3aa   : > { %v1313_v33 = vld.sshfl [vmem:[#allocation1 + $0x20] sm:$0xff pattern:$0x73625140]  ;;  %1316 = vst [vmem:[#allocation1 + $0x2] ss:$4 sm:$0xff] %v3750_v15  ;;  %v1199_v37 = vpop.f32.mrf.mxu1 }
 0x3ab   : > { %1317 = vst [vmem:[#allocation1 + $0x3] ss:$4 sm:$0xff] %v3753_v63  ;;  %v1200_v42 = vadd.f32 %v1199_v37, %v3705_v48  ;;  %v1343_v61 = vsel %vm364_vm1, %v1313_v33, 0.0 }
 0x3ac   : > { %1344 = vadd.xlane.f32.xlu2 %v1343_v61 }
 0x3ad   : > { %v1222_v43 = vrot.slane %v1200_v42, 2  ;;  %v1223_v35 = vrot.slane %v1200_v42, 4  ;;  %v1224_v44 = vrot.slane %v1200_v42, 6  ;;  %v3762_v46 = vadd.f32 %v1200_v42, %v3526_v16 }
 0x3af   : > { %v3765_v40 = vadd.f32 %v1222_v43, %v3536_v20  ;;  %v3768_v36 = vadd.f32 %v1223_v35, %v3540_v21  ;;  %v3771_v49 = vadd.f32 %v1224_v44, %v3545_v24  ;;  %1318 = vst [vmem:[#allocation1 + $0x20] ss:$4 sm:$0xff] %v3762_v46 }
 0x3b1   : > { %1319 = vst [vmem:[#allocation1 + $0x21] ss:$4 sm:$0xff] %v3765_v40 }
 0x3b2   : > { %v1322_v54 = vld.sshfl [vmem:[#allocation1] sm:$0xff pattern:$0x73625140]  ;;  %1320 = vst [vmem:[#allocation1 + $0x22] ss:$4 sm:$0xff] %v3768_v36  ;;  %v1202_v47 = vpop.f32.mrf.mxu1 }
 0x3b3   : > { %1321 = vst [vmem:[#allocation1 + $0x23] ss:$4 sm:$0xff] %v3771_v49  ;;  %v1346_v50 = vsel %vm364_vm1, %v1322_v54, 0.0  ;;  %v1203_v51 = vadd.f32 %v1202_v47, %v3705_v48 }
 0x3b4   : > { %1347 = vadd.xlane.f32.xlu0 %v1346_v50  ;;  %v3420_v50 = vmov 8.0  }
 0x3b5   : > { %v1225_v39 = vrot.slane %v1203_v51, 2  ;;  %v1226_v58 = vrot.slane %v1203_v51, 4  ;;  %v1227_v59 = vrot.slane %v1203_v51, 6  ;;  %v3780_v62 = vadd.f32 %v1203_v51, %v3557_v26 }
 0x3b6   : > { %3381 = vrcp.f32 %v3420_v50 }
 0x3b7   : > { %v3783_v41 = vadd.f32 %v1225_v39, %v3560_v27  ;;  %v3786_v11 = vadd.f32 %v1226_v58, %v3554_v25  ;;  %v3789_v53 = vadd.f32 %v1227_v59, %v3566_v30  ;;  %1324 = vst [vmem:[#allocation1] ss:$4 sm:$0xff] %v3780_v62 }
 0x3b9   : > { %1325 = vst [vmem:[#allocation1 + $0x1] ss:$4 sm:$0xff] %v3783_v41 }
 0x3ba   : > { %v1323_v60 = vld.sshfl [vmem:[#allocation1 + $0x20] sm:$0xff pattern:$0x73625140]  ;;  %1326 = vst [vmem:[#allocation1 + $0x2] ss:$4 sm:$0xff] %v3786_v11  ;;  %v1204_v12 = vpop.f32.mrf.mxu1 }
 0x3bb   : > { %1327 = vst [vmem:[#allocation1 + $0x3] ss:$4 sm:$0xff] %v3789_v53  ;;  %v1349_v18 = vsel %vm364_vm1, %v1323_v60, 0.0  ;;  %v1205_v23 = vadd.f32 %v1204_v12, %v3705_v48  ;;  %v3421_v12 = vmov 269488144  }
 0x3bc   : > { %1350 = vadd.xlane.f32.xlu1 %v1349_v18  ;;  %v3382_v51 = vpop.eup %3381  ;;  %v1378_v18 = vunpack.c.l.s4 %v3421_v12 }
 0x3bd   : > { %v1228_v28 = vrot.slane %v1205_v23, 2  ;;  %v1229_v33 = vrot.slane %v1205_v23, 4  ;;  %v1230_v37 = vrot.slane %v1205_v23, 6  ;;  %v3798_v42 = vadd.f32 %v1205_v23, %v3569_v31 }
 0x3be   : > { %v1359_v39 = vmul.f32 8.0, %v3382_v51  ;;  %vm1363_vm5 = vweird.f32 %v3382_v51  ;;  %v3422_v23 = vmov 842150450  }
 0x3bf   : > { %v3801_v61 = vadd.f32 %v1228_v28, %v3563_v29  ;;  %v3804_v43 = vadd.f32 %v1229_v33, %v3574_v32  ;;  %v3807_v35 = vadd.f32 %v1230_v37, %v3578_v34  ;;  %1328 = vst [vmem:[#allocation1 + $0x20] ss:$4 sm:$0xff] %v3798_v42  ;;  %v1382_v28 = vunpack.c.l.s4 %v3422_v23 }
 0x3c0   : > { %v1360_v58 = vsub.f32 1.0, %v1359_v39  ;;  %v3423_v33 = vmov 1414812756  }
 0x3c1   : > { %1329 = vst [vmem:[#allocation1 + $0x21] ss:$4 sm:$0xff] %v3801_v61  ;;  %v1386_v37 = vunpack.c.l.s4 %v3423_v33 }
 0x3c2   : > { %v1332_v48 = vld.sshfl [vmem:[#allocation1] sm:$0xff pattern:$0x73625140]  ;;  %1330 = vst [vmem:[#allocation1 + $0x22] ss:$4 sm:$0xff] %v3804_v43  ;;  %v1361_v59 = vmul.f32 %v3382_v51, %v1360_v58 }
 0x3c3   : > { %1331 = vst [vmem:[#allocation1 + $0x23] ss:$4 sm:$0xff] %v3807_v35  ;;  %v1352_v44 = vsel %vm364_vm1, %v1332_v48, 0.0  ;;  %v3424_v48 = vmov 1987475062   ;;  %v3821_v50 = vunpack.c.0.s8 %v1386_v37 }
 0x3c4   : > { %1353 = vadd.xlane.f32.xlu2 %v1352_v44  ;;  %v1362_v60 = vadd.f32 %v3382_v51, %v1361_v59  ;;  %v1390_v44 = vunpack.c.l.s4 %v3424_v48 }
 0x3c6   : > { %v3815_v34 = vsel %vm1363_vm5, %v3382_v51, %v1362_v60  ;;  %v3823_v39 = vunpack.c.0.s8 %v1390_v44 }
 0x3ca   : > { %v1333_v54 = vld.sshfl [vmem:[#allocation1 + $0x20] sm:$0xff pattern:$0x73625140] }
 0x3cb   : > { %v1355_v47 = vsel %vm364_vm1, %v1333_v54, 0.0  ;;  %v3817_v54 = vunpack.c.0.s8 %v1378_v18 }
 0x3cc   : > { %1356 = vadd.xlane.f32.xlu0 %v1355_v47  ;;  %v3819_v47 = vunpack.c.0.s8 %v1382_v28 }
 0x417   : > { %v1342_v58 = vpop.xlane.xlu1 %1341 }
 0x418   : > { %v1365_v59 = vmul.f32 %v3815_v34, %v1342_v58 }
 0x41a   : > { %v1380_v12 = vperm.slane %v1365_v59, %v3817_v54  ;;  %v1384_v23 = vperm.slane %v1365_v59, %v3819_v47  ;;  %v1388_v33 = vperm.slane %v1365_v59, %v3821_v50  ;;  %v1392_v51 = vperm.slane %v1365_v59, %v3823_v39 }
 0x41c   : > { %v3831_v60 = vsub.f32 %v3709_v52, %v1380_v12  ;;  %v3834_v18 = vsub.f32 %v3712_v55, %v1384_v23  ;;  %v3837_v28 = vsub.f32 %v3715_v56, %v1388_v33  ;;  %v3840_v37 = vsub.f32 %v3718_v57, %v1392_v51 }
 0x41e   : > { %v1521_v48 = vmul.f32 %v3831_v60, %v3831_v60  ;;  %v1522_v44 = vmul.f32 %v3834_v18, %v3834_v18  ;;  %v1523_v58 = vmul.f32 %v3837_v28, %v3837_v28  ;;  %v1524_v52 = vmul.f32 %v3840_v37, %v3840_v37 }
 0x41f   : > { %v1345_v55 = vpop.xlane.xlu2 %1344 }
 0x420   : > { %1569 = vst [vmem:[#allocation1] ss:$4 sm:$0xff] %v1521_v48  ;;  %v1366_v56 = vmul.f32 %v3815_v34, %v1345_v55 }
 0x421   : > { %1571 = vst [vmem:[#allocation1 + $0x1] ss:$4 sm:$0xff] %v1522_v44 }
 0x422   : > { %1573 = vst [vmem:[#allocation1 + $0x2] ss:$4 sm:$0xff] %v1523_v58  ;;  %v1396_v57 = vperm.slane %v1366_v56, %v3817_v54  ;;  %v1400_v59 = vperm.slane %v1366_v56, %v3819_v47  ;;  %v1404_v12 = vperm.slane %v1366_v56, %v3821_v50  ;;  %v1408_v23 = vperm.slane %v1366_v56, %v3823_v39 }
 0x423   : > { %1575 = vst [vmem:[#allocation1 + $0x3] ss:$4 sm:$0xff] %v1524_v52 }
 0x424   : > { %v3856_v33 = vsub.f32 %v3726_v45, %v1396_v57  ;;  %v3859_v51 = vsub.f32 %v3729_v38, %v1400_v59  ;;  %v3862_v48 = vsub.f32 %v3732_v0, %v1404_v12  ;;  %v3865_v44 = vsub.f32 %v3735_v2, %v1408_v23 }
 0x426   : > { %v1525_v58 = vmul.f32 %v3856_v33, %v3856_v33  ;;  %v1526_v55 = vmul.f32 %v3859_v51, %v3859_v51  ;;  %v1527_v52 = vmul.f32 %v3862_v48, %v3862_v48  ;;  %v1528_v45 = vmul.f32 %v3865_v44, %v3865_v44 }
 0x427   : > { %v1348_v38 = vpop.xlane.xlu0 %1347 }
 0x428   : > { %1577 = vst [vmem:[#allocation1 + $0x20] ss:$4 sm:$0xff] %v1525_v58  ;;  %v1367_v0 = vmul.f32 %v3815_v34, %v1348_v38 }
 0x429   : > { %1579 = vst [vmem:[#allocation1 + $0x21] ss:$4 sm:$0xff] %v1526_v55 }
 0x42a   : > { %v1584_v56 = vld.sshfl [vmem:[#allocation1] sm:$0xff pattern:$0x73625140]  ;;  %1581 = vst [vmem:[#allocation1 + $0x22] ss:$4 sm:$0xff] %v1527_v52  ;;  %v1412_v2 = vperm.slane %v1367_v0, %v3817_v54  ;;  %v1416_v57 = vperm.slane %v1367_v0, %v3819_v47  ;;  %v1420_v59 = vperm.slane %v1367_v0, %v3821_v50  ;;  %v1424_v12 = vperm.slane %v1367_v0, %v3823_v39 }
 0x42b   : > { %1583 = vst [vmem:[#allocation1 + $0x23] ss:$4 sm:$0xff] %v1528_v45  ;;  %v1612_v23 = vsel %vm364_vm1, %v1584_v56, 0.0 }
 0x42c   : > { %v3882_v32 = vsub.f32 %v3744_v1, %v1412_v2  ;;  %v3885_v58 = vsub.f32 %v3747_v22, %v1416_v57  ;;  %v3888_v55 = vsub.f32 %v3750_v15, %v1420_v59  ;;  %v3891_v52 = vsub.f32 %v3753_v63, %v1424_v12  ;;  %1613 = vadd.xlane.f32.xlu1 %v1612_v23 }
 0x42e   : > { %v1529_v38 = vmul.f32 %v3882_v32, %v3882_v32  ;;  %v1530_v45 = vmul.f32 %v3885_v58, %v3885_v58  ;;  %v1531_v1 = vmul.f32 %v3888_v55, %v3888_v55  ;;  %v1532_v22 = vmul.f32 %v3891_v52, %v3891_v52 }
 0x42f   : > { %v1351_v0 = vpop.xlane.xlu1 %1350 }
 0x430   : > { %1586 = vst [vmem:[#allocation1] ss:$4 sm:$0xff] %v1529_v38  ;;  %v1368_v15 = vmul.f32 %v3815_v34, %v1351_v0 }
 0x431   : > { %1587 = vst [vmem:[#allocation1 + $0x1] ss:$4 sm:$0xff] %v1530_v45 }
 0x432   : > { %v1585_v63 = vld.sshfl [vmem:[#allocation1 + $0x20] sm:$0xff pattern:$0x73625140]  ;;  %1588 = vst [vmem:[#allocation1 + $0x2] ss:$4 sm:$0xff] %v1531_v1  ;;  %v1428_v56 = vperm.slane %v1368_v15, %v3817_v54  ;;  %v1432_v2 = vperm.slane %v1368_v15, %v3819_v47  ;;  %v1436_v57 = vperm.slane %v1368_v15, %v3821_v50  ;;  %v1440_v59 = vperm.slane %v1368_v15, %v3823_v39 }
 0x433   : > { %1589 = vst [vmem:[#allocation1 + $0x3] ss:$4 sm:$0xff] %v1532_v22  ;;  %v1615_v12 = vsel %vm364_vm1, %v1585_v63, 0.0 }
 0x434   : > { %v3908_v23 = vsub.f32 %v3762_v46, %v1428_v56  ;;  %v3911_v38 = vsub.f32 %v3765_v40, %v1432_v2  ;;  %v3914_v45 = vsub.f32 %v3768_v36, %v1436_v57  ;;  %v3917_v1 = vsub.f32 %v3771_v49, %v1440_v59  ;;  %1616 = vadd.xlane.f32.xlu2 %v1615_v12 }
 0x436   : > { %v1533_v0 = vmul.f32 %v3908_v23, %v3908_v23  ;;  %v1534_v22 = vmul.f32 %v3911_v38, %v3911_v38  ;;  %v1535_v46 = vmul.f32 %v3914_v45, %v3914_v45  ;;  %v1536_v40 = vmul.f32 %v3917_v1, %v3917_v1 }
 0x437   : > { %v1354_v15 = vpop.xlane.xlu2 %1353 }
 0x438   : > { %1590 = vst [vmem:[#allocation1 + $0x20] ss:$4 sm:$0xff] %v1533_v0  ;;  %v1369_v36 = vmul.f32 %v3815_v34, %v1354_v15 }
 0x439   : > { %1591 = vst [vmem:[#allocation1 + $0x21] ss:$4 sm:$0xff] %v1534_v22 }
 0x43a   : > { %v1594_v49 = vld.sshfl [vmem:[#allocation1] sm:$0xff pattern:$0x73625140]  ;;  %1592 = vst [vmem:[#allocation1 + $0x22] ss:$4 sm:$0xff] %v1535_v46  ;;  %v1444_v63 = vperm.slane %v1369_v36, %v3817_v54  ;;  %v1448_v56 = vperm.slane %v1369_v36, %v3819_v47  ;;  %v1452_v2 = vperm.slane %v1369_v36, %v3821_v50  ;;  %v1456_v57 = vperm.slane %v1369_v36, %v3823_v39 }
 0x43b   : > { %1593 = vst [vmem:[#allocation1 + $0x23] ss:$4 sm:$0xff] %v1536_v40  ;;  %v1618_v59 = vsel %vm364_vm1, %v1594_v49, 0.0 }
 0x43c   : > { %v3934_v12 = vsub.f32 %v3780_v62, %v1444_v63  ;;  %v3937_v0 = vsub.f32 %v3783_v41, %v1448_v56  ;;  %v3940_v22 = vsub.f32 %v3786_v11, %v1452_v2  ;;  %v3943_v46 = vsub.f32 %v3789_v53, %v1456_v57  ;;  %1619 = vadd.xlane.f32.xlu0 %v1618_v59 }
 0x43e   : > { %v1537_v15 = vmul.f32 %v3934_v12, %v3934_v12  ;;  %v1538_v40 = vmul.f32 %v3937_v0, %v3937_v0  ;;  %v1539_v62 = vmul.f32 %v3940_v22, %v3940_v22  ;;  %v1540_v41 = vmul.f32 %v3943_v46, %v3943_v46 }
 0x43f   : > { %v1357_v36 = vpop.xlane.xlu0 %1356 }
 0x440   : > { %1596 = vst [vmem:[#allocation1] ss:$4 sm:$0xff] %v1537_v15  ;;  %v1370_v11 = vmul.f32 %v3815_v34, %v1357_v36 }
 0x441   : > { %1597 = vst [vmem:[#allocation1 + $0x1] ss:$4 sm:$0xff] %v1538_v40 }
 0x442   : > { %v1595_v53 = vld.sshfl [vmem:[#allocation1 + $0x20] sm:$0xff pattern:$0x73625140]  ;;  %1598 = vst [vmem:[#allocation1 + $0x2] ss:$4 sm:$0xff] %v1539_v62  ;;  %v1460_v49 = vperm.slane %v1370_v11, %v3817_v54  ;;  %v1464_v63 = vperm.slane %v1370_v11, %v3819_v47  ;;  %v1468_v56 = vperm.slane %v1370_v11, %v3821_v50  ;;  %v1472_v2 = vperm.slane %v1370_v11, %v3823_v39 }
 0x443   : > { %1599 = vst [vmem:[#allocation1 + $0x3] ss:$4 sm:$0xff] %v1540_v41  ;;  %v1621_v57 = vsel %vm364_vm1, %v1595_v53, 0.0 }
 0x444   : > { %v3960_v59 = vsub.f32 %v3798_v42, %v1460_v49  ;;  %v3963_v15 = vsub.f32 %v3801_v61, %v1464_v63  ;;  %v3966_v40 = vsub.f32 %v3804_v43, %v1468_v56  ;;  %v3969_v62 = vsub.f32 %v3807_v35, %v1472_v2  ;;  %1622 = vadd.xlane.f32.xlu1 %v1621_v57 }
 0x446   : > { %v1541_v36 = vmul.f32 %v3960_v59, %v3960_v59  ;;  %v1542_v41 = vmul.f32 %v3963_v15, %v3963_v15  ;;  %v1543_v42 = vmul.f32 %v3966_v40, %v3966_v40  ;;  %v1544_v61 = vmul.f32 %v3969_v62, %v3969_v62 }
 0x448   : > { %1600 = vst [vmem:[#allocation1 + $0x20] ss:$4 sm:$0xff] %v1541_v36 }
 0x449   : > { %1601 = vst [vmem:[#allocation1 + $0x21] ss:$4 sm:$0xff] %v1542_v41 }
 0x44a   : > { %v1604_v43 = vld.sshfl [vmem:[#allocation1] sm:$0xff pattern:$0x73625140]  ;;  %1602 = vst [vmem:[#allocation1 + $0x22] ss:$4 sm:$0xff] %v1543_v42 }
 0x44b   : > { %1603 = vst [vmem:[#allocation1 + $0x23] ss:$4 sm:$0xff] %v1544_v61  ;;  %v1624_v35 = vsel %vm364_vm1, %v1604_v43, 0.0  ;;  %v1986_v61 = vld [vmem:[%s5052_s2] sm:$0xff] }
 0x44c   : > { %1625 = vadd.xlane.f32.xlu2 %v1624_v35 }
 0x452   : > { %v1605_v11 = vld.sshfl [vmem:[#allocation1 + $0x20] sm:$0xff pattern:$0x73625140] }
 0x453   : > { %v1627_v53 = vsel %vm364_vm1, %v1605_v11, 0.0  ;;  %v1987_v11 = vpack.c.bf16 %v1986_v61, %v1986_v61 }
 0x454   : > { %1628 = vadd.xlane.f32.xlu0 %v1627_v53  ;;  %v3989_v53 = vld [vmem:[%s5055_s5] sm:$0xff] }
 0x49f   : > { %v1614_v49 = vpop.xlane.xlu1 %1613 }
 0x4a0   : > { %v1630_v63 = vmul.f32 %v1614_v49, %v3815_v34  ;;  %v3992_v49 = vperm.slane %v3989_v53, 5 }
 0x4a2   : > { %v1636_v56 = vadd.f32 1e-05, %v1630_v63  ;;  %v4002_v25 = vrot.slane %v3992_v49, 2 }
 0x4a4   : > { %3383 = vrsqrt.f32 %v1636_v56  ;;  %vm1648_vm7 = vweird.f32 %v1636_v56 }
 0x4a7   : > { %v1617_v2 = vpop.xlane.xlu2 %1616 }
 0x4a8   : > { %v1631_v57 = vmul.f32 %v1617_v2, %v3815_v34 }
 0x4aa   : > { %v3384_v36 = vpop.eup %3383  ;;  %v1637_v41 = vadd.f32 1e-05, %v1631_v57 }
 0x4ab   : > { %v1643_v29 = vmul.f32 %v3384_v36, %v1636_v56  ;;  %vm1649_vm6 = vweird.f32 %v3384_v36 }
 0x4ac   : > { %3385 = vrsqrt.f32 %v1637_v41  ;;  %vm1650_vm8 = vmor %vm1648_vm7, %vm1649_vm6  ;;  %vm1658_vm10 = vweird.f32 %v1637_v41 }
 0x4ad   : > { %v1644_v42 = vmul.f32 %v3384_v36, %v1643_v29  ;;  %v2002_v29 = vsel %vm374_vm0, %v1987_v11, 0 }
 0x4ae   : > { %2011 = vmatpush.bf16.msra.mxu2 %v2002_v29 }
 0x4af   : > { %v1645_v43 = vmul.f32 0.5, %v1644_v42  ;;  %v1620_v35 = vpop.xlane.xlu0 %1619  ;;  %v3999_v42 = vperm.slane %v3989_v53, 6 }
 0x4b0   : > { %v1632_v63 = vmul.f32 %v1620_v35, %v3815_v34  ;;  %v4009_v35 = vrot.slane %v3992_v49, 6 }
 0x4b1   : > { %v1646_v2 = vsub.f32 1.5, %v1645_v43  ;;  %v4006_v43 = vrot.slane %v3992_v49, 4  ;;  %v4016_v26 = vrot.slane %v3999_v42, 2  ;;  %v4019_v24 = vrot.slane %v3999_v42, 4 }
 0x4b2   : > { %v3386_v57 = vpop.eup %3385  ;;  %v3996_v31 = vadd.f32 1e-05, %v1632_v63  ;;  %v4026_v19 = vrot.slane %v3999_v42, 6 }
 0x4b3   : > { %v1647_v61 = vmul.f32 %v3384_v36, %v1646_v2  ;;  %v1653_v30 = vmul.f32 %v3386_v57, %v1637_v41  ;;  %vm1659_vm9 = vweird.f32 %v3386_v57 }
 0x4b4   : > { %3387 = vrsqrt.f32 %v3996_v31  ;;  %vm1660_vm11 = vmor %vm1658_vm10, %vm1659_vm9  ;;  %vm1668_vm13 = vweird.f32 %v3996_v31  ;;  %vm2041_vm9 = vcmask 130048  }
 0x4b5   : > { %v1651_v11 = vsel %vm1650_vm8, %v3384_v36, %v1647_v61  ;;  %v1654_v63 = vmul.f32 %v3386_v57, %v1653_v30 }
 0x4b6   : > { %v1711_v29 = vperm.slane %v1651_v11, %v3817_v54  ;;  %v1715_v2 = vperm.slane %v1651_v11, %v3819_v47  ;;  %v1719_v56 = vperm.slane %v1651_v11, %v3821_v50  ;;  %v1723_v27 = vperm.slane %v1651_v11, %v3823_v39 }
 0x4b7   : > { %v1655_v21 = vmul.f32 0.5, %v1654_v63  ;;  %v1623_v20 = vpop.xlane.xlu1 %1622 }
 0x4b8   : > { %v1828_v16 = vmul.f32 %v1711_v29, %v3831_v60  ;;  %v1829_v30 = vmul.f32 %v1715_v2, %v3834_v18  ;;  %v1830_v36 = vmul.f32 %v1719_v56, %v3837_v28  ;;  %v1831_v61 = vmul.f32 %v1723_v27, %v3840_v37 }
 0x4b9   : > { %v1656_v11 = vsub.f32 1.5, %v1655_v21  ;;  %v1633_v17 = vmul.f32 %v1623_v20, %v3815_v34 }
 0x4ba   : > { %v3388_v13 = vpop.eup %3387  ;;  %v1860_v14 = vmul.f32 %v3992_v49, %v1828_v16  ;;  %v1861_v63 = vmul.f32 %v4002_v25, %v1829_v30  ;;  %v1862_v60 = vmul.f32 %v4006_v43, %v1830_v36  ;;  %v1863_v18 = vmul.f32 %v4009_v35, %v1831_v61 }
 0x4bb   : > { %v1657_v29 = vmul.f32 %v3386_v57, %v1656_v11  ;;  %v1663_v27 = vmul.f32 %v3388_v13, %v3996_v31  ;;  %v4034_v28 = vadd.f32 1e-05, %v1633_v17  ;;  %vm1669_vm12 = vweird.f32 %v3388_v13 }
 0x4bc   : > { %v4037_v21 = vadd.f32 %v3999_v42, %v1860_v14  ;;  %v4040_v20 = vadd.f32 %v4016_v26, %v1861_v63  ;;  %v4043_v16 = vadd.f32 %v4019_v24, %v1862_v60  ;;  %v4046_v37 = vadd.f32 %v4026_v19, %v1863_v18  ;;  %vm1670_vm14 = vmor %vm1668_vm13, %vm1669_vm12 }
 0x4bd   : > { %v1661_v2 = vsel %vm1660_vm11, %v3386_v57, %v1657_v29  ;;  %v1664_v56 = vmul.f32 %v3388_v13, %v1663_v27  ;;  %3389 = vrsqrt.f32 %v4034_v28  ;;  %vm1678_vm0 = vweird.f32 %v4034_v28 }
 0x4be   : > { %1940 = vst [vmem:[#allocation1] ss:$4 sm:$0xff] %v4037_v21  ;;  %v1727_v17 = vperm.slane %v1661_v2, %v3817_v54  ;;  %v1731_v14 = vperm.slane %v1661_v2, %v3819_v47  ;;  %v1735_v41 = vperm.slane %v1661_v2, %v3821_v50  ;;  %v1739_v30 = vperm.slane %v1661_v2, %v3823_v39 }
 0x4bf   : > { %1942 = vst [vmem:[#allocation1 + $0x1] ss:$4 sm:$0xff] %v4040_v20  ;;  %v1665_v36 = vmul.f32 0.5, %v1664_v56  ;;  %v1626_v61 = vpop.xlane.xlu2 %1625 }
 0x4c0   : > { %1944 = vst [vmem:[#allocation1 + $0x2] ss:$4 sm:$0xff] %v4043_v16  ;;  %v1832_v57 = vmul.f32 %v1727_v17, %v3856_v33  ;;  %v1833_v11 = vmul.f32 %v1731_v14, %v3859_v51  ;;  %v1834_v63 = vmul.f32 %v1735_v41, %v3862_v48  ;;  %v1835_v60 = vmul.f32 %v1739_v30, %v3865_v44 }
 0x4c1   : > { %1946 = vst [vmem:[#allocation1 + $0x3] ss:$4 sm:$0xff] %v4046_v37  ;;  %v1666_v18 = vsub.f32 1.5, %v1665_v36  ;;  %v1634_v29 = vmul.f32 %v1626_v61, %v3815_v34 }
 0x4c2   : > { %v1864_v27 = vmul.f32 %v3992_v49, %v1832_v57  ;;  %v1865_v2 = vmul.f32 %v4002_v25, %v1833_v11  ;;  %v1866_v56 = vmul.f32 %v4006_v43, %v1834_v63  ;;  %v1867_v33 = vmul.f32 %v4009_v35, %v1835_v60 }
 0x4c3   : > { %v3390_v17 = vpop.eup %3389  ;;  %v1667_v51 = vmul.f32 %v3388_v13, %v1666_v18  ;;  %v4067_v48 = vadd.f32 1e-05, %v1634_v29 }
 0x4c4   : > { %v4070_v44 = vadd.f32 %v3999_v42, %v1864_v27  ;;  %v4073_v14 = vadd.f32 %v4016_v26, %v1865_v2  ;;  %v4076_v41 = vadd.f32 %v4019_v24, %v1866_v56  ;;  %v4079_v30 = vadd.f32 %v4026_v19, %v1867_v33 }
 0x4c5   : > { %v1671_v36 = vsel %vm1670_vm14, %v3388_v13, %v1667_v51  ;;  %v1673_v61 = vmul.f32 %v3390_v17, %v4034_v28  ;;  %3391 = vrsqrt.f32 %v4067_v48  ;;  %vm1679_vm15 = vweird.f32 %v3390_v17 }
 0x4c6   : > { %1948 = vst [vmem:[#allocation1 + $0x20] ss:$4 sm:$0xff] %v4070_v44  ;;  %v1743_v31 = vperm.slane %v1671_v36, %v3817_v54  ;;  %v1747_v57 = vperm.slane %v1671_v36, %v3819_v47  ;;  %v1751_v11 = vperm.slane %v1671_v36, %v3821_v50  ;;  %v1755_v63 = vperm.slane %v1671_v36, %v3823_v39  ;;  %vm1680_vm2 = vmor %vm1678_vm0, %vm1679_vm15 }
 0x4c7   : > { %1950 = vst [vmem:[#allocation1 + $0x21] ss:$4 sm:$0xff] %v4073_v14  ;;  %v1674_v60 = vmul.f32 %v3390_v17, %v1673_v61  ;;  %v1629_v18 = vpop.xlane.xlu0 %1628  ;;  %vm1688_vm4 = vweird.f32 %v4067_v48 }
 0x4c8   : > { %1952 = vst [vmem:[#allocation1 + $0x22] ss:$4 sm:$0xff] %v4076_v41  ;;  %v1836_v13 = vmul.f32 %v1743_v31, %v3882_v32  ;;  %v1837_v29 = vmul.f32 %v1747_v57, %v3885_v58  ;;  %v1838_v27 = vmul.f32 %v1751_v11, %v3888_v55  ;;  %v1839_v2 = vmul.f32 %v1755_v63, %v3891_v52  ;;  %v1955_v11 = vld.sshfl [vmem:[#allocation1] sm:$0xff pattern:$0x73625140] }
 0x4c9   : > { %1954 = vst [vmem:[#allocation1 + $0x23] ss:$4 sm:$0xff] %v4079_v30  ;;  %v1675_v56 = vmul.f32 0.5, %v1674_v60  ;;  %v1635_v33 = vmul.f32 %v1629_v18, %v3815_v34 }
 0x4ca   : > { %v1868_v51 = vmul.f32 %v3992_v49, %v1836_v13  ;;  %v1869_v36 = vmul.f32 %v4002_v25, %v1837_v29  ;;  %v1870_v61 = vmul.f32 %v4006_v43, %v1838_v27  ;;  %v1871_v10 = vmul.f32 %v4009_v35, %v1839_v2 }
 0x4cb   : > { %v3392_v32 = vpop.eup %3391  ;;  %v1676_v31 = vsub.f32 1.5, %v1675_v56  ;;  %v4100_v58 = vadd.f32 1e-05, %v1635_v33 }
 0x4cc   : > { %v4103_v55 = vadd.f32 %v3999_v42, %v1868_v51  ;;  %v4106_v52 = vadd.f32 %v4016_v26, %v1869_v36  ;;  %v4109_v57 = vadd.f32 %v4019_v24, %v1870_v61  ;;  %v4113_v63 = vadd.f32 %v4026_v19, %v1871_v10 }
 0x4cd   : > { %v1677_v60 = vmul.f32 %v3390_v17, %v1676_v31  ;;  %v1683_v18 = vmul.f32 %v3392_v32, %v4067_v48  ;;  %3393 = vrsqrt.f32 %v4100_v58  ;;  %vm1689_vm3 = vweird.f32 %v3392_v32 }
 0x4ce   : > { %1957 = vst [vmem:[#allocation1] ss:$4 sm:$0xff] %v4103_v55  ;;  %vm1690_vm5 = vmor %vm1688_vm4, %vm1689_vm3  ;;  %vm1698_vm7 = vweird.f32 %v4100_v58 }
 0x4cf   : > { %1958 = vst [vmem:[#allocation1 + $0x1] ss:$4 sm:$0xff] %v4106_v52  ;;  %v1681_v13 = vsel %vm1680_vm2, %v3390_v17, %v1677_v60  ;;  %v1684_v29 = vmul.f32 %v3392_v32, %v1683_v18 }
 0x4d0   : > { %v1956_v27 = vld.sshfl [vmem:[#allocation1 + $0x20] sm:$0xff pattern:$0x73625140]  ;;  %1959 = vst [vmem:[#allocation1 + $0x2] ss:$4 sm:$0xff] %v4109_v57  ;;  %v1759_v28 = vperm.slane %v1681_v13, %v3817_v54  ;;  %v1763_v10 = vperm.slane %v1681_v13, %v3819_v47  ;;  %v1767_v2 = vperm.slane %v1681_v13, %v3821_v50  ;;  %v1771_v56 = vperm.slane %v1681_v13, %v3823_v39 }
 0x4d1   : > { %1960 = vst [vmem:[#allocation1 + $0x3] ss:$4 sm:$0xff] %v4113_v63  ;;  %v1685_v33 = vmul.f32 0.5, %v1684_v29  ;;  %v1983_v51 = vpack.c.bf16 %v1956_v27, %v1955_v11 }
 0x4d2   : > { %v1840_v36 = vmul.f32 %v1759_v28, %v3908_v23  ;;  %v1841_v17 = vmul.f32 %v1763_v10, %v3911_v38  ;;  %v1842_v61 = vmul.f32 %v1767_v2, %v3914_v45  ;;  %v1843_v31 = vmul.f32 %v1771_v56, %v3917_v1 }
 0x4d3   : > { %v3394_v60 = vpop.eup %3393  ;;  %v1686_v18 = vsub.f32 1.5, %v1685_v33  ;;  %3318 = vmatmul.msk.bf16.vlgmr.msra.gmra.mxu2 %vm364_vm1, %v1983_v51 }
 0x4d4   : > { %v1872_v5 = vmul.f32 %v3992_v49, %v1840_v36  ;;  %v1873_v13 = vmul.f32 %v4002_v25, %v1841_v17  ;;  %v1874_v29 = vmul.f32 %v4006_v43, %v1842_v61  ;;  %v1875_v11 = vmul.f32 %v4009_v35, %v1843_v31 }
 0x4d5   : > { %v1687_v23 = vmul.f32 %v3392_v32, %v1686_v18  ;;  %v1693_v38 = vmul.f32 %v3394_v60, %v4100_v58  ;;  %vm1699_vm6 = vweird.f32 %v3394_v60 }
 0x4d6   : > { %v4137_v45 = vadd.f32 %v3999_v42, %v1872_v5  ;;  %v4140_v1 = vadd.f32 %v4016_v26, %v1873_v13  ;;  %v4143_v27 = vadd.f32 %v4019_v24, %v1874_v29  ;;  %v4146_v28 = vadd.f32 %v4026_v19, %v1875_v11  ;;  %vm1700_vm8 = vmor %vm1698_vm7, %vm1699_vm6 }
 0x4d7   : > { %v1691_v10 = vsel %vm1690_vm5, %v3392_v32, %v1687_v23  ;;  %v1694_v2 = vmul.f32 %v3394_v60, %v1693_v38 }
 0x4d8   : > { %1961 = vst [vmem:[#allocation1 + $0x20] ss:$4 sm:$0xff] %v4137_v45  ;;  %v1775_v48 = vperm.slane %v1691_v10, %v3817_v54  ;;  %v1779_v56 = vperm.slane %v1691_v10, %v3819_v47  ;;  %v1783_v5 = vperm.slane %v1691_v10, %v3821_v50  ;;  %v1787_v33 = vperm.slane %v1691_v10, %v3823_v39 }
 0x4d9   : > { %1962 = vst [vmem:[#allocation1 + $0x21] ss:$4 sm:$0xff] %v4140_v1  ;;  %v1695_v51 = vmul.f32 0.5, %v1694_v2 }
 0x4da   : > { %1963 = vst [vmem:[#allocation1 + $0x22] ss:$4 sm:$0xff] %v4143_v27  ;;  %v1844_v36 = vmul.f32 %v1775_v48, %v3934_v12  ;;  %v1845_v32 = vmul.f32 %v1779_v56, %v3937_v0  ;;  %v1846_v17 = vmul.f32 %v1783_v5, %v3940_v22  ;;  %v1847_v61 = vmul.f32 %v1787_v33, %v3943_v46  ;;  %v1965_v46 = vld.sshfl [vmem:[#allocation1] sm:$0xff pattern:$0x73625140] }
 0x4db   : > { %1964 = vst [vmem:[#allocation1 + $0x23] ss:$4 sm:$0xff] %v4146_v28  ;;  %v1696_v31 = vsub.f32 1.5, %v1695_v51 }
 0x4dc   : > { %v1876_v18 = vmul.f32 %v3992_v49, %v1844_v36  ;;  %v1877_v13 = vmul.f32 %v4002_v25, %v1845_v32  ;;  %v1878_v29 = vmul.f32 %v4006_v43, %v1846_v17  ;;  %v1879_v11 = vmul.f32 %v4009_v35, %v1847_v61 }
 0x4dd   : > { %v1697_v23 = vmul.f32 %v3394_v60, %v1696_v31 }
 0x4de   : > { %v4166_v12 = vadd.f32 %v3999_v42, %v1876_v18  ;;  %v4169_v0 = vadd.f32 %v4016_v26, %v1877_v13  ;;  %v4172_v22 = vadd.f32 %v4019_v24, %v1878_v29  ;;  %v4175_v38 = vadd.f32 %v4026_v19, %v1879_v11 }
 0x4df   : > { %v1701_v10 = vsel %vm1700_vm8, %v3394_v60, %v1697_v23 }
 0x4e0   : > { %1967 = vst [vmem:[#allocation1] ss:$4 sm:$0xff] %v4166_v12  ;;  %v1791_v2 = vperm.slane %v1701_v10, %v3817_v54  ;;  %v1795_v58 = vperm.slane %v1701_v10, %v3819_v47  ;;  %v1799_v48 = vperm.slane %v1701_v10, %v3821_v50  ;;  %v1803_v56 = vperm.slane %v1701_v10, %v3823_v39 }
 0x4e1   : > { %1968 = vst [vmem:[#allocation1 + $0x1] ss:$4 sm:$0xff] %v4169_v0 }
 0x4e2   : > { %v1966_v5 = vld.sshfl [vmem:[#allocation1 + $0x20] sm:$0xff pattern:$0x73625140]  ;;  %1969 = vst [vmem:[#allocation1 + $0x2] ss:$4 sm:$0xff] %v4172_v22  ;;  %v1848_v33 = vmul.f32 %v1791_v2, %v3960_v59  ;;  %v1849_v51 = vmul.f32 %v1795_v58, %v3963_v15  ;;  %v1850_v60 = vmul.f32 %v1799_v48, %v3966_v40  ;;  %v1851_v36 = vmul.f32 %v1803_v56, %v3969_v62 }
 0x4e3   : > { %1970 = vst [vmem:[#allocation1 + $0x3] ss:$4 sm:$0xff] %v4175_v38  ;;  %v1984_v32 = vpack.c.bf16 %v1966_v5, %v1965_v46 }
 0x4e4   : > { %v1880_v17 = vmul.f32 %v3992_v49, %v1848_v33  ;;  %v1881_v61 = vmul.f32 %v4002_v25, %v1849_v51  ;;  %v1882_v31 = vmul.f32 %v4006_v43, %v1850_v60  ;;  %v1883_v18 = vmul.f32 %v4009_v35, %v1851_v36  ;;  %v3348_v35 = vld [vmem:[%s5053_s3] ss:$0 sm:$0xff] }
 0x4e5   : > { %3319 = vmatmul.msk.bf16.gmra.mxu2 %vm364_vm1, %v1984_v32 }
 0x4e6   : > { %v4195_v59 = vadd.f32 %v3999_v42, %v1880_v17  ;;  %v4198_v15 = vadd.f32 %v4016_v26, %v1881_v61  ;;  %v4201_v40 = vadd.f32 %v4019_v24, %v1882_v31  ;;  %v4204_v62 = vadd.f32 %v4026_v19, %v1883_v18  ;;  %v2037_v24 = vld [vmem:[%s5054_s4] sm:$0xff]  ;;  %v2038_v19 = vld [vmem:[%s5054_s4 + $0x8] sm:$0xff] }
 0x4e7   : > { %v2039_v26 = vpack.c.bf16 %v2038_v19, %v2037_v24 }
 0x4e8   : > { %1971 = vst [vmem:[#allocation1 + $0x20] ss:$4 sm:$0xff] %v4195_v59 }
 0x4e9   : > { %1972 = vst [vmem:[#allocation1 + $0x21] ss:$4 sm:$0xff] %v4198_v15  ;;  %2058 = vmatpush.bf16.msrb.mxu3 %v2039_v26 }
 0x4ea   : > { %1973 = vst [vmem:[#allocation1 + $0x22] ss:$4 sm:$0xff] %v4201_v40  ;;  %v1975_v25 = vld.sshfl [vmem:[#allocation1] sm:$0xff pattern:$0x73625140] }
 0x4eb   : > { %1974 = vst [vmem:[#allocation1 + $0x23] ss:$4 sm:$0xff] %v4204_v62 }
 0x4f2   : > { %v1976_v49 = vld.sshfl [vmem:[#allocation1 + $0x20] sm:$0xff pattern:$0x73625140] }
 0x4f3   : > { %v1985_v42 = vpack.c.bf16 %v1976_v49, %v1975_v25  ;;  %v4224_v25 = vperm.slane %v3989_v53, 4 }
 0x4f5   : > { %3320 = vmatmul.msk.bf16.gmra.mxu2 %vm364_vm1, %v1985_v42 }
 0x556   : > { %v2013_v43 = vpop.f32.mrf.mxu2 }
 0x557   : > { %v2014_v13 = vadd.f32 %v3348_v35, %v2013_v43 }
 0x559   : > { %v2028_v23 = vmax.f32 %v2014_v13, 0.0 }
 0x55e   : > { %v2015_v29 = vpop.f32.mrf.mxu2 }
 0x55f   : > { %v2016_v11 = vadd.f32 %v3348_v35, %v2015_v29 }
 0x561   : > { %v2029_v46 = vmax.f32 %v2016_v11, 0.0 }
 0x563   : > { %v2034_v10 = vpack.c.bf16 %v2029_v46, %v2028_v23 }
 0x565   : > { %3321 = vmatmul.msk.bf16.vlgmr.msrb.gmra.mxu3 %vm2041_vm9, %v2034_v10 }
 0x568   : > { %v2018_v2 = vpop.f32.mrf.mxu2 }
 0x569   : > { %v2019_v58 = vadd.f32 %v3348_v35, %v2018_v2 }
 0x56b   : > { %v2030_v5 = vmax.f32 %v2019_v58, 0.0 }
 0x570   : > { %v2020_v48 = vpop.f32.mrf.mxu2 }
 0x571   : > { %v2021_v56 = vadd.f32 %v3348_v35, %v2020_v48 }
 0x573   : > { %v2031_v33 = vmax.f32 %v2021_v56, 0.0 }
 0x575   : > { %v2035_v51 = vpack.c.bf16 %v2031_v33, %v2030_v5 }
 0x577   : > { %3322 = vmatmul.msk.bf16.gmra.mxu3 %vm2041_vm9, %v2035_v51 }
 0x578   : > { %v2023_v60 = vpop.f32.mrf.mxu2 }
 0x579   : > { %v2024_v36 = vadd.f32 %v3348_v35, %v2023_v60 }
 0x57b   : > { %v2032_v61 = vmax.f32 %v2024_v36, 0.0 }
 0x580   : > { %v2025_v32 = vpop.f32.mrf.mxu2 }
 0x581   : > { %v2026_v17 = vadd.f32 %v3348_v35, %v2025_v32 }
 0x583   : > { %v2033_v31 = vmax.f32 %v2026_v17, 0.0 }
 0x585   : > { %v2036_v18 = vpack.c.bf16 %v2033_v31, %v2032_v61 }
 0x587   : > { %3323 = vmatmul.msk.bf16.gmra.mxu3 %vm2041_vm9, %v2036_v18 }
 0x5e8   : > { %v2060_v49 = vpop.f32.mrf.mxu3 }
 0x5e9   : > { %v2061_v42 = vadd.f32 %v2060_v49, %v4224_v25 }
 0x5eb   : > { %v2081_v24 = vrot.slane %v2061_v42, 2  ;;  %v2082_v19 = vrot.slane %v2061_v42, 4  ;;  %v2083_v26 = vrot.slane %v2061_v42, 6  ;;  %v4228_v43 = vadd.f32 %v2061_v42, %v4037_v21 }
 0x5ed   : > { %v4231_v13 = vadd.f32 %v2081_v24, %v4040_v20  ;;  %v4234_v35 = vadd.f32 %v2082_v19, %v4043_v16  ;;  %v4237_v29 = vadd.f32 %v2083_v26, %v4046_v37  ;;  %2165 = vst [vmem:[#allocation1] ss:$4 sm:$0xff] %v4228_v43 }
 0x5ef   : > { %2167 = vst [vmem:[#allocation1 + $0x1] ss:$4 sm:$0xff] %v4231_v13 }
 0x5f0   : > { %2169 = vst [vmem:[#allocation1 + $0x2] ss:$4 sm:$0xff] %v4234_v35  ;;  %v2062_v11 = vpop.f32.mrf.mxu3 }
 0x5f1   : > { %2171 = vst [vmem:[#allocation1 + $0x3] ss:$4 sm:$0xff] %v4237_v29  ;;  %v2063_v21 = vadd.f32 %v2062_v11, %v4224_v25 }
 0x5f3   : > { %v2084_v23 = vrot.slane %v2063_v21, 2  ;;  %v2085_v20 = vrot.slane %v2063_v21, 4  ;;  %v2086_v46 = vrot.slane %v2063_v21, 6  ;;  %v4245_v16 = vadd.f32 %v2063_v21, %v4070_v44 }
 0x5f5   : > { %v4248_v37 = vadd.f32 %v2084_v23, %v4073_v14  ;;  %v4251_v10 = vadd.f32 %v2085_v20, %v4076_v41  ;;  %v4254_v2 = vadd.f32 %v2086_v46, %v4079_v30  ;;  %2173 = vst [vmem:[#allocation1 + $0x20] ss:$4 sm:$0xff] %v4245_v16 }
 0x5f7   : > { %2175 = vst [vmem:[#allocation1 + $0x21] ss:$4 sm:$0xff] %v4248_v37 }
 0x5f8   : > { %v2180_v58 = vld.sshfl [vmem:[#allocation1] sm:$0xff pattern:$0x73625140]  ;;  %2177 = vst [vmem:[#allocation1 + $0x22] ss:$4 sm:$0xff] %v4251_v10 }
 0x5f9   : > { %2179 = vst [vmem:[#allocation1 + $0x23] ss:$4 sm:$0xff] %v4254_v2  ;;  %v2208_v44 = vsel %vm364_vm1, %v2180_v58, 0.0 }
 0x5fa   : > { %v2065_v48 = vpop.f32.mrf.mxu3  ;;  %2209 = vadd.xlane.f32.xlu1 %v2208_v44 }
 0x5fb   : > { %v2066_v14 = vadd.f32 %v2065_v48, %v4224_v25 }
 0x5fd   : > { %v2087_v41 = vrot.slane %v2066_v14, 2  ;;  %v2088_v56 = vrot.slane %v2066_v14, 4  ;;  %v2089_v5 = vrot.slane %v2066_v14, 6  ;;  %v4263_v30 = vadd.f32 %v2066_v14, %v4103_v55 }
 0x5ff   : > { %v4266_v33 = vadd.f32 %v2087_v41, %v4106_v52  ;;  %v4269_v51 = vadd.f32 %v2088_v56, %v4109_v57  ;;  %v4272_v60 = vadd.f32 %v2089_v5, %v4113_v63  ;;  %2182 = vst [vmem:[#allocation1] ss:$4 sm:$0xff] %v4263_v30 }
 0x600   : > { %v2181_v36 = vld.sshfl [vmem:[#allocation1 + $0x20] sm:$0xff pattern:$0x73625140] }
 0x601   : > { %2183 = vst [vmem:[#allocation1 + $0x1] ss:$4 sm:$0xff] %v4266_v33  ;;  %v2211_v32 = vsel %vm364_vm1, %v2181_v36, 0.0 }
 0x602   : > { %2184 = vst [vmem:[#allocation1 + $0x2] ss:$4 sm:$0xff] %v4269_v51  ;;  %v2067_v55 = vpop.f32.mrf.mxu3  ;;  %2212 = vadd.xlane.f32.xlu2 %v2211_v32 }
 0x603   : > { %2185 = vst [vmem:[#allocation1 + $0x3] ss:$4 sm:$0xff] %v4272_v60  ;;  %v2068_v52 = vadd.f32 %v2067_v55, %v4224_v25 }
 0x605   : > { %v2090_v57 = vrot.slane %v2068_v52, 2  ;;  %v2091_v17 = vrot.slane %v2068_v52, 4  ;;  %v2092_v61 = vrot.slane %v2068_v52, 6  ;;  %v4281_v63 = vadd.f32 %v2068_v52, %v4137_v45 }
 0x607   : > { %v4284_v31 = vadd.f32 %v2090_v57, %v4140_v1  ;;  %v4287_v18 = vadd.f32 %v2091_v17, %v4143_v27  ;;  %v4290_v49 = vadd.f32 %v2092_v61, %v4146_v28  ;;  %2186 = vst [vmem:[#allocation1 + $0x20] ss:$4 sm:$0xff] %v4281_v63 }
 0x609   : > { %2187 = vst [vmem:[#allocation1 + $0x21] ss:$4 sm:$0xff] %v4284_v31 }
 0x60a   : > { %v2190_v42 = vld.sshfl [vmem:[#allocation1] sm:$0xff pattern:$0x73625140]  ;;  %2188 = vst [vmem:[#allocation1 + $0x22] ss:$4 sm:$0xff] %v4287_v18  ;;  %v2070_v24 = vpop.f32.mrf.mxu3 }
 0x60b   : > { %2189 = vst [vmem:[#allocation1 + $0x23] ss:$4 sm:$0xff] %v4290_v49  ;;  %v2214_v45 = vsel %vm364_vm1, %v2190_v42, 0.0  ;;  %v2071_v1 = vadd.f32 %v2070_v24, %v4224_v25 }
 0x60c   : > { %2215 = vadd.xlane.f32.xlu0 %v2214_v45 }
 0x60d   : > { %v2093_v27 = vrot.slane %v2071_v1, 2  ;;  %v2094_v19 = vrot.slane %v2071_v1, 4  ;;  %v2095_v26 = vrot.slane %v2071_v1, 6  ;;  %v4299_v28 = vadd.f32 %v2071_v1, %v4166_v12 }
 0x60f   : > { %v4302_v11 = vadd.f32 %v2093_v27, %v4169_v0  ;;  %v4305_v21 = vadd.f32 %v2094_v19, %v4172_v22  ;;  %v4308_v23 = vadd.f32 %v2095_v26, %v4175_v38  ;;  %2192 = vst [vmem:[#allocation1] ss:$4 sm:$0xff] %v4299_v28 }
 0x611   : > { %2193 = vst [vmem:[#allocation1 + $0x1] ss:$4 sm:$0xff] %v4302_v11 }
 0x612   : > { %v2191_v20 = vld.sshfl [vmem:[#allocation1 + $0x20] sm:$0xff pattern:$0x73625140]  ;;  %2194 = vst [vmem:[#allocation1 + $0x2] ss:$4 sm:$0xff] %v4305_v21  ;;  %v2072_v46 = vpop.f32.mrf.mxu3 }
 0x613   : > { %2195 = vst [vmem:[#allocation1 + $0x3] ss:$4 sm:$0xff] %v4308_v23  ;;  %v2217_v12 = vsel %vm364_vm1, %v2191_v20, 0.0  ;;  %v2073_v0 = vadd.f32 %v2072_v46, %v4224_v25 }
 0x614   : > { %2218 = vadd.xlane.f32.xlu1 %v2217_v12 }
 0x615   : > { %v2096_v22 = vrot.slane %v2073_v0, 2  ;;  %v2097_v58 = vrot.slane %v2073_v0, 4  ;;  %v2098_v44 = vrot.slane %v2073_v0, 6  ;;  %v4317_v38 = vadd.f32 %v2073_v0, %v4195_v59 }
 0x617   : > { %v4320_v48 = vadd.f32 %v2096_v22, %v4198_v15  ;;  %v4323_v14 = vadd.f32 %v2097_v58, %v4201_v40  ;;  %v4326_v41 = vadd.f32 %v2098_v44, %v4204_v62  ;;  %2196 = vst [vmem:[#allocation1 + $0x20] ss:$4 sm:$0xff] %v4317_v38 }
 0x619   : > { %2197 = vst [vmem:[#allocation1 + $0x21] ss:$4 sm:$0xff] %v4320_v48 }
 0x61a   : > { %v2200_v25 = vld.sshfl [vmem:[#allocation1] sm:$0xff pattern:$0x73625140]  ;;  %2198 = vst [vmem:[#allocation1 + $0x22] ss:$4 sm:$0xff] %v4323_v14 }
 0x61b   : > { %2199 = vst [vmem:[#allocation1 + $0x23] ss:$4 sm:$0xff] %v4326_v41  ;;  %v2220_v59 = vsel %vm364_vm1, %v2200_v25, 0.0 }
 0x61c   : > { %2221 = vadd.xlane.f32.xlu2 %v2220_v59 }
 0x622   : > { %v2201_v15 = vld.sshfl [vmem:[#allocation1 + $0x20] sm:$0xff pattern:$0x73625140] }
 0x623   : > { %v2223_v56 = vsel %vm364_vm1, %v2201_v15, 0.0 }
 0x624   : > { %2224 = vadd.xlane.f32.xlu0 %v2223_v56 }
 0x66d   : > { %v2210_v40 = vpop.xlane.xlu1 %2209 }
 0x66e   : > { %v2226_v62 = vmul.f32 %v2210_v40, %v3815_v34 }
 0x670   : > { %v2241_v5 = vperm.slane %v2226_v62, %v3817_v54  ;;  %v2245_v36 = vperm.slane %v2226_v62, %v3819_v47  ;;  %v2249_v32 = vperm.slane %v2226_v62, %v3821_v50  ;;  %v2253_v55 = vperm.slane %v2226_v62, %v3823_v39 }
 0x672   : > { %v4340_v52 = vsub.f32 %v4228_v43, %v2241_v5  ;;  %v4343_v57 = vsub.f32 %v4231_v13, %v2245_v36  ;;  %v4346_v17 = vsub.f32 %v4234_v35, %v2249_v32  ;;  %v4349_v61 = vsub.f32 %v4237_v29, %v2253_v55 }
 0x674   : > { %v2382_v42 = vmul.f32 %v4340_v52, %v4340_v52  ;;  %v2383_v24 = vmul.f32 %v4343_v57, %v4343_v57  ;;  %v2384_v45 = vmul.f32 %v4346_v17, %v4346_v17  ;;  %v2385_v43 = vmul.f32 %v4349_v61, %v4349_v61 }
 0x675   : > { %v2213_v13 = vpop.xlane.xlu2 %2212 }
 0x676   : > { %2430 = vst [vmem:[#allocation1] ss:$4 sm:$0xff] %v2382_v42  ;;  %v2227_v35 = vmul.f32 %v2213_v13, %v3815_v34 }
 0x677   : > { %2432 = vst [vmem:[#allocation1 + $0x1] ss:$4 sm:$0xff] %v2383_v24 }
 0x678   : > { %2434 = vst [vmem:[#allocation1 + $0x2] ss:$4 sm:$0xff] %v2384_v45  ;;  %v2257_v29 = vperm.slane %v2227_v35, %v3817_v54  ;;  %v2261_v1 = vperm.slane %v2227_v35, %v3819_v47  ;;  %v2265_v27 = vperm.slane %v2227_v35, %v3821_v50  ;;  %v2269_v19 = vperm.slane %v2227_v35, %v3823_v39 }
 0x679   : > { %2436 = vst [vmem:[#allocation1 + $0x3] ss:$4 sm:$0xff] %v2385_v43 }
 0x67a   : > { %v4365_v26 = vsub.f32 %v4245_v16, %v2257_v29  ;;  %v4368_v20 = vsub.f32 %v4248_v37, %v2261_v1  ;;  %v4371_v46 = vsub.f32 %v4251_v10, %v2265_v27  ;;  %v4374_v12 = vsub.f32 %v4254_v2, %v2269_v19 }
 0x67c   : > { %v2386_v0 = vmul.f32 %v4365_v26, %v4365_v26  ;;  %v2387_v22 = vmul.f32 %v4368_v20, %v4368_v20  ;;  %v2388_v58 = vmul.f32 %v4371_v46, %v4371_v46  ;;  %v2389_v16 = vmul.f32 %v4374_v12, %v4374_v12 }
 0x67e   : > { %2438 = vst [vmem:[#allocation1 + $0x20] ss:$4 sm:$0xff] %v2386_v0 }
 0x67f   : > { %2440 = vst [vmem:[#allocation1 + $0x21] ss:$4 sm:$0xff] %v2387_v22  ;;  %v2216_v37 = vpop.xlane.xlu0 %2215 }
 0x680   : > { %2442 = vst [vmem:[#allocation1 + $0x22] ss:$4 sm:$0xff] %v2388_v58  ;;  %v2228_v10 = vmul.f32 %v2216_v37, %v3815_v34  ;;  %v2445_v2 = vld.sshfl [vmem:[#allocation1] sm:$0xff pattern:$0x73625140] }
 0x681   : > { %2444 = vst [vmem:[#allocation1 + $0x23] ss:$4 sm:$0xff] %v2389_v16  ;;  %v2473_v44 = vsel %vm364_vm1, %v2445_v2, 0.0 }
 0x682   : > { %v2273_v25 = vperm.slane %v2228_v10, %v3817_v54  ;;  %v2277_v59 = vperm.slane %v2228_v10, %v3819_v47  ;;  %v2281_v15 = vperm.slane %v2228_v10, %v3821_v50  ;;  %v2285_v56 = vperm.slane %v2228_v10, %v3823_v39  ;;  %2474 = vadd.xlane.f32.xlu1 %v2473_v44 }
 0x684   : > { %v4391_v40 = vsub.f32 %v4263_v30, %v2273_v25  ;;  %v4394_v62 = vsub.f32 %v4266_v33, %v2277_v59  ;;  %v4397_v5 = vsub.f32 %v4269_v51, %v2281_v15  ;;  %v4400_v36 = vsub.f32 %v4272_v60, %v2285_v56 }
 0x686   : > { %v2390_v32 = vmul.f32 %v4391_v40, %v4391_v40  ;;  %v2391_v55 = vmul.f32 %v4394_v62, %v4394_v62  ;;  %v2392_v42 = vmul.f32 %v4397_v5, %v4397_v5  ;;  %v2393_v30 = vmul.f32 %v4400_v36, %v4400_v36 }
 0x687   : > { %v2219_v33 = vpop.xlane.xlu1 %2218 }
 0x688   : > { %2447 = vst [vmem:[#allocation1] ss:$4 sm:$0xff] %v2390_v32  ;;  %v2229_v51 = vmul.f32 %v2219_v33, %v3815_v34  ;;  %v2446_v24 = vld.sshfl [vmem:[#allocation1 + $0x20] sm:$0xff pattern:$0x73625140] }
 0x689   : > { %2448 = vst [vmem:[#allocation1 + $0x1] ss:$4 sm:$0xff] %v2391_v55  ;;  %v2476_v60 = vsel %vm364_vm1, %v2446_v24, 0.0 }
 0x68a   : > { %2449 = vst [vmem:[#allocation1 + $0x2] ss:$4 sm:$0xff] %v2392_v42  ;;  %v2289_v45 = vperm.slane %v2229_v51, %v3817_v54  ;;  %v2293_v43 = vperm.slane %v2229_v51, %v3819_v47  ;;  %v2297_v13 = vperm.slane %v2229_v51, %v3821_v50  ;;  %v2301_v35 = vperm.slane %v2229_v51, %v3823_v39 }
 0x68b   : > { %2450 = vst [vmem:[#allocation1 + $0x3] ss:$4 sm:$0xff] %v2393_v30  ;;  %2477 = vadd.xlane.f32.xlu2 %v2476_v60 }
 0x68c   : > { %v4417_v29 = vsub.f32 %v4281_v63, %v2289_v45  ;;  %v4420_v1 = vsub.f32 %v4284_v31, %v2293_v43  ;;  %v4423_v27 = vsub.f32 %v4287_v18, %v2297_v13  ;;  %v4426_v19 = vsub.f32 %v4290_v49, %v2301_v35 }
 0x68e   : > { %v2394_v0 = vmul.f32 %v4417_v29, %v4417_v29  ;;  %v2395_v22 = vmul.f32 %v4420_v1, %v4420_v1  ;;  %v2396_v58 = vmul.f32 %v4423_v27, %v4423_v27  ;;  %v2397_v63 = vmul.f32 %v4426_v19, %v4426_v19 }
 0x68f   : > { %v2222_v31 = vpop.xlane.xlu2 %2221 }
 0x690   : > { %2451 = vst [vmem:[#allocation1 + $0x20] ss:$4 sm:$0xff] %v2394_v0  ;;  %v2230_v18 = vmul.f32 %v2222_v31, %v3815_v34 }
 0x691   : > { %2452 = vst [vmem:[#allocation1 + $0x21] ss:$4 sm:$0xff] %v2395_v22 }
 0x692   : > { %2453 = vst [vmem:[#allocation1 + $0x22] ss:$4 sm:$0xff] %v2396_v58  ;;  %v2305_v49 = vperm.slane %v2230_v18, %v3817_v54  ;;  %v2309_v16 = vperm.slane %v2230_v18, %v3819_v47  ;;  %v2313_v37 = vperm.slane %v2230_v18, %v3821_v50  ;;  %v2317_v10 = vperm.slane %v2230_v18, %v3823_v39  ;;  %v2455_v2 = vld.sshfl [vmem:[#allocation1] sm:$0xff pattern:$0x73625140] }
 0x693   : > { %2454 = vst [vmem:[#allocation1 + $0x23] ss:$4 sm:$0xff] %v2397_v63  ;;  %v2479_v44 = vsel %vm364_vm1, %v2455_v2, 0.0 }
 0x694   : > { %v4443_v25 = vsub.f32 %v4299_v28, %v2305_v49  ;;  %v4446_v59 = vsub.f32 %v4302_v11, %v2309_v16  ;;  %v4449_v15 = vsub.f32 %v4305_v21, %v2313_v37  ;;  %v4452_v56 = vsub.f32 %v4308_v23, %v2317_v10  ;;  %2480 = vadd.xlane.f32.xlu0 %v2479_v44 }
 0x696   : > { %v2398_v32 = vmul.f32 %v4443_v25, %v4443_v25  ;;  %v2399_v55 = vmul.f32 %v4446_v59, %v4446_v59  ;;  %v2400_v28 = vmul.f32 %v4449_v15, %v4449_v15  ;;  %v2401_v11 = vmul.f32 %v4452_v56, %v4452_v56 }
 0x697   : > { %v2225_v42 = vpop.xlane.xlu0 %2224 }
 0x698   : > { %2457 = vst [vmem:[#allocation1] ss:$4 sm:$0xff] %v2398_v32  ;;  %v2231_v21 = vmul.f32 %v2225_v42, %v3815_v34 }
 0x699   : > { %2458 = vst [vmem:[#allocation1 + $0x1] ss:$4 sm:$0xff] %v2399_v55 }
 0x69a   : > { %2459 = vst [vmem:[#allocation1 + $0x2] ss:$4 sm:$0xff] %v2400_v28  ;;  %v2321_v23 = vperm.slane %v2231_v21, %v3817_v54  ;;  %v2325_v30 = vperm.slane %v2231_v21, %v3819_v47  ;;  %v2329_v33 = vperm.slane %v2231_v21, %v3821_v50  ;;  %v2333_v51 = vperm.slane %v2231_v21, %v3823_v39  ;;  %v2456_v24 = vld.sshfl [vmem:[#allocation1 + $0x20] sm:$0xff pattern:$0x73625140] }
 0x69b   : > { %2460 = vst [vmem:[#allocation1 + $0x3] ss:$4 sm:$0xff] %v2401_v11  ;;  %v2482_v60 = vsel %vm364_vm1, %v2456_v24, 0.0  ;;  %v4495_v28 = vld [vmem:[%s5055_s5 + $0x8] sm:$0x7]  ;;  %v4498_v11 = vperm.slane %v3989_v53, 7 }
 0x69c   : > { %v4469_v45 = vsub.f32 %v4317_v38, %v2321_v23  ;;  %v4472_v43 = vsub.f32 %v4320_v48, %v2325_v30  ;;  %v4475_v13 = vsub.f32 %v4323_v14, %v2329_v33  ;;  %v4478_v35 = vsub.f32 %v4326_v41, %v2333_v51  ;;  %2483 = vadd.xlane.f32.xlu1 %v2482_v60 }
 0x69d   : > { %v4502_v33 = vperm.slane %v4495_v28, 0  ;;  %v4510_v53 = vrot.slane %v4498_v11, 4 }
 0x69e   : > { %v2402_v0 = vmul.f32 %v4469_v45, %v4469_v45  ;;  %v2403_v22 = vmul.f32 %v4472_v43, %v4472_v43  ;;  %v2404_v38 = vmul.f32 %v4475_v13, %v4475_v13  ;;  %v2405_v48 = vmul.f32 %v4478_v35, %v4478_v35 }
 0x6a0   : > { %2461 = vst [vmem:[#allocation1 + $0x20] ss:$4 sm:$0xff] %v2402_v0  ;;  %v4507_v0 = vrot.slane %v4498_v11, 2 }
 0x6a1   : > { %2462 = vst [vmem:[#allocation1 + $0x21] ss:$4 sm:$0xff] %v2403_v22  ;;  %v4513_v22 = vrot.slane %v4498_v11, 6 }
 0x6a2   : > { %2463 = vst [vmem:[#allocation1 + $0x22] ss:$4 sm:$0xff] %v2404_v38  ;;  %v2465_v14 = vld.sshfl [vmem:[#allocation1] sm:$0xff pattern:$0x73625140] }
 0x6a3   : > { %2464 = vst [vmem:[#allocation1 + $0x23] ss:$4 sm:$0xff] %v2405_v48  ;;  %v2485_v41 = vsel %vm364_vm1, %v2465_v14, 0.0 }
 0x6a4   : > { %2486 = vadd.xlane.f32.xlu2 %v2485_v41 }
 0x6aa   : > { %v2466_v58 = vld.sshfl [vmem:[#allocation1 + $0x20] sm:$0xff pattern:$0x73625140] }
 0x6ab   : > { %v2488_v63 = vsel %vm364_vm1, %v2466_v58, 0.0 }
 0x6ac   : > { %2489 = vadd.xlane.f32.xlu0 %v2488_v63  ;;  %v4520_v63 = vrot.slane %v4502_v33, 2 }
 0x6f5   : > { %v2475_v31 = vpop.xlane.xlu1 %2474 }
 0x6f6   : > { %v2491_v18 = vmul.f32 %v2475_v31, %v3815_v34  ;;  %v4523_v31 = vrot.slane %v4502_v33, 4 }
 0x6f8   : > { %v2497_v49 = vadd.f32 1e-05, %v2491_v18 }
 0x6fa   : > { %3395 = vrsqrt.f32 %v2497_v49  ;;  %vm2509_vm11 = vweird.f32 %v2497_v49 }
 0x6fe   : > { %v2478_v16 = vpop.xlane.xlu2 %2477 }
 0x6ff   : > { %v2492_v37 = vmul.f32 %v2478_v16, %v3815_v34 }
 0x700   : > { %v3396_v10 = vpop.eup %3395 }
 0x701   : > { %v2504_v2 = vmul.f32 %v3396_v10, %v2497_v49  ;;  %v2498_v44 = vadd.f32 1e-05, %v2492_v37  ;;  %vm2510_vm10 = vweird.f32 %v3396_v10 }
 0x702   : > { %vm2511_vm12 = vmor %vm2509_vm11, %vm2510_vm10 }
 0x703   : > { %v2505_v32 = vmul.f32 %v3396_v10, %v2504_v2  ;;  %3397 = vrsqrt.f32 %v2498_v44  ;;  %v4531_v2 = vrot.slane %v4502_v33, 6  ;;  %vm2519_vm14 = vweird.f32 %v2498_v44 }
 0x705   : > { %v2506_v55 = vmul.f32 0.5, %v2505_v32 }
 0x707   : > { %v2507_v42 = vsub.f32 1.5, %v2506_v55  ;;  %v2481_v21 = vpop.xlane.xlu0 %2480 }
 0x708   : > { %v2493_v23 = vmul.f32 %v2481_v21, %v3815_v34 }
 0x709   : > { %v3398_v30 = vpop.eup %3397  ;;  %v2508_v51 = vmul.f32 %v3396_v10, %v2507_v42 }
 0x70a   : > { %v2514_v24 = vmul.f32 %v3398_v30, %v2498_v44  ;;  %v4504_v60 = vadd.f32 1e-05, %v2493_v23  ;;  %vm2520_vm13 = vweird.f32 %v3398_v30 }
 0x70b   : > { %v2512_v38 = vsel %vm2511_vm12, %v3396_v10, %v2508_v51  ;;  %vm2521_vm15 = vmor %vm2519_vm14, %vm2520_vm13 }
 0x70c   : > { %v2572_v48 = vperm.slane %v2512_v38, %v3817_v54  ;;  %v2576_v14 = vperm.slane %v2512_v38, %v3819_v47  ;;  %v2580_v41 = vperm.slane %v2512_v38, %v3821_v50  ;;  %v2584_v58 = vperm.slane %v2512_v38, %v3823_v39 }
 0x70d   : > { %v2515_v18 = vmul.f32 %v3398_v30, %v2514_v24  ;;  %3399 = vrsqrt.f32 %v4504_v60  ;;  %vm2529_vm2 = vweird.f32 %v4504_v60 }
 0x70e   : > { %v2689_v49 = vmul.f32 %v2572_v48, %v4340_v52  ;;  %v2690_v16 = vmul.f32 %v2576_v14, %v4343_v57  ;;  %v2691_v37 = vmul.f32 %v2580_v41, %v4346_v17  ;;  %v2692_v10 = vmul.f32 %v2584_v58, %v4349_v61 }
 0x70f   : > { %v2516_v32 = vmul.f32 0.5, %v2515_v18  ;;  %v2484_v55 = vpop.xlane.xlu1 %2483 }
 0x710   : > { %v2721_v42 = vmul.f32 %v4498_v11, %v2689_v49  ;;  %v2722_v21 = vmul.f32 %v4507_v0, %v2690_v16  ;;  %v2723_v23 = vmul.f32 %v4510_v53, %v2691_v37  ;;  %v2724_v51 = vmul.f32 %v4513_v22, %v2692_v10 }
 0x711   : > { %v2517_v52 = vsub.f32 1.5, %v2516_v32  ;;  %v2494_v57 = vmul.f32 %v2484_v55, %v3815_v34 }
 0x712   : > { %v4539_v17 = vadd.f32 %v4502_v33, %v2721_v42  ;;  %v4542_v61 = vadd.f32 %v4520_v63, %v2722_v21  ;;  %v4545_v24 = vadd.f32 %v4523_v31, %v2723_v23  ;;  %v4548_v48 = vadd.f32 %v4531_v2, %v2724_v51 }
 0x713   : > { %v3400_v38 = vpop.eup %3399  ;;  %v2518_v14 = vmul.f32 %v3398_v30, %v2517_v52  ;;  %v4550_v41 = vadd.f32 1e-05, %v2494_v57 }
 0x714   : > { %2801 = vst [vmem:[#allocation1] ss:$4 sm:$0xff] %v4539_v17  ;;  %v2524_v58 = vmul.f32 %v3400_v38, %v4504_v60  ;;  %vm2530_vm0 = vweird.f32 %v3400_v38 }
 0x715   : > { %2803 = vst [vmem:[#allocation1 + $0x1] ss:$4 sm:$0xff] %v4542_v61  ;;  %v2522_v18 = vsel %vm2521_vm15, %v3398_v30, %v2518_v14  ;;  %3401 = vrsqrt.f32 %v4550_v41  ;;  %vm2531_vm3 = vmor %vm2529_vm2, %vm2530_vm0  ;;  %vm2539_vm5 = vweird.f32 %v4550_v41  ;;  %vm3213_vm0 = vcmask 62464  }
 0x716   : > { %2805 = vst [vmem:[#allocation1 + $0x2] ss:$4 sm:$0xff] %v4545_v24  ;;  %v2588_v49 = vperm.slane %v2522_v18, %v3817_v54  ;;  %v2592_v16 = vperm.slane %v2522_v18, %v3819_v47  ;;  %v2596_v44 = vperm.slane %v2522_v18, %v3821_v50  ;;  %v2600_v37 = vperm.slane %v2522_v18, %v3823_v39 }
 0x717   : > { %2807 = vst [vmem:[#allocation1 + $0x3] ss:$4 sm:$0xff] %v4548_v48  ;;  %v2525_v10 = vmul.f32 %v3400_v38, %v2524_v58  ;;  %v2487_v32 = vpop.xlane.xlu2 %2486 }
 0x718   : > { %v2693_v55 = vmul.f32 %v2588_v49, %v4365_v26  ;;  %v2694_v30 = vmul.f32 %v2592_v16, %v4368_v20  ;;  %v2695_v42 = vmul.f32 %v2596_v44, %v4371_v46  ;;  %v2696_v21 = vmul.f32 %v2600_v37, %v4374_v12 }
 0x719   : > { %v2526_v23 = vmul.f32 0.5, %v2525_v10  ;;  %v2495_v51 = vmul.f32 %v2487_v32, %v3815_v34 }
 0x71a   : > { %v2725_v52 = vmul.f32 %v4498_v11, %v2693_v55  ;;  %v2726_v57 = vmul.f32 %v4507_v0, %v2694_v30  ;;  %v2727_v14 = vmul.f32 %v4510_v53, %v2695_v42  ;;  %v2728_v58 = vmul.f32 %v4513_v22, %v2696_v21 }
 0x71b   : > { %v3402_v18 = vpop.eup %3401  ;;  %v2527_v9 = vsub.f32 1.5, %v2526_v23  ;;  %v4571_v26 = vadd.f32 1e-05, %v2495_v51 }
 0x71c   : > { %v4574_v20 = vadd.f32 %v4502_v33, %v2725_v52  ;;  %v4577_v46 = vadd.f32 %v4520_v63, %v2726_v57  ;;  %v4580_v12 = vadd.f32 %v4523_v31, %v2727_v14  ;;  %v4584_v49 = vadd.f32 %v4531_v2, %v2728_v58 }
 0x71d   : > { %v2528_v16 = vmul.f32 %v3400_v38, %v2527_v9  ;;  %v2534_v44 = vmul.f32 %v3402_v18, %v4550_v41  ;;  %3403 = vrsqrt.f32 %v4571_v26  ;;  %vm2540_vm4 = vweird.f32 %v3402_v18 }
 0x71e   : > { %2809 = vst [vmem:[#allocation1 + $0x20] ss:$4 sm:$0xff] %v4574_v20  ;;  %vm2541_vm6 = vmor %vm2539_vm5, %vm2540_vm4  ;;  %v4622_v41 = vld.sshfl [vmem:[#allocation1] sm:$0xff pattern:$0x73625140]  ;;  %vm2549_vm8 = vweird.f32 %v4571_v26 }
 0x71f   : > { %2811 = vst [vmem:[#allocation1 + $0x21] ss:$4 sm:$0xff] %v4577_v46  ;;  %v2532_v37 = vsel %vm2531_vm3, %v3400_v38, %v2528_v16  ;;  %v2535_v10 = vmul.f32 %v3402_v18, %v2534_v44  ;;  %v2490_v32 = vpop.xlane.xlu0 %2489 }
 0x720   : > { %2813 = vst [vmem:[#allocation1 + $0x22] ss:$4 sm:$0xff] %v4580_v12  ;;  %v2604_v60 = vperm.slane %v2532_v37, %v3817_v54  ;;  %v2608_v55 = vperm.slane %v2532_v37, %v3819_v47  ;;  %v2612_v9 = vperm.slane %v2532_v37, %v3821_v50  ;;  %v2616_v30 = vperm.slane %v2532_v37, %v3823_v39 }
 0x721   : > { %2815 = vst [vmem:[#allocation1 + $0x23] ss:$4 sm:$0xff] %v4584_v49  ;;  %v2536_v42 = vmul.f32 0.5, %v2535_v10  ;;  %v2496_v21 = vmul.f32 %v2490_v32, %v3815_v34 }
 0x722   : > { %v2697_v23 = vmul.f32 %v2604_v60, %v4391_v40  ;;  %v2698_v38 = vmul.f32 %v2608_v55, %v4394_v62  ;;  %v2699_v51 = vmul.f32 %v2612_v9, %v4397_v5  ;;  %v2700_v52 = vmul.f32 %v2616_v30, %v4400_v36 }
 0x723   : > { %v3404_v57 = vpop.eup %3403  ;;  %v2537_v14 = vsub.f32 1.5, %v2536_v42  ;;  %v4601_v58 = vadd.f32 1e-05, %v2496_v21 }
 0x724   : > { %v2729_v16 = vmul.f32 %v4498_v11, %v2697_v23  ;;  %v2730_v44 = vmul.f32 %v4507_v0, %v2698_v38  ;;  %v2731_v37 = vmul.f32 %v4510_v53, %v2699_v51  ;;  %v2732_v34 = vmul.f32 %v4513_v22, %v2700_v52 }
 0x725   : > { %v2538_v40 = vmul.f32 %v3402_v18, %v2537_v14  ;;  %v2544_v62 = vmul.f32 %v3404_v57, %v4571_v26  ;;  %3405 = vrsqrt.f32 %v4601_v58  ;;  %vm2550_vm7 = vweird.f32 %v3404_v57 }
 0x726   : > { %v4611_v5 = vadd.f32 %v4502_v33, %v2729_v16  ;;  %v4614_v36 = vadd.f32 %v4520_v63, %v2730_v44  ;;  %v4617_v10 = vadd.f32 %v4523_v31, %v2731_v37  ;;  %v4620_v32 = vadd.f32 %v4531_v2, %v2732_v34  ;;  %vm2551_vm9 = vmor %vm2549_vm8, %vm2550_vm7 }
 0x727   : > { %v2542_v60 = vsel %vm2541_vm6, %v3402_v18, %v2538_v40  ;;  %v2545_v55 = vmul.f32 %v3404_v57, %v2544_v62  ;;  %vm2559_vm11 = vweird.f32 %v4601_v58 }
 0x728   : > { %v2620_v9 = vperm.slane %v2542_v60, %v3817_v54  ;;  %v2624_v30 = vperm.slane %v2542_v60, %v3819_v47  ;;  %v2628_v42 = vperm.slane %v2542_v60, %v3821_v50  ;;  %v2632_v21 = vperm.slane %v2542_v60, %v3823_v39  ;;  %2818 = vst [vmem:[#allocation1] ss:$4 sm:$0xff] %v4611_v5 }
 0x729   : > { %v2546_v23 = vmul.f32 0.5, %v2545_v55  ;;  %2819 = vst [vmem:[#allocation1 + $0x1] ss:$4 sm:$0xff] %v4614_v36 }
 0x72a   : > { %v2701_v38 = vmul.f32 %v2620_v9, %v4417_v29  ;;  %v2702_v18 = vmul.f32 %v2624_v30, %v4420_v1  ;;  %v2703_v51 = vmul.f32 %v2628_v42, %v4423_v27  ;;  %v2704_v52 = vmul.f32 %v2632_v21, %v4426_v19  ;;  %2820 = vst [vmem:[#allocation1 + $0x2] ss:$4 sm:$0xff] %v4617_v10  ;;  %v2817_v30 = vld.sshfl [vmem:[#allocation1 + $0x20] sm:$0xff pattern:$0x73625140] }
 0x72b   : > { %v3406_v14 = vpop.eup %3405  ;;  %v2547_v16 = vsub.f32 1.5, %v2546_v23  ;;  %2821 = vst [vmem:[#allocation1 + $0x3] ss:$4 sm:$0xff] %v4620_v32 }
 0x72c   : > { %v2733_v44 = vmul.f32 %v4498_v11, %v2701_v38  ;;  %v2734_v37 = vmul.f32 %v4507_v0, %v2702_v18  ;;  %v2735_v34 = vmul.f32 %v4510_v53, %v2703_v51  ;;  %v2736_v29 = vmul.f32 %v4513_v22, %v2704_v52 }
 0x72d   : > { %v2548_v1 = vmul.f32 %v3404_v57, %v2547_v16  ;;  %v2554_v27 = vmul.f32 %v3406_v14, %v4601_v58  ;;  %vm2560_vm10 = vweird.f32 %v3406_v14 }
 0x72e   : > { %v4643_v19 = vadd.f32 %v4502_v33, %v2733_v44  ;;  %v4646_v40 = vadd.f32 %v4520_v63, %v2734_v37  ;;  %v4649_v62 = vadd.f32 %v4523_v31, %v2735_v34  ;;  %v4652_v60 = vadd.f32 %v4531_v2, %v2736_v29  ;;  %vm2561_vm12 = vmor %vm2559_vm11, %vm2560_vm10 }
 0x72f   : > { %v2552_v55 = vsel %vm2551_vm9, %v3404_v57, %v2548_v1  ;;  %v2555_v9 = vmul.f32 %v3406_v14, %v2554_v27 }
 0x730   : > { %v2636_v26 = vperm.slane %v2552_v55, %v3817_v54  ;;  %v2640_v42 = vperm.slane %v2552_v55, %v3819_v47  ;;  %v2644_v21 = vperm.slane %v2552_v55, %v3821_v50  ;;  %v2648_v23 = vperm.slane %v2552_v55, %v3823_v39  ;;  %2822 = vst [vmem:[#allocation1 + $0x20] ss:$4 sm:$0xff] %v4643_v19 }
 0x731   : > { %v2556_v38 = vmul.f32 0.5, %v2555_v9  ;;  %2823 = vst [vmem:[#allocation1 + $0x21] ss:$4 sm:$0xff] %v4646_v40 }
 0x732   : > { %v2705_v18 = vmul.f32 %v2636_v26, %v4443_v25  ;;  %v2706_v51 = vmul.f32 %v2640_v42, %v4446_v59  ;;  %v2707_v57 = vmul.f32 %v2644_v21, %v4449_v15  ;;  %v2708_v52 = vmul.f32 %v2648_v23, %v4452_v56  ;;  %2824 = vst [vmem:[#allocation1 + $0x22] ss:$4 sm:$0xff] %v4649_v62  ;;  %v2826_v55 = vld.sshfl [vmem:[#allocation1] sm:$0xff pattern:$0x73625140] }
 0x733   : > { %v2557_v16 = vsub.f32 1.5, %v2556_v38  ;;  %2825 = vst [vmem:[#allocation1 + $0x23] ss:$4 sm:$0xff] %v4652_v60 }
 0x734   : > { %v2737_v44 = vmul.f32 %v4498_v11, %v2705_v18  ;;  %v2738_v37 = vmul.f32 %v4507_v0, %v2706_v51  ;;  %v2739_v34 = vmul.f32 %v4510_v53, %v2707_v57  ;;  %v2740_v25 = vmul.f32 %v4513_v22, %v2708_v52 }
 0x735   : > { %v2558_v29 = vmul.f32 %v3406_v14, %v2557_v16 }
 0x736   : > { %v4672_v59 = vadd.f32 %v4502_v33, %v2737_v44  ;;  %v4675_v15 = vadd.f32 %v4520_v63, %v2738_v37  ;;  %v4678_v56 = vadd.f32 %v4523_v31, %v2739_v34  ;;  %v4681_v1 = vadd.f32 %v4531_v2, %v2740_v25 }
 0x737   : > { %v2562_v27 = vsel %vm2561_vm12, %v3406_v14, %v2558_v29  ;;  %v3425_v44 = vmov 384.0  }
 0x738   : > { %v2652_v9 = vperm.slane %v2562_v27, %v3817_v54  ;;  %v2656_v26 = vperm.slane %v2562_v27, %v3819_v47  ;;  %v2660_v58 = vperm.slane %v2562_v27, %v3821_v50  ;;  %v2664_v42 = vperm.slane %v2562_v27, %v3823_v39  ;;  %2828 = vst [vmem:[#allocation1] ss:$4 sm:$0xff] %v4672_v59 }
 0x739   : > { %2829 = vst [vmem:[#allocation1 + $0x1] ss:$4 sm:$0xff] %v4675_v15  ;;  %3407 = vrcp.f32 %v3425_v44 }
 0x73a   : > { %v2709_v21 = vmul.f32 %v2652_v9, %v4469_v45  ;;  %v2710_v23 = vmul.f32 %v2656_v26, %v4472_v43  ;;  %v2711_v38 = vmul.f32 %v2660_v58, %v4475_v13  ;;  %v2712_v14 = vmul.f32 %v2664_v42, %v4478_v35  ;;  %2830 = vst [vmem:[#allocation1 + $0x2] ss:$4 sm:$0xff] %v4678_v56  ;;  %v2827_v18 = vld.sshfl [vmem:[#allocation1 + $0x20] sm:$0xff pattern:$0x73625140] }
 0x73b   : > { %2831 = vst [vmem:[#allocation1 + $0x3] ss:$4 sm:$0xff] %v4681_v1 }
 0x73c   : > { %v2741_v54 = vmul.f32 %v4498_v11, %v2709_v21  ;;  %v2742_v47 = vmul.f32 %v4507_v0, %v2710_v23  ;;  %v2743_v50 = vmul.f32 %v4510_v53, %v2711_v38  ;;  %v2744_v39 = vmul.f32 %v4513_v22, %v2712_v14 }
 0x73d   : > { %v2845_v11 = vsel %vm364_vm1, %v2817_v30, 0.0  ;;  %v2847_v0 = vsel %vm364_vm1, %v2826_v55, 0.0 }
 0x73e   : > { %v4700_v45 = vadd.f32 %v4502_v33, %v2741_v54  ;;  %v4703_v43 = vadd.f32 %v4520_v63, %v2742_v47  ;;  %v4706_v13 = vadd.f32 %v4523_v31, %v2743_v50  ;;  %v4709_v35 = vadd.f32 %v4531_v2, %v2744_v39 }
 0x73f   : > { %v2844_v33 = vsel %vm364_vm1, %v4622_v41, 0.0  ;;  %v2849_v63 = vsel %vm364_vm1, %v2827_v18, 0.0  ;;  %v3408_v37 = vpop.eup %3407 }
 0x740   : > { %2832 = vst [vmem:[#allocation1 + $0x20] ss:$4 sm:$0xff] %v4700_v45  ;;  %v2846_v22 = vadd.f32 %v2845_v11, %v2844_v33  ;;  %v2865_v41 = vmul.f32 384.0, %v3408_v37  ;;  %vm2869_vm13 = vweird.f32 %v3408_v37 }
 0x741   : > { %2833 = vst [vmem:[#allocation1 + $0x21] ss:$4 sm:$0xff] %v4703_v43 }
 0x742   : > { %2834 = vst [vmem:[#allocation1 + $0x22] ss:$4 sm:$0xff] %v4706_v13  ;;  %v2836_v53 = vld.sshfl [vmem:[#allocation1] sm:$0xff pattern:$0x73625140]  ;;  %v2848_v31 = vadd.f32 %v2847_v0, %v2846_v22  ;;  %v2866_v34 = vsub.f32 1.0, %v2865_v41 }
 0x743   : > { %2835 = vst [vmem:[#allocation1 + $0x23] ss:$4 sm:$0xff] %v4709_v35  ;;  %v2851_v2 = vsel %vm364_vm1, %v2836_v53, 0.0 }
 0x744   : > { %v2850_v51 = vadd.f32 %v2849_v63, %v2848_v31  ;;  %v2867_v55 = vmul.f32 %v3408_v37, %v2866_v34 }
 0x746   : > { %v2852_v52 = vadd.f32 %v2851_v2, %v2850_v51  ;;  %v2868_v58 = vadd.f32 %v3408_v37, %v2867_v55 }
 0x748   : > { %v2870_v23 = vsel %vm2869_vm13, %v3408_v37, %v2868_v58 }
 0x74a   : > { %v2837_v57 = vld.sshfl [vmem:[#allocation1 + $0x20] sm:$0xff pattern:$0x73625140] }
 0x74b   : > { %v2853_v30 = vsel %vm364_vm1, %v2837_v57, 0.0 }
 0x74c   : > { %v2854_v16 = vadd.f32 %v2853_v30, %v2852_v52 }
 0x74e   : > { %2855 = vadd.xlane.f32.xlu1 %v2854_v16 }
 0x7c1   : > { %v2856_v25 = vpop.xlane.xlu1 %2855 }
 0x7c2   : > { %v2857_v29 = vrot.slane %v2856_v25, 4 }
 0x7c4   : > { %v2858_v27 = vadd.f32 %v2857_v29, %v2856_v25 }
 0x7c6   : > { %v2859_v9 = vrot.slane %v2858_v27, 2 }
 0x7c8   : > { %v2860_v26 = vadd.f32 %v2859_v9, %v2858_v27 }
 0x7ca   : > { %v2861_v42 = vrot.slane %v2860_v26, 1 }
 0x7cc   : > { %v2862_v21 = vadd.f32 %v2861_v42, %v2860_v26 }
 0x7ce   : > { %3326 = vpush %v2862_v21 }
 0x7cf   : > { %3328 = vpush %v2870_v23 }
 0x7ff   : > { %s3327_s29 = spop %3326 }
 0x800   : > { %s4722_s30 = spop %3328 }
 0x801   : > { %s2872_s7 = smul.f32 %s4722_s30, %s3327_s29 }
 0x803   : > { %v4725_v38 = vstv %s2872_s7 }
 0x804   : > { %v4729_v14 = vsub.f32 %v4539_v17, %v4725_v38  ;;  %v4733_v54 = vsub.f32 %v4542_v61, %v4725_v38  ;;  %v4737_v47 = vsub.f32 %v4545_v24, %v4725_v38  ;;  %v4741_v50 = vsub.f32 %v4548_v48, %v4725_v38 }
 0x805   : > { %v4745_v39 = vsub.f32 %v4574_v20, %v4725_v38  ;;  %v4749_v17 = vsub.f32 %v4577_v46, %v4725_v38  ;;  %v4753_v61 = vsub.f32 %v4580_v12, %v4725_v38  ;;  %v4763_v20 = vsub.f32 %v4584_v49, %v4725_v38 }
 0x806   : > { %v2898_v24 = vmul.f32 %v4729_v14, %v4729_v14  ;;  %v2899_v18 = vmul.f32 %v4733_v54, %v4733_v54  ;;  %v2900_v48 = vmul.f32 %v4737_v47, %v4737_v47  ;;  %v2901_v46 = vmul.f32 %v4741_v50, %v4741_v50 }
 0x807   : > { %v2902_v12 = vmul.f32 %v4745_v39, %v4745_v39  ;;  %v2903_v11 = vmul.f32 %v4749_v17, %v4749_v17  ;;  %v2904_v33 = vmul.f32 %v4753_v61, %v4753_v61  ;;  %v2905_v0 = vmul.f32 %v4763_v20, %v4763_v20 }
 0x808   : > { %2946 = vst [vmem:[#allocation1] ss:$4 sm:$0xff] %v2898_v24  ;;  %v4777_v49 = vsub.f32 %v4611_v5, %v4725_v38  ;;  %v4781_v53 = vsub.f32 %v4614_v36, %v4725_v38  ;;  %v4785_v22 = vsub.f32 %v4617_v10, %v4725_v38  ;;  %v4789_v63 = vsub.f32 %v4620_v32, %v4725_v38 }
 0x809   : > { %2948 = vst [vmem:[#allocation1 + $0x1] ss:$4 sm:$0xff] %v2899_v18  ;;  %v4793_v31 = vsub.f32 %v4643_v19, %v4725_v38  ;;  %v4799_v36 = vsub.f32 %v4646_v40, %v4725_v38  ;;  %v4805_v51 = vsub.f32 %v4649_v62, %v4725_v38  ;;  %v4811_v19 = vsub.f32 %v4652_v60, %v4725_v38 }
 0x80a   : > { %2950 = vst [vmem:[#allocation1 + $0x2] ss:$4 sm:$0xff] %v2900_v48  ;;  %v2906_v5 = vmul.f32 %v4777_v49, %v4777_v49  ;;  %v2907_v10 = vmul.f32 %v4781_v53, %v4781_v53  ;;  %v2908_v32 = vmul.f32 %v4785_v22, %v4785_v22  ;;  %v2909_v40 = vmul.f32 %v4789_v63, %v4789_v63 }
 0x80b   : > { %2952 = vst [vmem:[#allocation1 + $0x3] ss:$4 sm:$0xff] %v2901_v46  ;;  %v2910_v57 = vmul.f32 %v4793_v31, %v4793_v31  ;;  %v2911_v62 = vmul.f32 %v4799_v36, %v4799_v36  ;;  %v2912_v30 = vmul.f32 %v4805_v51, %v4805_v51  ;;  %v4823_v60 = vsub.f32 %v4672_v59, %v4725_v38 }
 0x80c   : > { %2954 = vst [vmem:[#allocation1 + $0x20] ss:$4 sm:$0xff] %v2902_v12  ;;  %v2913_v16 = vmul.f32 %v4811_v19, %v4811_v19  ;;  %v4829_v44 = vsub.f32 %v4675_v15, %v4725_v38  ;;  %v4833_v37 = vsub.f32 %v4678_v56, %v4725_v38  ;;  %v4837_v41 = vsub.f32 %v4681_v1, %v4725_v38 }
 0x80d   : > { %2956 = vst [vmem:[#allocation1 + $0x21] ss:$4 sm:$0xff] %v2903_v11  ;;  %v4841_v59 = vsub.f32 %v4700_v45, %v4725_v38  ;;  %v2914_v34 = vmul.f32 %v4823_v60, %v4823_v60  ;;  %v4847_v15 = vsub.f32 %v4703_v43, %v4725_v38  ;;  %v4853_v29 = vsub.f32 %v4706_v13, %v4725_v38 }
 0x80e   : > { %2958 = vst [vmem:[#allocation1 + $0x22] ss:$4 sm:$0xff] %v2904_v33  ;;  %v2915_v56 = vmul.f32 %v4829_v44, %v4829_v44  ;;  %v2916_v1 = vmul.f32 %v4833_v37, %v4833_v37  ;;  %v4859_v45 = vsub.f32 %v4709_v35, %v4725_v38  ;;  %v2917_v43 = vmul.f32 %v4837_v41, %v4837_v41 }
 0x80f   : > { %2960 = vst [vmem:[#allocation1 + $0x23] ss:$4 sm:$0xff] %v2905_v0  ;;  %v2918_v13 = vmul.f32 %v4841_v59, %v4841_v59  ;;  %v2919_v9 = vmul.f32 %v4847_v15, %v4847_v15  ;;  %v2920_v58 = vmul.f32 %v4853_v29, %v4853_v29 }
 0x810   : > { %v2921_v21 = vmul.f32 %v4859_v45, %v4859_v45 }
 0x812   : > { %v2961_v2 = vld.sshfl [vmem:[#allocation1] sm:$0xff pattern:$0x73625140] }
 0x813   : > { %2963 = vst [vmem:[#allocation1] ss:$4 sm:$0xff] %v2906_v5  ;;  %v2989_v27 = vsel %vm364_vm1, %v2961_v2, 0.0 }
 0x814   : > { %2964 = vst [vmem:[#allocation1 + $0x1] ss:$4 sm:$0xff] %v2907_v10 }
 0x815   : > { %2965 = vst [vmem:[#allocation1 + $0x2] ss:$4 sm:$0xff] %v2908_v32 }
 0x816   : > { %v2962_v52 = vld.sshfl [vmem:[#allocation1 + $0x20] sm:$0xff pattern:$0x73625140]  ;;  %2966 = vst [vmem:[#allocation1 + $0x3] ss:$4 sm:$0xff] %v2909_v40 }
 0x817   : > { %2967 = vst [vmem:[#allocation1 + $0x20] ss:$4 sm:$0xff] %v2910_v57  ;;  %v2990_v55 = vsel %vm364_vm1, %v2962_v52, 0.0 }
 0x818   : > { %2968 = vst [vmem:[#allocation1 + $0x21] ss:$4 sm:$0xff] %v2911_v62  ;;  %v2991_v42 = vadd.f32 %v2990_v55, %v2989_v27 }
 0x819   : > { %2969 = vst [vmem:[#allocation1 + $0x22] ss:$4 sm:$0xff] %v2912_v30 }
 0x81a   : > { %2970 = vst [vmem:[#allocation1 + $0x23] ss:$4 sm:$0xff] %v2913_v16 }
 0x81d   : > { %v2971_v25 = vld.sshfl [vmem:[#allocation1] sm:$0xff pattern:$0x73625140] }
 0x81e   : > { %2973 = vst [vmem:[#allocation1] ss:$4 sm:$0xff] %v2914_v34  ;;  %v2992_v35 = vsel %vm364_vm1, %v2971_v25, 0.0 }
 0x81f   : > { %2974 = vst [vmem:[#allocation1 + $0x1] ss:$4 sm:$0xff] %v2915_v56  ;;  %v2993_v23 = vadd.f32 %v2992_v35, %v2991_v42 }
 0x820   : > { %2975 = vst [vmem:[#allocation1 + $0x2] ss:$4 sm:$0xff] %v2916_v1 }
 0x821   : > { %v2972_v26 = vld.sshfl [vmem:[#allocation1 + $0x20] sm:$0xff pattern:$0x73625140]  ;;  %2976 = vst [vmem:[#allocation1 + $0x3] ss:$4 sm:$0xff] %v2917_v43  ;;  %v4879_v43 = vperm.slane %v4495_v28, 1 }
 0x822   : > { %2977 = vst [vmem:[#allocation1 + $0x20] ss:$4 sm:$0xff] %v2918_v13  ;;  %v2994_v38 = vsel %vm364_vm1, %v2972_v26, 0.0  ;;  %v4887_v13 = vperm.slane %v4495_v28, 2 }
 0x823   : > { %2978 = vst [vmem:[#allocation1 + $0x21] ss:$4 sm:$0xff] %v2919_v9  ;;  %v2995_v18 = vadd.f32 %v2994_v38, %v2993_v23  ;;  %v4884_v55 = vrot.slane %v4879_v43, 2  ;;  %v4890_v9 = vrot.slane %v4879_v43, 4  ;;  %v4899_v42 = vrot.slane %v4879_v43, 6 }
 0x824   : > { %2979 = vst [vmem:[#allocation1 + $0x22] ss:$4 sm:$0xff] %v2920_v58  ;;  %v4906_v23 = vrot.slane %v4887_v13, 2 }
 0x825   : > { %2980 = vst [vmem:[#allocation1 + $0x23] ss:$4 sm:$0xff] %v2921_v21 }
 0x828   : > { %v2981_v24 = vld.sshfl [vmem:[#allocation1] sm:$0xff pattern:$0x73625140] }
 0x829   : > { %v2996_v48 = vsel %vm364_vm1, %v2981_v24, 0.0 }
 0x82a   : > { %v2997_v46 = vadd.f32 %v2996_v48, %v2995_v18 }
 0x82c   : > { %v2982_v12 = vld.sshfl [vmem:[#allocation1 + $0x20] sm:$0xff pattern:$0x73625140] }
 0x82d   : > { %v2998_v11 = vsel %vm364_vm1, %v2982_v12, 0.0 }
 0x82e   : > { %v2999_v33 = vadd.f32 %v2998_v11, %v2997_v46 }
 0x830   : > { %3000 = vadd.xlane.f32.xlu2 %v2999_v33 }
 0x8a3   : > { %v3001_v0 = vpop.xlane.xlu2 %3000 }
 0x8a4   : > { %v3002_v5 = vrot.slane %v3001_v0, 4 }
 0x8a6   : > { %v3003_v10 = vadd.f32 %v3002_v5, %v3001_v0 }
 0x8a8   : > { %v3004_v2 = vrot.slane %v3003_v10, 2 }
 0x8aa   : > { %v3005_v32 = vadd.f32 %v3004_v2, %v3003_v10 }
 0x8ac   : > { %v3006_v40 = vrot.slane %v3005_v32, 1 }
 0x8ae   : > { %v3007_v57 = vadd.f32 %v3006_v40, %v3005_v32 }
 0x8b0   : > { %3330 = vpush %v3007_v57 }
 0x8e1   : > { %s3331_s8 = spop %3330 }
 0x8e2   : > { %s3017_s9 = smul.f32 %s3331_s8, %s4722_s30 }
 0x8e4   : > { %s3018_s10 = sadd.f32 1e-08, %s3017_s9 }
 0x8e6   : > { %v3019_v62 = vstv %s3018_s10 }
 0x8e7   : > { %3409 = vrsqrt.f32 %v3019_v62  ;;  %vm3026_vm14 = vweird.f32 %v3019_v62 }
 0x8ed   : > { %v3410_v52 = vpop.eup %3409 }
 0x8ee   : > { %v3021_v30 = vmul.f32 %v3410_v52, %v3019_v62  ;;  %vm3027_vm1 = vweird.f32 %v3410_v52 }
 0x8ef   : > { %vm3028_vm15 = vmor %vm3026_vm14, %vm3027_vm1 }
 0x8f0   : > { %v3022_v16 = vmul.f32 %v3410_v52, %v3021_v30 }
 0x8f2   : > { %v3023_v34 = vmul.f32 0.5, %v3022_v16 }
 0x8f4   : > { %v3024_v56 = vsub.f32 1.5, %v3023_v34 }
 0x8f6   : > { %v3025_v25 = vmul.f32 %v3410_v52, %v3024_v56 }
 0x8f8   : > { %v3029_v1 = vsel %vm3028_vm15, %v3410_v52, %v3025_v25 }
 0x8f9   : > { %3332 = vpush %v3029_v1 }
 0x92a   : > { %s3333_s11 = spop %3332 }
 0x92b   : > { %v4881_v27 = vstv %s3333_s11 }
 0x92c   : > { %v3032_v26 = vmul.f32 %v4881_v27, %v4729_v14  ;;  %v3033_v35 = vmul.f32 %v4881_v27, %v4733_v54  ;;  %v3034_v58 = vmul.f32 %v4881_v27, %v4737_v47  ;;  %v3035_v21 = vmul.f32 %v4881_v27, %v4741_v50 }
 0x92d   : > { %v3036_v28 = vmul.f32 %v4881_v27, %v4745_v39  ;;  %v3037_v14 = vmul.f32 %v4881_v27, %v4749_v17  ;;  %v4911_v54 = vrot.slane %v4887_v13, 4  ;;  %v4917_v50 = vrot.slane %v4887_v13, 6 }
 0x92e   : > { %v3064_v47 = vmul.f32 %v4879_v43, %v3032_v26  ;;  %v3065_v38 = vmul.f32 %v4884_v55, %v3033_v35  ;;  %v3066_v24 = vmul.f32 %v4890_v9, %v3034_v58  ;;  %v3067_v39 = vmul.f32 %v4899_v42, %v3035_v21  ;;  %v5096_v58 = vld [vmem:[#allocation2_spill] sm:$0xff] }
 0x92f   : > { %v3068_v18 = vmul.f32 %v4879_v43, %v3036_v28  ;;  %v3069_v48 = vmul.f32 %v4884_v55, %v3037_v14  ;;  %v3038_v33 = vmul.f32 %v4881_v27, %v4753_v61  ;;  %v3039_v5 = vmul.f32 %v4881_v27, %v4763_v20  ;;  %v5097_v14 = vld [vmem:[#allocation4_spill] sm:$0xff] }
 0x930   : > { %v3096_v17 = vadd.f32 %v4887_v13, %v3064_v47  ;;  %v3097_v46 = vadd.f32 %v4906_v23, %v3065_v38  ;;  %v3098_v12 = vadd.f32 %v4911_v54, %v3066_v24  ;;  %v3099_v11 = vadd.f32 %v4917_v50, %v3067_v39  ;;  %v5098_v39 = vld [vmem:[#allocation6_spill] sm:$0xff] }
 0x931   : > { %v3100_v0 = vadd.f32 %v4887_v13, %v3068_v18  ;;  %v3101_v10 = vadd.f32 %v4906_v23, %v3069_v48  ;;  %v3040_v2 = vmul.f32 %v4881_v27, %v4777_v49  ;;  %v3041_v62 = vmul.f32 %v4881_v27, %v4781_v53  ;;  %v5095_v49 = vld [vmem:[#allocation3_spill] sm:$0xff] }
 0x932   : > { %v3120_v32 = vadd.f32 %v3096_v17, %v3484_v3  ;;  %v3121_v40 = vadd.f32 %v3097_v46, %v3493_v6  ;;  %v3122_v57 = vadd.f32 %v3098_v12, %v3496_v7  ;;  %v3123_v61 = vadd.f32 %v3099_v11, %v3487_v4  ;;  %v5100_v12 = vld [vmem:[#allocation8_spill] sm:$0xff] }
 0x933   : > { %v3042_v52 = vmul.f32 %v4881_v27, %v4785_v22  ;;  %v3070_v20 = vmul.f32 %v4890_v9, %v3038_v33  ;;  %v3124_v30 = vadd.f32 %v3100_v0, %v3499_v8  ;;  %v3043_v3 = vmul.f32 %v4881_v27, %v4789_v63 }
 0x934   : > { %3168 = vst [vmem:[#allocation1] ss:$4 sm:$0xff] %v3120_v32  ;;  %v3071_v6 = vmul.f32 %v4899_v42, %v3039_v5  ;;  %v3125_v7 = vadd.f32 %v3101_v10, %v5095_v49  ;;  %v3072_v53 = vmul.f32 %v4879_v43, %v3040_v2  ;;  %v3073_v4 = vmul.f32 %v4884_v55, %v3041_v62  ;;  %v5103_v49 = vld [vmem:[#allocation10_spill] sm:$0xff] }
 0x935   : > { %3170 = vst [vmem:[#allocation1 + $0x1] ss:$4 sm:$0xff] %v3121_v40  ;;  %v3074_v22 = vmul.f32 %v4890_v9, %v3042_v52  ;;  %v3102_v16 = vadd.f32 %v4911_v54, %v3070_v20  ;;  %v3075_v8 = vmul.f32 %v4899_v42, %v3043_v3  ;;  %v3044_v34 = vmul.f32 %v4881_v27, %v4793_v31 }
 0x936   : > { %3172 = vst [vmem:[#allocation1 + $0x2] ss:$4 sm:$0xff] %v3122_v57  ;;  %v3103_v63 = vadd.f32 %v4917_v50, %v3071_v6  ;;  %v3104_v56 = vadd.f32 %v4887_v13, %v3072_v53  ;;  %v3045_v25 = vmul.f32 %v4881_v27, %v4799_v36  ;;  %v3105_v1 = vadd.f32 %v4906_v23, %v3073_v4 }
 0x937   : > { %3175 = vst [vmem:[#allocation1 + $0x20] ss:$4 sm:$0xff] %v3123_v61  ;;  %v3046_v26 = vmul.f32 %v4881_v27, %v4805_v51  ;;  %v3106_v35 = vadd.f32 %v4911_v54, %v3074_v22  ;;  %v3126_v21 = vadd.f32 %v3102_v16, %v5096_v58  ;;  %v3047_v28 = vmul.f32 %v4881_v27, %v4811_v19  ;;  %v5099_v19 = vld [vmem:[#allocation5_spill] sm:$0xff]  ;;  %v5104_v22 = vld [vmem:[#allocation11_spill] sm:$0xff] }
 0x938   : > { %3177 = vst [vmem:[#allocation1 + $0x21] ss:$4 sm:$0xff] %v3124_v30  ;;  %v3107_v31 = vadd.f32 %v4917_v50, %v3075_v8  ;;  %v3127_v47 = vadd.f32 %v3103_v63, %v5097_v14  ;;  %v3048_v36 = vmul.f32 %v4881_v27, %v4823_v60  ;;  %v3076_v24 = vmul.f32 %v4879_v43, %v3044_v34  ;;  %v5102_v30 = vld [vmem:[#allocation7_spill] sm:$0xff]  ;;  %v5105_v63 = vld [vmem:[#allocation12_spill] sm:$0xff] }
 0x939   : > { %3179 = vst [vmem:[#allocation1 + $0x22] ss:$4 sm:$0xff] %v3125_v7  ;;  %v3128_v51 = vadd.f32 %v3104_v56, %v5098_v39  ;;  %v3049_v18 = vmul.f32 %v4881_v27, %v4829_v44  ;;  %v3077_v48 = vmul.f32 %v4884_v55, %v3045_v25  ;;  %v3129_v17 = vadd.f32 %v3105_v1, %v5099_v19  ;;  %v5101_v44 = vld [vmem:[#allocation9_spill] sm:$0xff]  ;;  %v5106_v56 = vld [vmem:[#allocation14_spill] sm:$0xff]  ;;  %v5112_v39 = vld [vmem:[#allocation19_spill] sm:$0xff] }
 0x93a   : > { %v3078_v46 = vmul.f32 %v4890_v9, %v3046_v26  ;;  %v3130_v11 = vadd.f32 %v3106_v35, %v5100_v12  ;;  %v3079_v60 = vmul.f32 %v4899_v42, %v3047_v28  ;;  %v3131_v0 = vadd.f32 %v3107_v31, %v5101_v44  ;;  %v5107_v26 = vld [vmem:[#allocation15_spill] sm:$0xff]  ;;  %v5108_v31 = vld [vmem:[#allocation13_spill] sm:$0xff] }
 0x93b   : > { %v3080_v5 = vmul.f32 %v4879_v43, %v3048_v36  ;;  %v3108_v10 = vadd.f32 %v4887_v13, %v3076_v24  ;;  %v3081_v2 = vmul.f32 %v4884_v55, %v3049_v18  ;;  %v3109_v32 = vadd.f32 %v4906_v23, %v3077_v48  ;;  %v5110_v36 = vld [vmem:[#allocation18_spill] sm:$0xff]  ;;  %v5111_v24 = vld [vmem:[#allocation16_spill] sm:$0xff] }
 0x93c   : > { %v3050_v40 = vmul.f32 %v4881_v27, %v4833_v37  ;;  %v3110_v57 = vadd.f32 %v4911_v54, %v3078_v46  ;;  %v3051_v62 = vmul.f32 %v4881_v27, %v4837_v41  ;;  %v3111_v61 = vadd.f32 %v4917_v50, %v3079_v60  ;;  %v5113_v18 = vld [vmem:[#allocation20_spill] sm:$0xff] }
 0x93d   : > { %v3173_v38 = vld.sshfl [vmem:[#allocation1] sm:$0xff pattern:$0x73625140]  ;;  %v3052_v52 = vmul.f32 %v4881_v27, %v4841_v59  ;;  %v3112_v20 = vadd.f32 %v4887_v13, %v3080_v5  ;;  %v3132_v3 = vadd.f32 %v3108_v10, %v5102_v30  ;;  %v3053_v37 = vmul.f32 %v4881_v27, %v4847_v15 }
 0x93e   : > { %3181 = vst [vmem:[#allocation1] ss:$4 sm:$0xff] %v3126_v21  ;;  %v3113_v6 = vadd.f32 %v4906_v23, %v3081_v2  ;;  %v3133_v7 = vadd.f32 %v3109_v32, %v5103_v49  ;;  %v3054_v41 = vmul.f32 %v4881_v27, %v4853_v29  ;;  %v3082_v4 = vmul.f32 %v4890_v9, %v3050_v40 }
 0x93f   : > { %3182 = vst [vmem:[#allocation1 + $0x1] ss:$4 sm:$0xff] %v3127_v47  ;;  %v3134_v16 = vadd.f32 %v3110_v57, %v5104_v22  ;;  %v3055_v59 = vmul.f32 %v4881_v27, %v4859_v45  ;;  %v3083_v8 = vmul.f32 %v4899_v42, %v3051_v62  ;;  %v3135_v15 = vadd.f32 %v3111_v61, %v5105_v63 }
 0x940   : > { %v3180_v33 = vld.sshfl [vmem:[#allocation1 + $0x20] sm:$0xff pattern:$0x73625140]  ;;  %3183 = vst [vmem:[#allocation1 + $0x2] ss:$4 sm:$0xff] %v3128_v51  ;;  %v3084_v34 = vmul.f32 %v4879_v43, %v3052_v52  ;;  %v3136_v25 = vadd.f32 %v3112_v20, %v5106_v56  ;;  %v3085_v1 = vmul.f32 %v4884_v55, %v3053_v37  ;;  %v3137_v35 = vadd.f32 %v3113_v6, %v5107_v26 }
 0x941   : > { %3185 = vst [vmem:[#allocation1 + $0x20] ss:$4 sm:$0xff] %v3129_v17  ;;  %v3086_v45 = vmul.f32 %v4890_v9, %v3054_v41  ;;  %v3114_v27 = vadd.f32 %v4911_v54, %v3082_v4  ;;  %v3087_v58 = vmul.f32 %v4899_v42, %v3055_v59  ;;  %v3115_v21 = vadd.f32 %v4917_v50, %v3083_v8  ;;  %v5109_v42 = vld [vmem:[#allocation17_spill] sm:$0xff] }
 0x942   : > { %3186 = vst [vmem:[#allocation1 + $0x21] ss:$4 sm:$0xff] %v3130_v11  ;;  %v3116_v43 = vadd.f32 %v4887_v13, %v3084_v34  ;;  %v3117_v28 = vadd.f32 %v4906_v23, %v3085_v1 }
 0x943   : > { %3187 = vst [vmem:[#allocation1 + $0x22] ss:$4 sm:$0xff] %v3131_v0  ;;  %v3118_v55 = vadd.f32 %v4911_v54, %v3086_v45  ;;  %v3138_v9 = vadd.f32 %v3114_v27, %v5108_v31  ;;  %v3119_v14 = vadd.f32 %v4917_v50, %v3087_v58  ;;  %v3139_v47 = vadd.f32 %v3115_v21, %v5109_v42 }
 0x944   : > { %3214 = vst.msk [vmem:[%s4983_s14] sm:$0x3f] %vm3213_vm0, %v3173_v38  ;;  %v3140_v13 = vadd.f32 %v3116_v43, %v5110_v36  ;;  %v3141_v23 = vadd.f32 %v3117_v28, %v5111_v24 }
 0x945   : > { %3215 = vst.msk [vmem:[%s4983_s14 + $0x8] sm:$0x3f] %vm3213_vm0, %v3180_v33  ;;  %v3142_v51 = vadd.f32 %v3118_v55, %v5112_v39  ;;  %v3143_v48 = vadd.f32 %v3119_v14, %v5113_v18 }
 0x947   : > { %v3184_v53 = vld.sshfl [vmem:[#allocation1] sm:$0xff pattern:$0x73625140] }
 0x948   : > { %3189 = vst [vmem:[#allocation1] ss:$4 sm:$0xff] %v3132_v3 }
 0x949   : > { %3190 = vst [vmem:[#allocation1 + $0x1] ss:$4 sm:$0xff] %v3133_v7 }
 0x94a   : > { %v3188_v29 = vld.sshfl [vmem:[#allocation1 + $0x20] sm:$0xff pattern:$0x73625140]  ;;  %3191 = vst [vmem:[#allocation1 + $0x2] ss:$4 sm:$0xff] %v3134_v16 }
 0x94b   : > { %3193 = vst [vmem:[#allocation1 + $0x20] ss:$4 sm:$0xff] %v3135_v15 }
 0x94c   : > { %3194 = vst [vmem:[#allocation1 + $0x21] ss:$4 sm:$0xff] %v3136_v25 }
 0x94d   : > { %3195 = vst [vmem:[#allocation1 + $0x22] ss:$4 sm:$0xff] %v3137_v35 }
 0x94e   : > { %3216 = vst.msk [vmem:[%s4983_s14 + $0x10] sm:$0x3f] %vm3213_vm0, %v3184_v53 }
 0x94f   : > { %3217 = vst.msk [vmem:[%s4983_s14 + $0x18] sm:$0x3f] %vm3213_vm0, %v3188_v29 }
 0x951   : > { %v3192_v38 = vld.sshfl [vmem:[#allocation1] sm:$0xff pattern:$0x73625140] }
 0x952   : > { %3197 = vst [vmem:[#allocation1] ss:$4 sm:$0xff] %v3138_v9 }
 0x953   : > { %3198 = vst [vmem:[#allocation1 + $0x1] ss:$4 sm:$0xff] %v3139_v47 }
 0x954   : > { %v3196_v54 = vld.sshfl [vmem:[#allocation1 + $0x20] sm:$0xff pattern:$0x73625140]  ;;  %3199 = vst [vmem:[#allocation1 + $0x2] ss:$4 sm:$0xff] %v3140_v13 }
 0x955   : > { %3201 = vst [vmem:[#allocation1 + $0x20] ss:$4 sm:$0xff] %v3141_v23 }
 0x956   : > { %3202 = vst [vmem:[#allocation1 + $0x21] ss:$4 sm:$0xff] %v3142_v51 }
 0x957   : > { %3203 = vst [vmem:[#allocation1 + $0x22] ss:$4 sm:$0xff] %v3143_v48 }
 0x958   : > { %3218 = vst.msk [vmem:[%s4983_s14 + $0x20] sm:$0x3f] %vm3213_vm0, %v3192_v38 }
 0x959   : > { %3219 = vst.msk [vmem:[%s4983_s14 + $0x28] sm:$0x3f] %vm3213_vm0, %v3196_v54 }
 0x95b   : > { %v3200_v50 = vld.sshfl [vmem:[#allocation1] sm:$0xff pattern:$0x73625140] }
 0x95c   : > { %3220 = vst.msk [vmem:[%s4983_s14 + $0x30] sm:$0x3f] %vm3213_vm0, %v3200_v50 }
 0x95e   : > { %v3204_v19 = vld.sshfl [vmem:[#allocation1 + $0x20] sm:$0xff pattern:$0x73625140] }
 0x95f   : > { %3221 = vst.msk [vmem:[%s4983_s14 + $0x38] sm:$0x3f] %vm3213_vm0, %v3204_v19 }
 0x960 PF: > { %s16_s21 = sadd.s32 1, %s3418_s21  }
 0x961   : > { %p13_p4 = scmp.ge.s32.totalorder %s16_s21, 4  }
 0x963   :  { %15 = sbr.rel (!%p13_p4) target bundleno = 1 (0x1), region = 160 }

</bundles_post_ra>
